<compile_context>
chip_gen: v7x
topology: tpu7x:2x2x1
jax: 0.10.0
libtpu: 0.0.40
codegen_flags: <defaults>
</compile_context>

<pallas_src>
import functools

import jax
import jax.numpy as jnp
from jax import lax
from jax.experimental import pallas as pl
from jax.experimental.pallas import tpu as pltpu


def _basic_block_kernel(x_ref, w1_ref, s1_ref, b1_ref, w2_ref, s2_ref, b2_ref,
                        out_ref, *, TH, W, H):
    """One (batch, row-tile) grid cell of the fused BasicBlock.

    x_ref  : (H+4, W+4, Cp)    bf16  full padded image for this batch element
                                     (resident across the row-tile axis)
    w1_ref : (3, 3*Cp, Cp)     bf16  conv1 weights, row index = dx*Cp + ci
    s1/b1  : (1, Cp)           f32   folded BN1 scale / bias
    w2_ref : (3, 3*Cp, Cp)     bf16  conv2 weights
    s2/b2  : (1, Cp)           f32   folded BN2 scale / bias
    out_ref: (TH, W, Cp)       f32
    """
    t = pl.program_id(1)
    f32 = jnp.float32
    dims = (((2,), (0,)), ((), ()))  # contract last dim of patch with rows of W

    # Row window for this tile, including the 2-wide halo needed by the two
    # fused 3x3 convs.  One dynamic load, then cheap value slices.
    r0 = pl.multiple_of(t * TH, TH)
    xt = x_ref[pl.ds(r0, TH + 4)]                            # (TH+4, W+4, Cp)

    # ---------------- conv1 over the extended (TH+2, W+2) region --------------
    # Fold the three dx shifts into the K dimension (K = 3*Cp).
    full1 = jnp.concatenate(
        [xt[:, 0:W + 2, :], xt[:, 1:W + 3, :], xt[:, 2:W + 4, :]],
        axis=-1)                                             # (TH+4, W+2, 3*Cp)
    acc1 = lax.dot_general(full1[0:TH + 2], w1_ref[0], dims,
                           preferred_element_type=f32)
    acc1 += lax.dot_general(full1[1:TH + 3], w1_ref[1], dims,
                            preferred_element_type=f32)
    acc1 += lax.dot_general(full1[2:TH + 4], w1_ref[2], dims,
                            preferred_element_type=f32)

    # BN1 (folded) + ReLU in f32.
    h1 = jnp.maximum(acc1 * s1_ref[0] + b1_ref[0], 0.0)      # (TH+2, W+2, Cp)

    # Zero the 1-wide ring that corresponds to conv2's zero padding (image
    # border rows/cols), then cast to bf16 for the second MXU pass.
    row = lax.broadcasted_iota(jnp.int32, (TH + 2, W + 2, 1), 0)
    col = lax.broadcasted_iota(jnp.int32, (TH + 2, W + 2, 1), 1)
    grow = t * TH - 1 + row                                  # global out1 row
    valid = (grow >= 0) & (grow < H) & (col >= 1) & (col <= W)
    h1 = jnp.where(valid, h1, 0.0).astype(jnp.bfloat16)

    # ---------------- conv2 over the (TH, W) output tile ----------------------
    full2 = jnp.concatenate(
        [h1[:, 0:W, :], h1[:, 1:W + 1, :], h1[:, 2:W + 2, :]],
        axis=-1)                                             # (TH+2, W, 3*Cp)
    acc2 = lax.dot_general(full2[0:TH], w2_ref[0], dims,
                           preferred_element_type=f32)
    acc2 += lax.dot_general(full2[1:TH + 1], w2_ref[1], dims,
                            preferred_element_type=f32)
    acc2 += lax.dot_general(full2[2:TH + 2], w2_ref[2], dims,
                            preferred_element_type=f32)

    # BN2 (folded) + residual add + ReLU.
    residual = xt[2:2 + TH, 2:2 + W, :].astype(f32)
    out_ref[...] = jnp.maximum(acc2 * s2_ref[0] + b2_ref[0] + residual,
                               0.0).astype(out_ref.dtype)


def basic_block_pallas(x_nchw, params, *, row_tile=8):
    """Fused BasicBlock forward.  x_nchw: (N, C, H, W) float32."""
    # TODO(synk): stride>1 / downsample branch not implemented (module defaults).
    w1, g1, be1, rm1, rv1, w2, g2, be2, rm2, rv2 = params
    eps = 1e-5

    N, C, H, W = x_nchw.shape
    Cp = max(128, -(-C // 128) * 128)        # lane-dense channel padding

    # Largest row-tile that divides H (keeps output blocks non-overlapping).
    TH = min(row_tile, H)
    while H % TH:
        TH -= 1
    nt = H // TH

    # NCHW -> NHWC, pad channels to Cp, pad spatially by 2 (halo for two fused
    # 3x3 convs), cast activations to bf16 for the MXU.  No overlapping-tile
    # duplication: halos are sliced in-kernel from the resident image.
    x = jnp.transpose(x_nchw, (0, 2, 3, 1))
    x = jnp.pad(x, ((0, 0), (2, 2), (2, 2), (0, Cp - C))).astype(jnp.bfloat16)
    # -> (N, H+4, W+4, Cp)

    # Conv weights: OIHW -> HWIO, pad channels, fold dx into the K dimension.
    def prep_w(w):
        wt = jnp.transpose(w, (2, 3, 1, 0))                        # (3, 3, I, O)
        wt = jnp.pad(wt, ((0, 0), (0, 0),
                          (0, Cp - wt.shape[2]), (0, Cp - wt.shape[3])))
        return wt.reshape(3, 3 * Cp, Cp).astype(jnp.bfloat16)      # rows=dx*Cp+ci

    w1p, w2p = prep_w(w1), prep_w(w2)

    # Fold BN running stats into per-channel scale / bias (inference form).
    def fold_bn(g, b, rm, rv):
        s = g / jnp.sqrt(rv + eps)
        bias = b - rm * s
        s = jnp.pad(s, (0, Cp - C)).reshape(1, Cp).astype(jnp.float32)
        bias = jnp.pad(bias, (0, Cp - C)).reshape(1, Cp).astype(jnp.float32)
        return s, bias

    s1, b1 = fold_bn(g1, be1, rm1, rv1)
    s2, b2 = fold_bn(g2, be2, rm2, rv2)

    const3 = lambda n, t: (0, 0, 0)
    const2 = lambda n, t: (0, 0)
    kernel = functools.partial(_basic_block_kernel, TH=TH, W=W, H=H)

    out = pl.pallas_call(
        kernel,
        out_shape=jax.ShapeDtypeStruct((N, H, W, Cp), jnp.float32),
        grid=(N, nt),
        in_specs=[
            # Full padded image per batch; constant block index along the
            # row-tile axis -> DMA'd once per batch element, resident in VMEM.
            pl.BlockSpec((None, H + 4, W + 4, Cp), lambda n, t: (n, 0, 0, 0)),
            pl.BlockSpec((3, 3 * Cp, Cp), const3),        # conv1 W (resident)
            pl.BlockSpec((1, Cp), const2),                # bn1 scale
            pl.BlockSpec((1, Cp), const2),                # bn1 bias
            pl.BlockSpec((3, 3 * Cp, Cp), const3),        # conv2 W (resident)
            pl.BlockSpec((1, Cp), const2),                # bn2 scale
            pl.BlockSpec((1, Cp), const2),                # bn2 bias
        ],
        out_specs=pl.BlockSpec((None, TH, W, Cp), lambda n, t: (n, t, 0, 0)),
        compiler_params=pltpu.CompilerParams(
            dimension_semantics=("parallel", "arbitrary"),
            vmem_limit_bytes=32 * 1024 * 1024),
    )(x, w1p, s1, b1, w2p, s2, b2)

    return jnp.transpose(out[..., :C], (0, 3, 1, 2))      # NHWC -> NCHW


# ---------------------------------------------------------------------------
# Pure-JAX reference (mirrors the PyTorch forward). quantize_bf16=True applies
# the same bf16 rounding of matmul inputs as the kernel (f32 accumulation).
# ---------------------------------------------------------------------------
def _basic_block_ref(x_nchw, params, *, quantize_bf16=False):
    w1, g1, be1, rm1, rv1, w2, g2, be2, rm2, rv2 = params
    eps = 1e-5

    def q(a):
        return a.astype(jnp.bfloat16).astype(jnp.float32) if quantize_bf16 else a

    def conv3x3(x, w_oihw):
        return lax.conv_general_dilated(
            q(x), q(w_oihw), window_strides=(1, 1), padding=((1, 1), (1, 1)),
            dimension_numbers=('NCHW', 'OIHW', 'NCHW'),
            precision=lax.Precision.HIGHEST)

    def bn(x, g, b, rm, rv):
        g, b, rm, rv = (v.reshape(1, -1, 1, 1) for v in (g, b, rm, rv))
        return (x - rm) / jnp.sqrt(rv + eps) * g + b

    out = jax.nn.relu(bn(conv3x3(x_nchw, w1), g1, be1, rm1, rv1))
    out = bn(conv3x3(out, w2), g2, be2, rm2, rv2)
    return jax.nn.relu(out + q(x_nchw))


if __name__ == "__main__":
    # Small shapes consistent with BasicBlock(inplanes=4, planes=4): NCHW.
    N, C, H, W = 2, 4, 16, 16
    key = jax.random.PRNGKey(0)
    ks = jax.random.split(key, 11)

    x = jax.random.normal(ks[0], (N, C, H, W), jnp.float32)

    w1 = jax.random.normal(ks[1], (C, C, 3, 3), jnp.float32) * 0.1
    w2 = jax.random.normal(ks[2], (C, C, 3, 3), jnp.float32) * 0.1
    g1 = 1.0 + 0.1 * jax.random.normal(ks[3], (C,), jnp.float32)
    be1 = 0.1 * jax.random.normal(ks[4], (C,), jnp.float32)
    rm1 = 0.1 * jax.random.normal(ks[5], (C,), jnp.float32)
    rv1 = 1.0 + 0.1 * jax.random.uniform(ks[6], (C,), jnp.float32)
    g2 = 1.0 + 0.1 * jax.random.normal(ks[7], (C,), jnp.float32)
    be2 = 0.1 * jax.random.normal(ks[8], (C,), jnp.float32)
    rm2 = 0.1 * jax.random.normal(ks[9], (C,), jnp.float32)
    rv2 = 1.0 + 0.1 * jax.random.uniform(ks[10], (C,), jnp.float32)

    params = (w1, g1, be1, rm1, rv1, w2, g2, be2, rm2, rv2)

    out = jax.block_until_ready(basic_block_pallas(x, params))
    assert out.shape == (N, C, H, W)

    # Tight check vs a reference using the same bf16 MXU-input quantization
    # (isolates kernel-logic errors from the intended mixed precision).
    ref_q = jax.block_until_ready(_basic_block_ref(x, params, quantize_bf16=True))
    err_q = float(jnp.max(jnp.abs(out - ref_q)))
    assert jnp.allclose(out, ref_q, atol=5e-3, rtol=5e-3), f"matched-ref max err {err_q}"

    # Loose sanity check vs the pure-f32 PyTorch-mirroring reference (bf16 MXU
    # inputs loosen the tolerance).
    ref_f32 = jax.block_until_ready(_basic_block_ref(x, params))
    err_f = float(jnp.max(jnp.abs(out - ref_f32)))
    assert jnp.allclose(out, ref_f32, atol=1e-1, rtol=1e-1), f"f32-ref max err {err_f}"

    print("KERNEL_OK")
</pallas_src>

<mosaic_0001>
module attributes {stable_mosaic.version = 11 : i64} {
  func.func @_basic_block_kernel(%arg0: i32, %arg1: i32, %arg2: memref<1x20x20x128xbf16, #tpu.memory_space<vmem>>, %arg3: memref<3x384x128xbf16, #tpu.memory_space<vmem>>, %arg4: memref<1x128xf32, #tpu.memory_space<vmem>>, %arg5: memref<1x128xf32, #tpu.memory_space<vmem>>, %arg6: memref<3x384x128xbf16, #tpu.memory_space<vmem>>, %arg7: memref<1x128xf32, #tpu.memory_space<vmem>>, %arg8: memref<1x128xf32, #tpu.memory_space<vmem>>, %arg9: memref<1x8x16x128xf32, #tpu.memory_space<vmem>>) attributes {dimension_semantics = [#tpu.dimension_semantics<parallel>, #tpu.dimension_semantics<arbitrary>], iteration_bounds = array<i64: 2, 2>, scalar_prefetch = 0 : i64, scratch_operands = 0 : i64, tpu.core_type = #tpu.core_type<tc>, window_params = [{transform_indices = @transform_0, window_bounds = array<i64: 1, 20, 20, 128>}, {pipeline_mode = #tpu.pipeline_mode<synchronous>, transform_indices = @transform_1, window_bounds = array<i64: 3, 384, 128>}, {pipeline_mode = #tpu.pipeline_mode<synchronous>, transform_indices = @transform_2, window_bounds = array<i64: 1, 128>}, {pipeline_mode = #tpu.pipeline_mode<synchronous>, transform_indices = @transform_3, window_bounds = array<i64: 1, 128>}, {pipeline_mode = #tpu.pipeline_mode<synchronous>, transform_indices = @transform_4, window_bounds = array<i64: 3, 384, 128>}, {pipeline_mode = #tpu.pipeline_mode<synchronous>, transform_indices = @transform_5, window_bounds = array<i64: 1, 128>}, {pipeline_mode = #tpu.pipeline_mode<synchronous>, transform_indices = @transform_6, window_bounds = array<i64: 1, 128>}, {transform_indices = @transform_7, window_bounds = array<i64: 1, 8, 16, 128>}]} {
    %c8_i32 = arith.constant 8 : i32
    %0 = arith.muli %arg1, %c8_i32 : i32
    %1 = tpu.assume_multiple %0, 8 : i32
    %c0 = arith.constant 0 : index
    %2 = arith.index_cast %1 : i32 to index
    %c0_0 = arith.constant 0 : index
    %c0_1 = arith.constant 0 : index
    %3 = vector.load %arg2[%c0, %2, %c0_0, %c0_1] : memref<1x20x20x128xbf16, #tpu.memory_space<vmem>>, vector<1x12x20x128xbf16>
    %4 = vector.shape_cast %3 : vector<1x12x20x128xbf16> to vector<12x20x128xbf16>
    %5 = vector.extract_strided_slice %4 {offsets = [0, 0, 0], sizes = [12, 18, 128], strides = [1, 1, 1]} : vector<12x20x128xbf16> to vector<12x18x128xbf16>
    %6 = vector.extract_strided_slice %4 {offsets = [0, 1, 0], sizes = [12, 18, 128], strides = [1, 1, 1]} : vector<12x20x128xbf16> to vector<12x18x128xbf16>
    %7 = vector.extract_strided_slice %4 {offsets = [0, 2, 0], sizes = [12, 18, 128], strides = [1, 1, 1]} : vector<12x20x128xbf16> to vector<12x18x128xbf16>
    %8 = tpu.concatenate %5, %6, %7 in 2 : vector<12x18x128xbf16>, vector<12x18x128xbf16>, vector<12x18x128xbf16> -> vector<12x18x384xbf16>
    %9 = vector.extract_strided_slice %8 {offsets = [0, 0, 0], sizes = [10, 18, 384], strides = [1, 1, 1]} : vector<12x18x384xbf16> to vector<10x18x384xbf16>
    %c0_2 = arith.constant 0 : index
    %c0_3 = arith.constant 0 : index
    %c0_4 = arith.constant 0 : index
    %10 = vector.load %arg3[%c0_2, %c0_3, %c0_4] : memref<3x384x128xbf16, #tpu.memory_space<vmem>>, vector<1x384x128xbf16>
    %11 = vector.shape_cast %10 : vector<1x384x128xbf16> to vector<384x128xbf16>
    %cst = arith.constant dense<0.000000e+00> : vector<10x18x128xf32>
    %12 = tpu.matmul %9, %11, %cst {dimension_numbers = #tpu.dot_dimension_numbers<[2], [0], [0, 1], [1], [0, 0, 0, 1, 1, 1], [], []>} : vector<10x18x384xbf16>, vector<384x128xbf16>, vector<10x18x128xf32> -> vector<10x18x128xf32>
    %13 = vector.extract_strided_slice %8 {offsets = [1, 0, 0], sizes = [10, 18, 384], strides = [1, 1, 1]} : vector<12x18x384xbf16> to vector<10x18x384xbf16>
    %c1 = arith.constant 1 : index
    %c0_5 = arith.constant 0 : index
    %c0_6 = arith.constant 0 : index
    %14 = vector.load %arg3[%c1, %c0_5, %c0_6] : memref<3x384x128xbf16, #tpu.memory_space<vmem>>, vector<1x384x128xbf16>
    %15 = vector.shape_cast %14 : vector<1x384x128xbf16> to vector<384x128xbf16>
    %cst_7 = arith.constant dense<0.000000e+00> : vector<10x18x128xf32>
    %16 = tpu.matmul %13, %15, %cst_7 {dimension_numbers = #tpu.dot_dimension_numbers<[2], [0], [0, 1], [1], [0, 0, 0, 1, 1, 1], [], []>} : vector<10x18x384xbf16>, vector<384x128xbf16>, vector<10x18x128xf32> -> vector<10x18x128xf32>
    %17 = arith.addf %12, %16 : vector<10x18x128xf32>
    %18 = vector.extract_strided_slice %8 {offsets = [2, 0, 0], sizes = [10, 18, 384], strides = [1, 1, 1]} : vector<12x18x384xbf16> to vector<10x18x384xbf16>
    %c2 = arith.constant 2 : index
    %c0_8 = arith.constant 0 : index
    %c0_9 = arith.constant 0 : index
    %19 = vector.load %arg3[%c2, %c0_8, %c0_9] : memref<3x384x128xbf16, #tpu.memory_space<vmem>>, vector<1x384x128xbf16>
    %20 = vector.shape_cast %19 : vector<1x384x128xbf16> to vector<384x128xbf16>
    %cst_10 = arith.constant dense<0.000000e+00> : vector<10x18x128xf32>
    %21 = tpu.matmul %18, %20, %cst_10 {dimension_numbers = #tpu.dot_dimension_numbers<[2], [0], [0, 1], [1], [0, 0, 0, 1, 1, 1], [], []>} : vector<10x18x384xbf16>, vector<384x128xbf16>, vector<10x18x128xf32> -> vector<10x18x128xf32>
    %22 = arith.addf %17, %21 : vector<10x18x128xf32>
    %c0_11 = arith.constant 0 : index
    %c0_12 = arith.constant 0 : index
    %23 = vector.load %arg4[%c0_11, %c0_12] : memref<1x128xf32, #tpu.memory_space<vmem>>, vector<1x128xf32>
    %24 = vector.shape_cast %23 : vector<1x128xf32> to vector<128xf32>
    %25 = vector.shape_cast %24 : vector<128xf32> to vector<1x1x128xf32>
    %26 = vector.broadcast %25 : vector<1x1x128xf32> to vector<10x18x128xf32>
    %27 = arith.mulf %22, %26 : vector<10x18x128xf32>
    %c0_13 = arith.constant 0 : index
    %c0_14 = arith.constant 0 : index
    %28 = vector.load %arg5[%c0_13, %c0_14] : memref<1x128xf32, #tpu.memory_space<vmem>>, vector<1x128xf32>
    %29 = vector.shape_cast %28 : vector<1x128xf32> to vector<128xf32>
    %30 = vector.shape_cast %29 : vector<128xf32> to vector<1x1x128xf32>
    %31 = vector.broadcast %30 : vector<1x1x128xf32> to vector<10x18x128xf32>
    %32 = arith.addf %27, %31 : vector<10x18x128xf32>
    %cst_15 = arith.constant 0.000000e+00 : f32
    %33 = vector.broadcast %cst_15 : f32 to vector<10x18x128xf32>
    %34 = arith.maximumf %32, %33 : vector<10x18x128xf32>
    %35 = tpu.iota {dimensions = array<i32: 0>} : vector<10x18x1xi32>
    %36 = tpu.iota {dimensions = array<i32: 1>} : vector<10x18x1xi32>
    %c8_i32_16 = arith.constant 8 : i32
    %37 = arith.muli %arg1, %c8_i32_16 : i32
    %c1_i32 = arith.constant 1 : i32
    %38 = arith.subi %37, %c1_i32 : i32
    %39 = vector.broadcast %38 : i32 to vector<10x18x1xi32>
    %40 = arith.addi %39, %35 : vector<10x18x1xi32>
    %c0_i32 = arith.constant 0 : i32
    %41 = vector.broadcast %c0_i32 : i32 to vector<10x18x1xi32>
    %42 = arith.cmpi sge, %40, %41 : vector<10x18x1xi32>
    %c16_i32 = arith.constant 16 : i32
    %43 = vector.broadcast %c16_i32 : i32 to vector<10x18x1xi32>
    %44 = arith.cmpi slt, %40, %43 : vector<10x18x1xi32>
    %45 = arith.andi %42, %44 : vector<10x18x1xi1>
    %c1_i32_17 = arith.constant 1 : i32
    %46 = vector.broadcast %c1_i32_17 : i32 to vector<10x18x1xi32>
    %47 = arith.cmpi sge, %36, %46 : vector<10x18x1xi32>
    %48 = arith.andi %45, %47 : vector<10x18x1xi1>
    %c16_i32_18 = arith.constant 16 : i32
    %49 = vector.broadcast %c16_i32_18 : i32 to vector<10x18x1xi32>
    %50 = arith.cmpi sle, %36, %49 : vector<10x18x1xi32>
    %51 = arith.andi %48, %50 : vector<10x18x1xi1>
    %cst_19 = arith.constant 0.000000e+00 : f32
    %52 = vector.shape_cast %51 : vector<10x18x1xi1> to vector<10x18x1xi1>
    %53 = vector.broadcast %52 : vector<10x18x1xi1> to vector<10x18x128xi1>
    %54 = vector.broadcast %cst_19 : f32 to vector<10x18x128xf32>
    %55 = arith.select %53, %34, %54 : vector<10x18x128xi1>, vector<10x18x128xf32>
    %56 = arith.truncf %55 : vector<10x18x128xf32> to vector<10x18x128xbf16>
    %57 = vector.extract_strided_slice %56 {offsets = [0, 0, 0], sizes = [10, 16, 128], strides = [1, 1, 1]} : vector<10x18x128xbf16> to vector<10x16x128xbf16>
    %58 = vector.extract_strided_slice %56 {offsets = [0, 1, 0], sizes = [10, 16, 128], strides = [1, 1, 1]} : vector<10x18x128xbf16> to vector<10x16x128xbf16>
    %59 = vector.extract_strided_slice %56 {offsets = [0, 2, 0], sizes = [10, 16, 128], strides = [1, 1, 1]} : vector<10x18x128xbf16> to vector<10x16x128xbf16>
    %60 = tpu.concatenate %57, %58, %59 in 2 : vector<10x16x128xbf16>, vector<10x16x128xbf16>, vector<10x16x128xbf16> -> vector<10x16x384xbf16>
    %61 = vector.extract_strided_slice %60 {offsets = [0, 0, 0], sizes = [8, 16, 384], strides = [1, 1, 1]} : vector<10x16x384xbf16> to vector<8x16x384xbf16>
    %c0_20 = arith.constant 0 : index
    %c0_21 = arith.constant 0 : index
    %c0_22 = arith.constant 0 : index
    %62 = vector.load %arg6[%c0_20, %c0_21, %c0_22] : memref<3x384x128xbf16, #tpu.memory_space<vmem>>, vector<1x384x128xbf16>
    %63 = vector.shape_cast %62 : vector<1x384x128xbf16> to vector<384x128xbf16>
    %cst_23 = arith.constant dense<0.000000e+00> : vector<8x16x128xf32>
    %64 = tpu.matmul %61, %63, %cst_23 {dimension_numbers = #tpu.dot_dimension_numbers<[2], [0], [0, 1], [1], [0, 0, 0, 1, 1, 1], [], []>} : vector<8x16x384xbf16>, vector<384x128xbf16>, vector<8x16x128xf32> -> vector<8x16x128xf32>
    %65 = vector.extract_strided_slice %60 {offsets = [1, 0, 0], sizes = [8, 16, 384], strides = [1, 1, 1]} : vector<10x16x384xbf16> to vector<8x16x384xbf16>
    %c1_24 = arith.constant 1 : index
    %c0_25 = arith.constant 0 : index
    %c0_26 = arith.constant 0 : index
    %66 = vector.load %arg6[%c1_24, %c0_25, %c0_26] : memref<3x384x128xbf16, #tpu.memory_space<vmem>>, vector<1x384x128xbf16>
    %67 = vector.shape_cast %66 : vector<1x384x128xbf16> to vector<384x128xbf16>
    %cst_27 = arith.constant dense<0.000000e+00> : vector<8x16x128xf32>
    %68 = tpu.matmul %65, %67, %cst_27 {dimension_numbers = #tpu.dot_dimension_numbers<[2], [0], [0, 1], [1], [0, 0, 0, 1, 1, 1], [], []>} : vector<8x16x384xbf16>, vector<384x128xbf16>, vector<8x16x128xf32> -> vector<8x16x128xf32>
    %69 = arith.addf %64, %68 : vector<8x16x128xf32>
    %70 = vector.extract_strided_slice %60 {offsets = [2, 0, 0], sizes = [8, 16, 384], strides = [1, 1, 1]} : vector<10x16x384xbf16> to vector<8x16x384xbf16>
    %c2_28 = arith.constant 2 : index
    %c0_29 = arith.constant 0 : index
    %c0_30 = arith.constant 0 : index
    %71 = vector.load %arg6[%c2_28, %c0_29, %c0_30] : memref<3x384x128xbf16, #tpu.memory_space<vmem>>, vector<1x384x128xbf16>
    %72 = vector.shape_cast %71 : vector<1x384x128xbf16> to vector<384x128xbf16>
    %cst_31 = arith.constant dense<0.000000e+00> : vector<8x16x128xf32>
    %73 = tpu.matmul %70, %72, %cst_31 {dimension_numbers = #tpu.dot_dimension_numbers<[2], [0], [0, 1], [1], [0, 0, 0, 1, 1, 1], [], []>} : vector<8x16x384xbf16>, vector<384x128xbf16>, vector<8x16x128xf32> -> vector<8x16x128xf32>
    %74 = arith.addf %69, %73 : vector<8x16x128xf32>
    %75 = vector.extract_strided_slice %4 {offsets = [2, 2, 0], sizes = [8, 16, 128], strides = [1, 1, 1]} : vector<12x20x128xbf16> to vector<8x16x128xbf16>
    %76 = arith.extf %75 : vector<8x16x128xbf16> to vector<8x16x128xf32>
    %c0_32 = arith.constant 0 : index
    %c0_33 = arith.constant 0 : index
    %77 = vector.load %arg7[%c0_32, %c0_33] : memref<1x128xf32, #tpu.memory_space<vmem>>, vector<1x128xf32>
    %78 = vector.shape_cast %77 : vector<1x128xf32> to vector<128xf32>
    %79 = vector.shape_cast %78 : vector<128xf32> to vector<1x1x128xf32>
    %80 = vector.broadcast %79 : vector<1x1x128xf32> to vector<8x16x128xf32>
    %81 = arith.mulf %74, %80 : vector<8x16x128xf32>
    %c0_34 = arith.constant 0 : index
    %c0_35 = arith.constant 0 : index
    %82 = vector.load %arg8[%c0_34, %c0_35] : memref<1x128xf32, #tpu.memory_space<vmem>>, vector<1x128xf32>
    %83 = vector.shape_cast %82 : vector<1x128xf32> to vector<128xf32>
    %84 = vector.shape_cast %83 : vector<128xf32> to vector<1x1x128xf32>
    %85 = vector.broadcast %84 : vector<1x1x128xf32> to vector<8x16x128xf32>
    %86 = arith.addf %81, %85 : vector<8x16x128xf32>
    %87 = arith.addf %86, %76 : vector<8x16x128xf32>
    %cst_36 = arith.constant 0.000000e+00 : f32
    %88 = vector.broadcast %cst_36 : f32 to vector<8x16x128xf32>
    %89 = arith.maximumf %87, %88 : vector<8x16x128xf32>
    %c0_37 = arith.constant 0 : index
    %c0_38 = arith.constant 0 : index
    %c0_39 = arith.constant 0 : index
    %c0_40 = arith.constant 0 : index
    %90 = vector.load %arg9[%c0_37, %c0_38, %c0_39, %c0_40] : memref<1x8x16x128xf32, #tpu.memory_space<vmem>>, vector<1x8x16x128xf32>
    %91 = vector.shape_cast %90 : vector<1x8x16x128xf32> to vector<8x16x128xf32>
    %92 = vector.shape_cast %89 : vector<8x16x128xf32> to vector<1x8x16x128xf32>
    tpu.vector_store %arg9[%c0_37, %c0_38, %c0_39, %c0_40], %92 {strides = array<i32>} : memref<1x8x16x128xf32, #tpu.memory_space<vmem>>, vector<1x8x16x128xf32>,
    return
  }
  func.func @transform_0(%arg0: i32, %arg1: i32) -> (i32, i32, i32, i32) {
    %c0_i32 = arith.constant 0 : i32
    %c0_i32_0 = arith.constant 0 : i32
    %c0_i32_1 = arith.constant 0 : i32
    %c0_i32_2 = arith.constant 0 : i32
    return %arg0, %c0_i32, %c0_i32_0, %c0_i32_1 : i32, i32, i32, i32
  }
  func.func @transform_1(%arg0: i32, %arg1: i32) -> (i32, i32, i32) {
    %c0_i32 = arith.constant 0 : i32
    %c0_i32_0 = arith.constant 0 : i32
    %c0_i32_1 = arith.constant 0 : i32
    %c0_i32_2 = arith.constant 0 : i32
    return %c0_i32, %c0_i32_0, %c0_i32_1 : i32, i32, i32
  }
  func.func @transform_2(%arg0: i32, %arg1: i32) -> (i32, i32) {
    %c0_i32 = arith.constant 0 : i32
    %c0_i32_0 = arith.constant 0 : i32
    %c0_i32_1 = arith.constant 0 : i32
    return %c0_i32, %c0_i32_0 : i32, i32
  }
  func.func @transform_3(%arg0: i32, %arg1: i32) -> (i32, i32) {
    %c0_i32 = arith.constant 0 : i32
    %c0_i32_0 = arith.constant 0 : i32
    %c0_i32_1 = arith.constant 0 : i32
    return %c0_i32, %c0_i32_0 : i32, i32
  }
  func.func @transform_4(%arg0: i32, %arg1: i32) -> (i32, i32, i32) {
    %c0_i32 = arith.constant 0 : i32
    %c0_i32_0 = arith.constant 0 : i32
    %c0_i32_1 = arith.constant 0 : i32
    %c0_i32_2 = arith.constant 0 : i32
    return %c0_i32, %c0_i32_0, %c0_i32_1 : i32, i32, i32
  }
  func.func @transform_5(%arg0: i32, %arg1: i32) -> (i32, i32) {
    %c0_i32 = arith.constant 0 : i32
    %c0_i32_0 = arith.constant 0 : i32
    %c0_i32_1 = arith.constant 0 : i32
    return %c0_i32, %c0_i32_0 : i32, i32
  }
  func.func @transform_6(%arg0: i32, %arg1: i32) -> (i32, i32) {
    %c0_i32 = arith.constant 0 : i32
    %c0_i32_0 = arith.constant 0 : i32
    %c0_i32_1 = arith.constant 0 : i32
    return %c0_i32, %c0_i32_0 : i32, i32
  }
  func.func @transform_7(%arg0: i32, %arg1: i32) -> (i32, i32, i32, i32) {
    %c0_i32 = arith.constant 0 : i32
    %c0_i32_0 = arith.constant 0 : i32
    %c0_i32_1 = arith.constant 0 : i32
    return %arg0, %arg1, %c0_i32, %c0_i32_0 : i32, i32, i32, i32
  }
}

</mosaic_0001>

<bundles_post_ra>
// kernel: tpu_custom_call.1
= control target key start
LH: loop header
LB: loop body
LE: loop exit
PB: predicated region body
PF: predicated region fallthrough
CT: control target
= control target key end

     0   :  { %12 = vsyncpa [#allocation3], 0  ;;  %s14952_s0 = inlined_call_operand.vmem [shape: bf16[2,20,20,128], index: 0, kind: input, shape index: {}]   ;;  %s14953_s1 = inlined_call_operand.vmem [shape: bf16[3,384,128], index: 1, kind: input, shape index: {}]   ;;  %s14954_s2 = inlined_call_operand.vmem [shape: f32[1,128], index: 2, kind: input, shape index: {}]   ;;  %s14955_s3 = inlined_call_operand.vmem [shape: f32[1,128], index: 3, kind: input, shape index: {}]   ;;  %s14956_s4 = inlined_call_operand.hbm [shape: bf16[3,384,128], index: 4, kind: input, shape index: {}]   ;;  %s14957_s5 = inlined_call_operand.vmem [shape: f32[1,128], index: 5, kind: input, shape index: {}]   ;;  %s14958_s6 = inlined_call_operand.vmem [shape: f32[1,128], index: 6, kind: input, shape index: {}]   ;;  %s14959_s7 = inlined_call_operand.hbm [shape: f32[2,16,16,128], index: 7, kind: output, shape index: {}]  }
   0x1   :  { %13 = vsyncpa [#allocation4], 0 }
   0x2   :  { %15 = vsyncpa [#allocation4 + $0x1], 0  ;;  %s10831_s24 = smov 0   ;;  %s10833_s25 = smov 0  }
   0x3   :  { %s10835_s26 = smov 0   ;;  %s10837_s27 = smov 0  }
   0x4   :  { %s10839_s28 = smov 0   ;;  %s10841_s29 = smov 0  }
   0x5   :  { %s10843_s30 = smov 0   ;;  %s10845_s8 = smov 0  }
   0x6 LB: > { %s9018_s9 = sadd.s32 4294967295, %s10781_s8   ;;  %s9019_s10 = sadd.s32 4294967294, %s10781_s8   ;;  %s10781_s8 = sphi %s10845_s8, %s21_s8   ;;  %s10777_s30 = sphi %s10843_s30, %s15523_s30   ;;  %s10773_s29 = sphi %s10841_s29, %s15522_s29   ;;  %s10769_s28 = sphi %s10839_s28, %s15521_s28   ;;  %s10765_s27 = sphi %s10837_s27, %s15520_s27   ;;  %s10761_s26 = sphi %s10835_s26, %s15519_s26   ;;  %s10757_s25 = sphi %s10833_s25, %s15518_s25   ;;  %s10753_s24 = sphi %s10831_s24, %s15517_s24  }
   0x7   : > { %s30_s11 = sadd.s32 1, %s10773_s29  ;;  %s33_s12 = sadd.s32 1, %s10777_s30 }
   0x8   : > { %p31_p0 = scmp.ge.s32.totalorder %s30_s11, 2  ;;  %s194_s13 = sadd.s32 1, %s10761_s26 }
   0x9   : > { %p204_p1 = scmp.ne.s32.totalorder %s10761_s26, %s10757_s25  ;;  %p205_p2 = scmp.eq.s32.totalorder %s9018_s9, 3 }
   0xa   : > { %s15525_s11 = smov (%p31_p0, %s30_s11), 0  ;;  %s15527_s12 = smov (!%p31_p0, %s33_s12), %s10777_s30 }
   0xb   : > { %15110 = sst [smem:[#allocation8_spill]] %s15525_s11  ;;  %s190_s14 = ssub.s32 %s10773_s29, %s15525_s11 }
   0xc   : > { %p10883_p3 = por %p205_p2, %p204_p1  ;;  %p35_p4 = scmp.ge.s32.totalorder %s15527_s12, 2 }
   0xd   : > { %p210_p5 = scmp.ne.s32.totalorder %s10757_s25, %s10753_s24  ;;  %p211_p6 = scmp.eq.s32.totalorder %s9019_s10, 3 }
   0xe   : > { %s15111_s15 = scalar_select %p10883_p3, 1, 0 }
   0xf   : > { %p9020_p7 = scmp.ge.s32.totalorder %s10781_s8, 1  ;;  %s15529_s12 = smov (%p35_p4, %s15527_s12), 0 }
  0x10   : > { %15112 = sst [smem:[#allocation9_spill]] %s15529_s12  ;;  %p10892_p8 = por %p211_p6, %p210_p5 }
  0x11   : > { %p218_p9 = scmp.lt.s32.totalorder %s10781_s8, 5  ;;  %s189_s17 = ssub.s32 %s10777_s30, %s15529_s12 }
  0x12   : > { %s15113_s16 = scalar_select %p10892_p8, 1, 0 }
  0x13   : > { %s191_s18 = sor.u32 %s190_s14, %s189_s17  ;;  %p10899_p10 = pnand %p9020_p7, %p218_p9 }
  0x14   : > { %p192_p11 = scmp.eq.s32.totalorder %s191_s18, 0  ;;  %p10903_p12 = scmp.eq.s32.totalorder %s9018_s9, 0 }
  0x15   : > { %s15114_s19 = scalar_select %p10899_p10, 1, 0 }
  0x16   : > { %s15115_s20 = scalar_select %p10903_p12, 1, 0 }
  0x17   : > { %p10379_p13 = pneg %p10899_p10  ;;  %s10783_s22 = smov [#allocation2]  }
  0x18   : > { %s10910_s21 = scalar_select %p192_p11, %s10761_s26, %s194_s13  }
  0x19   : > { %s239_s23 = sshll.u32 %s10783_s22, 4  ;;  %p10914_p0 = pnand %p10903_p12, %p10379_p13  ;;  %s240_s23 = int_to_ptr.vmem [resolvable:$true] %s239_s23 }
  0x1a   : > { %s10655_s9 = scalar_lea.hbm %s14956_s4, 9216 }
  0x1b   : > { %p10656_p1 = scmp.ne.s32.totalorder %s14956_s4, %s10655_s9  ;;  %p10657_p2 = pneg %p10914_p0 }
  0x1c   : > { %p10662_p6 = scmp.lt.u32.totalorder %s10655_s9, %s14956_s4 }
  0x1d   : > { %p10658_p4 = pnand %p10657_p2, %p10656_p1 }
  0x1f   : > { %p10659_p5 = pneg %p10658_p4 }
  0x21   : > { %p10664_p7 = pnand %p10662_p6, %p10659_p5 }
  0x23   : > { %10667 = shalt.err (!%p10664_p7)
}
  0x24   : > { %s10668_s11 = scalar_lea.vmem %s240_s23, 9216  ;;  %p10676_p8 = scmp.lt.s32.totalorder %s240_s23, %s240_s23 }
  0x25   : > { %p10669_p9 = scmp.ne.s32.totalorder %s240_s23, %s10668_s11  ;;  %p10677_p3 = scmp.lt.s32.totalorder %s10668_s11, %s10668_s11 }
  0x27   : > { %p10671_p11 = pnand %p10669_p9, %p10657_p2  ;;  %p10678_p12 = por %p10677_p3, %p10676_p8 }
  0x29   : > { %p10672_p13 = pneg %p10671_p11 }
  0x2b   : > { %p10679_p10 = pnand %p10678_p12, %p10672_p13 }
  0x2d   : > { %10682 = shalt.err (!%p10679_p10)
}
  0x2e   : > { %s10784_s12 = smov 64   ;;  %s10785_s14 = smov 4  }
  0x2f   : > { %10382 = dma.hbm_to_vmem [thread:$0]  (!%p10914_p0), %s14956_s4, 9216, %s240_s23, [#allocation3], %s10784_s12, %s10784_s12, %s10785_s14  }
  0x30   : > { %p15117_p1 = scmp.ne.s32.totalorder %s15114_s19, 0 }
  0x32   : > { %269 = sbr.rel (%p15117_p1) target bundleno = 1168 (0x490), region = 48 }
  0x39   : > { %p15118_p4 = scmp.ne.s32.totalorder %s15115_s20, 0 }
  0x3b   : > { %10744 = dma.done.wait (%p15118_p4), [#allocation3], 9216  }
  0x3c   : > { %10746 = vsyncadd (%p15118_p4), [#allocation3], 4294958080  ;;  %p301_p3 = scmp.lt.s32.totalorder %s10769_s28, 1  ;;  %v10461_v0 = vld [vmem:[%s14953_s1 + $0x100] sm:$0xff]   ;;  %v10463_v2 = vld [vmem:[%s14953_s1 + $0x108] sm:$0xff]   ;;  %s9424_s19 = smul.u32 96, %s10765_s27  ;;  %v765_v9 = vlaneseq }
  0x3d   : > { %v10462_v1 = vld [vmem:[%s14953_s1 + $0xc0] sm:$0xff]   ;;  %9426 = vmatprep.subr.bf16.mxu0 %v10461_v0  ;;  %10206 = vmatprep.subr.bf16.mxu1 %v10461_v0  ;;  %v10464_v3 = vld [vmem:[%s14953_s1 + $0xc8] sm:$0xff]   ;;  %v10465_v4 = vld [vmem:[%s14953_s1 + $0x110] sm:$0xff]   ;;  %v10786_v7 = vmov 1966171168   ;;  %vm15101_vm1 = vcmask 1046528  }
  0x3e   : > { %s302_s20 = scalar_select %p301_p3, %s10769_s28, 1  ;;  %9427 = vmatpush3.bf16.msra.mxu0 %v10462_v1  ;;  %10214 = vmatpush3.bf16.msra.mxu1 %v10462_v1  ;;  %v10466_v5 = vld [vmem:[%s14953_s1 + $0xd0] sm:$0xff]   ;;  %v10467_v6 = vld [vmem:[%s14953_s1 + $0x118] sm:$0xff]   ;;  %v763_v8 = vunpack.c.l.s4 %v10786_v7  ;;  %v10469_v11 = vld [vmem:[%s14953_s1 + $0x120] sm:$0xff]   ;;  %vm15100_vm0 = vsmask.f32 7424 }
  0x3f   : > { %9428 = vmatprep.subr.bf16.mxu0 %v10463_v2  ;;  %10207 = vmatprep.subr.bf16.mxu1 %v10463_v2  ;;  %v10468_v10 = vld [vmem:[%s14953_s1 + $0xd8] sm:$0xff]   ;;  %v10470_v12 = vld [vmem:[%s14953_s1 + $0xe0] sm:$0xff]   ;;  %v10978_v14 = vshrl.u32 %v765_v9, 7  ;;  %v10471_v15 = vld [vmem:[%s14953_s1 + $0x128] sm:$0xff]   ;;  %s9027_s10 = sshll.u32 %s10765_s27, 3  ;;  %s298_s23 = sand.u32 1, %s10757_s25  }
  0x40   : > { %s10372_s18 = smul.u32 240, %s302_s20  ;;  %v764_v13 = vunpack.c.0.s8 %v763_v8  ;;  %v10472_v19 = vld [vmem:[%s14953_s1 + $0xe8] sm:$0xff]   ;;  %v10473_v35 = vld [vmem:[%s14953_s1 + $0x130] sm:$0xff]   ;;  %v10475_v53 = vld [vmem:[%s14953_s1 + $0x138] sm:$0xff]   ;;  %s9270_s13 = sadd.s32 4294967295, %s9027_s10 }
  0x41   : > { %15119 = vst [vmem:[#allocation10_spill] sm:$0xff] %v10978_v14  ;;  %v10474_v48 = vld [vmem:[%s14953_s1 + $0xf0] sm:$0xff]   ;;  %v10476_v2 = vld [vmem:[%s14953_s1 + $0xf8] sm:$0xff]   ;;  %s14800_s20 = sshll.u32 %s298_s23, 7  ;;  %s9420_s17 = sshll.u32 %s10769_s28, 5 }
  0x42   : > { %9429 = vmatpush3.bf16.msra.mxu0 %v10464_v3  ;;  %10215 = vmatpush3.bf16.msra.mxu1 %v10464_v3  ;;  %s305_s12 = scalar_lea.vmem %s14952_s0, %s10372_s18  ;;  %v11008_v25 = vsub.s32 %v764_v13, %v10978_v14  ;;  %s14818_s14 = scalar_lea.vmem [#allocation5], %s14800_s20 }
  0x43   : > { %9430 = vmatprep.subr.bf16.mxu0 %v10465_v4  ;;  %10208 = vmatprep.subr.bf16.mxu1 %v10465_v4  ;;  %s10973_s9 = scalar_lea.vmem %s305_s12, %s9424_s19  ;;  %s8928_s11 = sshll.u32 %s14818_s14, 4  ;;  %s14893_s11 = int_to_ptr.vmem [resolvable:$true] %s8928_s11 }
  0x44   : > { %v10984_v16 = vld [vmem:[%s10973_s9 + $0xc] sm:$0xf]  ;;  %v316_v17 = vld [vmem:[%s10973_s9 + $0x10] sm:$0xf]  ;;  %v10988_v18 = vld [vmem:[%s10973_s9 + $0x14] sm:$0x3] }
  0x45   : > { %v10994_v20 = vcombine.low %v10984_v16, %v316_v17  ;;  %v10998_v21 = vcombine.low %v10988_v18, %v10988_v18  ;;  %v11001_v22 = vld [vmem:[%s10973_s9 + $0x54] sm:$0xf]  ;;  %v334_v23 = vld [vmem:[%s10973_s9 + $0x58] sm:$0xf]  ;;  %v11005_v24 = vld [vmem:[%s10973_s9 + $0x5c] sm:$0x3] }
  0x46   : > { %9431 = vmatpush3.bf16.msra.mxu0 %v10466_v5  ;;  %10216 = vmatpush3.bf16.msra.mxu1 %v10466_v5  ;;  %v11011_v26 = vld [vmem:[%s10973_s9 + $0x60] sm:$0xf]  ;;  %v337_v27 = vld [vmem:[%s10973_s9 + $0x64] sm:$0xf]  ;;  %v11015_v28 = vld [vmem:[%s10973_s9 + $0x68] sm:$0x3]  ;;  %v11018_v29 = vcombine.low %v11001_v22, %v334_v23  ;;  %v11022_v30 = vcombine.low %v11005_v24, %v11005_v24 }
  0x47   : > { %9432 = vmatprep.subr.bf16.mxu0 %v10467_v6  ;;  %10209 = vmatprep.subr.bf16.mxu1 %v10467_v6  ;;  %v461_v31 = vshrl.u32 %v10994_v20, 16  ;;  %v463_v32 = vshll.u32 %v10994_v20, 16  ;;  %v468_v33 = vshll.u32 %v10998_v21, 16  ;;  %v629_v34 = vrot.slane %v10994_v20, 1  ;;  %s14900_s19 = scalar_lea.sflag [#allocation4], %s298_s23  ;;  %s10683_s22 = scalar_lea.vmem %s14893_s11, 2048 }
  0x48   : > { %v630_v36 = vrot.slane %v10998_v21, 1  ;;  %v11033_v37 = vcombine.low %v11011_v26, %v337_v27  ;;  %v11037_v38 = vcombine.low %v11015_v28, %v11015_v28  ;;  %v551_v39 = vshrl.u32 %v11018_v29, 16  ;;  %p10684_p8 = scmp.ne.s32.totalorder %s14893_s11, %s10683_s22  ;;  %p15513_p10 = scmp.ne.s32.totalorder %s15111_s15, 0 }
  0x49   : > { %v465_v40 = vrot.slane %v463_v32, 1  ;;  %v11040_v41 = vrot.slane %v468_v33, 1  ;;  %v553_v42 = vshll.u32 %v11018_v29, 16  ;;  %v558_v43 = vshll.u32 %v11022_v30, 16  ;;  %s10788_s12 = smov [#allocation5]  }
  0x4a   : > { %9433 = vmatpush3.bf16.msra.mxu0 %v10468_v10  ;;  %10217 = vmatpush3.bf16.msra.mxu1 %v10468_v10  ;;  %v631_v44 = vsel %vm15101_vm1, %v629_v34, %v630_v36  ;;  %v562_v45 = vshrl.u32 %v11022_v30, 16  ;;  %v566_v46 = vshrl.u32 %v11033_v37, 16  ;;  %v568_v47 = vshll.u32 %v11033_v37, 16  ;;  %p10685_p12 = pnand %p10684_p8, %p15513_p10  ;;  %s10687_s20 = sshll.u32 %s10788_s12, 4  ;;  %s10688_s20 = int_to_ptr.vmem [resolvable:$false] %s10687_s20 }
  0x4b   : > { %9434 = vmatprep.subr.bf16.mxu0 %v10469_v11  ;;  %10210 = vmatprep.subr.bf16.mxu1 %v10469_v11  ;;  %v466_v49 = vor.u32 %v465_v40, %v461_v31  ;;  %v761_v50 = vcombine.high %v631_v44, %v631_v44  ;;  %v782_v51 = vrot.slane %v631_v44, %v11008_v25  ;;  %v555_v52 = vrot.slane %v553_v42, 1  ;;  %v11080_v11 = vld [vmem:[%s14953_s1 + $0x140] sm:$0xff]   ;;  %p10690_p2 = scmp.lt.s32.totalorder %s14893_s11, %s10688_s20 }
  0x4c   : > { %v560_v54 = vrot.slane %v558_v43, 1  ;;  %v570_v55 = vrot.slane %v568_v47, 1  ;;  %v573_v56 = vshll.u32 %v11037_v38, 16  ;;  %v647_v57 = vrot.slane %v11018_v29, 1  ;;  %p10686_p0 = pneg %p10685_p12 }
  0x4d   : > { %v471_v58 = vsel %vm15100_vm0, %v466_v49, %v11040_v41  ;;  %v789_v59 = vrot.slane %v761_v50, %v11008_v25  ;;  %v556_v60 = vor.u32 %v555_v52, %v551_v39  ;;  %v648_v61 = vrot.slane %v11022_v30, 1 }
  0x4e   : > { %9435 = vmatpush3.bf16.msra.mxu0 %v10470_v12  ;;  %10218 = vmatpush3.bf16.msra.mxu1 %v10470_v12  ;;  %v9102_v62 = vcombine.low %v10984_v16, %v471_v58  ;;  %v760_v63 = vcombine.high %v10994_v20, %v471_v58  ;;  %v564_v0 = vor.u32 %v562_v45, %v560_v54  ;;  %v11069_v4 = vrot.slane %v573_v56, 1  ;;  %v10498_v12 = vld [vmem:[%s14953_s1 + $0x1c0] sm:$0xff]  }
  0x4f   : > { %9436 = vmatprep.subr.bf16.mxu0 %v10471_v15  ;;  %10211 = vmatprep.subr.bf16.mxu1 %v10471_v15  ;;  %v571_v1 = vor.u32 %v570_v55, %v566_v46  ;;  %v561_v3 = vsel %vm15100_vm0, %v556_v60, %v560_v54  ;;  %v649_v5 = vsel %vm15101_vm1, %v647_v57, %v648_v61  ;;  %v650_v6 = vrot.slane %v11033_v37, 1 }
  0x50   : > { %v768_v7 = vrot.slane %v9102_v62, %v11008_v25  ;;  %v775_v8 = vrot.slane %v760_v63, %v11008_v25  ;;  %v651_v9 = vrot.slane %v11037_v38, 1  ;;  %v9114_v10 = vcombine.low %v11001_v22, %v561_v3 }
  0x51   : > { %v11087_v13 = vsel %vm15100_vm0, %v571_v1, %v11069_v4  ;;  %v1300_v15 = vcombine.high %v11018_v29, %v561_v3  ;;  %v1301_v16 = vcombine.high %v649_v5, %v649_v5  ;;  %v1322_v17 = vrot.slane %v649_v5, %v11008_v25 }
  0x52   : > { %9437 = vmatpush3.bf16.msra.mxu0 %v10472_v19  ;;  %10219 = vmatpush3.bf16.msra.mxu1 %v10472_v19  ;;  %v790_v19 = vcombine.low %v768_v7, %v782_v51  ;;  %v791_v20 = vcombine.high %v768_v7, %v782_v51  ;;  %v792_v22 = vcombine.low %v775_v8, %v789_v59  ;;  %v472_v29 = vshrl.u32 %v10998_v21, 16 }
  0x53   : > { %9438 = vmatprep.subr.bf16.mxu0 %v10473_v35  ;;  %10212 = vmatprep.subr.bf16.mxu1 %v10473_v35  ;;  %v793_v23 = vcombine.high %v775_v8, %v789_v59  ;;  %v11094_v27 = vsel %vm15101_vm1, %v650_v6, %v651_v9  ;;  %v1308_v30 = vrot.slane %v9114_v10, %v11008_v25  ;;  %v319_v8 = vld [vmem:[%s10973_s9 + $0x1c] sm:$0xf] }
  0x54   : > { %v1315_v31 = vrot.slane %v1300_v15, %v11008_v25  ;;  %v11100_v32 = vrot.slane %v790_v19, %v11008_v25  ;;  %v11103_v33 = vrot.slane %v792_v22, %v11008_v25  ;;  %v11106_v34 = vrot.slane %v791_v20, %v11008_v25 }
  0x55   : > { %v11109_v35 = vrot.slane %v793_v23, %v11008_v25  ;;  %v1329_v39 = vrot.slane %v1301_v16, %v11008_v25  ;;  %v1330_v40 = vcombine.low %v1308_v30, %v1322_v17  ;;  %v1331_v42 = vcombine.high %v1308_v30, %v1322_v17  ;;  %v11169_v17 = vld [vmem:[%s10973_s9 + $0x20] sm:$0x3] }
  0x56   : > { %9439 = vmatpush3.bf16.msra.mxu0 %v10474_v48  ;;  %10220 = vmatpush3.bf16.msra.mxu1 %v10474_v48  ;;  %15120 = vst [vmem:[#allocation11_spill] sm:$0xff] %v11100_v32  ;;  %15121 = vst [vmem:[#allocation12_spill] sm:$0xff] %v11103_v33  ;;  %v9115_v43 = vcombine.low %v11005_v24, %v564_v0  ;;  %v1659_v44 = vcombine.low %v11100_v32, %v11106_v34 }
  0x57   : > { %9440 = vmatprep.subr.bf16.mxu0 %v10475_v53  ;;  %10213 = vmatprep.subr.bf16.mxu1 %v10475_v53  ;;  %15122 = vst [vmem:[#allocation13_spill] sm:$0xff] %v11106_v34  ;;  %15123 = vst [vmem:[#allocation14_spill] sm:$0xff] %v11109_v35  ;;  %v9122_v45 = vcombine.high %v11100_v32, %v11106_v34  ;;  %v1661_v46 = vcombine.low %v11103_v33, %v11109_v35  ;;  %v11680_v34 = vld [vmem:[%s10973_s9 + $0x44] sm:$0x3] }
  0x58   : > { %v9123_v47 = vcombine.high %v11103_v33, %v11109_v35  ;;  %v1332_v48 = vcombine.low %v1315_v31, %v1329_v39  ;;  %v1333_v49 = vcombine.high %v1315_v31, %v1329_v39  ;;  %v11123_v50 = vrot.slane %v1330_v40, %v11008_v25 }
  0x59   : > { %v11126_v24 = vrot.slane %v1331_v42, %v11008_v25  ;;  %v1669_v51 = vrot.slane %v1659_v44, %v11008_v25  ;;  %v1676_v52 = vrot.slane %v9122_v45, %v11008_v25  ;;  %v1683_v53 = vrot.slane %v1661_v46, %v11008_v25  ;;  %v11191_v46 = vld [vmem:[%s10973_s9 + $0x6c] sm:$0xf] }
  0x5a   : > { %9441 = vmatpush3.bf16.msra.mxu0 %v10476_v2  ;;  %10221 = vmatpush3.bf16.msra.mxu1 %v10476_v2  ;;  %v1690_v54 = vrot.slane %v9123_v47, %v11008_v25  ;;  %v11133_v55 = vrot.slane %v1332_v48, %v11008_v25  ;;  %v11136_v56 = vrot.slane %v1333_v49, %v11008_v25  ;;  %v340_v47 = vld [vmem:[%s10973_s9 + $0x70] sm:$0xf]  ;;  %v11195_v48 = vld [vmem:[%s10973_s9 + $0x74] sm:$0x3] }
  0x5b   : > { %9990 = vmatprep.subr.bf16.mxu1 %v11080_v11  ;;  %9642 = vmatprep.subr.bf16.mxu0 %v10498_v12  ;;  %v1373_v57 = vrot.slane %v9115_v43, %v11008_v25  ;;  %v1380_v58 = vrot.slane %v648_v61, %v11008_v25  ;;  %v1692_v59 = vcombine.high %v1669_v51, %v1676_v52  ;;  %v11153_v61 = vld [vmem:[%s10973_s9 + $0x18] sm:$0xf] }
  0x5c   : > { %15124 = vst [vmem:[#allocation15_spill] sm:$0xff] %v11133_v55  ;;  %15125 = vst [vmem:[#allocation16_spill] sm:$0xff] %v11136_v56  ;;  %v1694_v60 = vcombine.high %v1683_v53, %v1690_v54  ;;  %v9116_v62 = vcombine.low %v11011_v26, %v11087_v13  ;;  %v1390_v63 = vcombine.high %v11033_v37, %v11087_v13 }
  0x5d   : > { %v1365_v0 = vcombine.high %v11136_v56, %v11136_v56  ;;  %v1381_v1 = vcombine.low %v1373_v57, %v1380_v58  ;;  %v1391_v2 = vcombine.high %v11094_v27, %v11094_v27  ;;  %v11150_v3 = vrot.slane %v11094_v27, %v11008_v25 }
  0x5e   : > { %v1708_v5 = vrot.slane %v1692_v59, %v11008_v25  ;;  %v1722_v26 = vrot.slane %v1694_v60, %v11008_v25  ;;  %v11158_v6 = vrot.slane %v9116_v62, %v11008_v25  ;;  %v9128_v7 = vcombine.high %v11123_v50, %v11126_v24  ;;  %v10501_v62 = vld [vmem:[%s14953_s1 + $0x1c8] sm:$0xff]  }
  0x5f   : > { %v1388_v10 = vrot.slane %v1381_v1, %v11008_v25  ;;  %v2129_v12 = vcombine.low %v11133_v55, %v11136_v56  ;;  %v9129_v15 = vcombine.high %v11133_v55, %v11136_v56  ;;  %v1691_v16 = vcombine.low %v1669_v51, %v1676_v52 }
  0x60   : > { %v1725_v19 = vcombine.low %v1708_v5, %v1722_v26  ;;  %v1420_v20 = vcombine.low %v11158_v6, %v11150_v3  ;;  %v2138_v22 = vrot.slane %v9128_v7, %v11008_v25  ;;  %v1693_v23 = vcombine.low %v1683_v53, %v1690_v54  ;;  %v10500_v54 = vld [vmem:[%s14953_s1 + $0x180] sm:$0xff]  }
  0x61   : > { %v2145_v30 = vrot.slane %v2129_v12, %v11008_v25  ;;  %v2152_v31 = vrot.slane %v9129_v15, %v11008_v25  ;;  %v3485_v39 = vcombine.low %v1365_v0, %v1388_v10  ;;  %v11177_v40 = vrot.slane %v1691_v16, %v11008_v25 }
  0x62   : > { %2632 = vmatprep.mubr.bf16.mxu0 %v1725_v19  ;;  %v11180_v42 = vrot.slane %v1420_v20, %v11008_v25  ;;  %v11183_v43 = vrot.slane %v1693_v23, %v11008_v25  ;;  %v9034_v44 = vcombine.low %v11153_v61, %v319_v8  ;;  %v11188_v45 = vcombine.low %v11169_v17, %v11169_v17  ;;  %v10502_v19 = vld [vmem:[%s14953_s1 + $0x188] sm:$0xff]  }
  0x63   : > { %v2161_v49 = vcombine.high %v2138_v22, %v2145_v30  ;;  %v11198_v51 = vrot.slane %v3485_v39, %v11008_v25  ;;  %v2160_v52 = vcombine.low %v2138_v22, %v2145_v30  ;;  %v474_v53 = vor.u32 %v472_v29, %v11040_v41 }
  0x64   : > { %15126 = vst [vmem:[#allocation17_spill] sm:$0xff] %v11180_v42  ;;  %v2131_v57 = vcombine.low %v1388_v10, %v11180_v42  ;;  %v1723_v58 = vcombine.low %v11177_v40, %v11183_v43  ;;  %v476_v59 = vshrl.u32 %v9034_v44, 16  ;;  %v478_v60 = vshll.u32 %v9034_v44, 16 }
  0x65   : > { %15127 = vst [vmem:[#allocation18_spill] sm:$0xff] %v11198_v51  ;;  %v2177_v0 = vrot.slane %v2161_v49, %v11008_v25  ;;  %v11214_v1 = vrot.slane %v2160_v52, %v11008_v25  ;;  %v483_v41 = vshll.u32 %v11188_v45, 16  ;;  %v632_v29 = vrot.slane %v9034_v44, 1  ;;  %v328_v51 = vld [vmem:[%s10973_s9 + $0x40] sm:$0xf] }
  0x66   : > { %v2159_v5 = vrot.slane %v2131_v57, %v11008_v25  ;;  %2633 = vmatmul.mubr.bf16.vlgmr.msra.gmra.mrb[0].mxu0 %v1723_v58  ;;  %v480_v26 = vrot.slane %v478_v60, 1  ;;  %v14967_v7 = vrot.slane %v11188_v45, 1  ;;  %v9103_v8 = vcombine.low %v10988_v18, %v474_v53 }
  0x67   : > { %v11220_v10 = vrot.slane %v483_v41, 1  ;;  %v840_v12 = vrot.slane %v630_v36, %v11008_v25  ;;  %v11226_v15 = vcombine.low %v11191_v46, %v340_v47  ;;  %v11230_v16 = vcombine.low %v11195_v48, %v11195_v48  ;;  %9643 = vmatpush3.bf16.msra.mxu0 %v10500_v54  ;;  %v10506_v36 = vld [vmem:[%s14953_s1 + $0x1d0] sm:$0xff]  }
  0x68   : > { %v2163_v20 = vcombine.high %v2152_v31, %v2159_v5  ;;  %v2162_v18 = vcombine.low %v2152_v31, %v2159_v5  ;;  %v481_v22 = vor.u32 %v480_v26, %v476_v59  ;;  %v634_v21 = vsel %vm15101_vm1, %v632_v29, %v14967_v7  ;;  %9644 = vmatprep.subr.bf16.mxu0 %v10501_v62  ;;  %v10507_v5 = vld [vmem:[%s14953_s1 + $0x190] sm:$0xff]  }
  0x69   : > { %v833_v23 = vrot.slane %v9103_v8, %v11008_v25  ;;  %v851_v30 = vcombine.high %v634_v21, %v634_v21  ;;  %v872_v39 = vrot.slane %v634_v21, %v11008_v25  ;;  %v577_v47 = vshrl.u32 %v11037_v38, 16 }
  0x6a   : > { %v2191_v49 = vrot.slane %v2163_v20, %v11008_v25  ;;  %v11246_v31 = vrot.slane %v2162_v18, %v11008_v25  ;;  %v486_v52 = vsel %vm15100_vm0, %v481_v22, %v11220_v10  ;;  %v581_v53 = vshrl.u32 %v11226_v15, 16  ;;  %v10509_v18 = vld [vmem:[%s14953_s1 + $0x1d8] sm:$0xff]  }
  0x6b   : > { %v841_v54 = vcombine.low %v833_v23, %v840_v12  ;;  %v9104_v57 = vcombine.low %v11153_v61, %v486_v52  ;;  %v850_v58 = vcombine.high %v9034_v44, %v486_v52  ;;  %v879_v59 = vrot.slane %v851_v30, %v11008_v25  ;;  %9645 = vmatpush3.bf16.msra.mxu0 %v10502_v19  ;;  %v10484_v61 = vld [vmem:[%s14953_s1 + $0x148] sm:$0xff]   ;;  %v10489_v52 = vld [vmem:[%s14953_s1 + $0x150] sm:$0xff]  }
  0x6c   : > { %v2194_v60 = vcombine.low %v2177_v0, %v2191_v49  ;;  %v2192_v62 = vcombine.low %v11214_v1, %v11246_v31  ;;  %v11256_v41 = vor.u32 %v577_v47, %v11069_v4  ;;  %v583_v29 = vshll.u32 %v11226_v15, 16  ;;  %9646 = vmatprep.subr.bf16.mxu0 %v10506_v36 }
  0x6d   : > { %v11266_v44 = vrot.slane %v841_v54, %v11008_v25  ;;  %v858_v0 = vrot.slane %v9104_v57, %v11008_v25  ;;  %v865_v26 = vrot.slane %v850_v58, %v11008_v25  ;;  %v588_v4 = vshll.u32 %v11230_v16, 16  ;;  %v10510_v57 = vld [vmem:[%s14953_s1 + $0x198] sm:$0xff]  }
  0x6e   : > { %2688 = vmatprep.mubr.bf16.mxu1 %v2194_v60  ;;  %v585_v8 = vrot.slane %v583_v29, 1  ;;  %v653_v12 = vrot.slane %v11226_v15, 1  ;;  %v14966_v19 = vrot.slane %v11230_v16, 1  ;;  %v1405_v20 = vrot.slane %v1390_v63, %v11008_v25 }
  0x6f   : > { %15128 = vst [vmem:[#allocation19_spill] sm:$0xff] %v11266_v44  ;;  %2689 = vmatmul.mubr.bf16.vlgmr.msra.gmra.mrb[0].mxu1 %v2192_v62  ;;  %v880_v22 = vcombine.low %v858_v0, %v872_v39  ;;  %v881_v21 = vcombine.high %v858_v0, %v872_v39  ;;  %v882_v36 = vcombine.low %v865_v26, %v879_v59  ;;  %v11281_v47 = vrot.slane %v588_v4, 1 }
  0x70   : > { %v883_v23 = vcombine.high %v865_v26, %v879_v59  ;;  %9991 = vmatpush3.bf16.msra.mxu1 %v11080_v11  ;;  %v586_v30 = vor.u32 %v585_v8, %v581_v53  ;;  %v11286_v49 = vsel %vm15101_vm1, %v653_v12, %v14966_v19  ;;  %v1419_v37 = vrot.slane %v1391_v2, %v11008_v25  ;;  %v10492_v12 = vld [vmem:[%s14953_s1 + $0x158] sm:$0xff]   ;;  %v11394_v19 = vld [vmem:[%s10973_s9 + $0x2c] sm:$0x3] }
  0x71   : > { %9647 = vmatpush3.bf16.msra.mxu0 %v10507_v5  ;;  %9992 = vmatprep.subr.bf16.mxu1 %v10484_v61  ;;  %v11293_v13 = vrot.slane %v880_v22, %v11008_v25  ;;  %v11296_v11 = vrot.slane %v882_v36, %v11008_v25  ;;  %v11299_v63 = vrot.slane %v881_v21, %v11008_v25  ;;  %v10516_v36 = vld [vmem:[%s14953_s1 + $0x1a0] sm:$0xff]   ;;  %v15134_v14 = vrot.slane %v11188_v45, 1 }
  0x72   : > { %v11302_v39 = vrot.slane %v883_v23, %v11008_v25  ;;  %v11309_v27 = vsel %vm15100_vm0, %v586_v30, %v11281_v47  ;;  %v1421_v2 = vcombine.high %v11158_v6, %v11150_v3  ;;  %v1422_v53 = vcombine.low %v1405_v20, %v1419_v37  ;;  %9648 = vmatprep.subr.bf16.mxu0 %v10509_v18  ;;  %v10514_v3 = vld [vmem:[%s14953_s1 + $0x1e0] sm:$0xff]  }
  0x73   : > { %v1423_v54 = vcombine.high %v1405_v20, %v1419_v37  ;;  %v912_v58 = vcombine.high %v11293_v13, %v11293_v13  ;;  %v913_v59 = vcombine.high %v11296_v11, %v11296_v11  ;;  %v914_v60 = vcombine.high %v11299_v63, %v11299_v63 }
  0x74   : > { %v1726_v62 = vcombine.low %v11266_v44, %v11293_v13  ;;  %9993 = vmatpush3.bf16.msra.mxu1 %v10484_v61  ;;  %v11328_v6 = vrot.slane %v1422_v53, %v11008_v25  ;;  %v11331_v29 = vrot.slane %v1421_v2, %v11008_v25  ;;  %v1452_v0 = vcombine.high %v11180_v42, %v11180_v42 }
  0x75   : > { %v11334_v5 = vrot.slane %v1423_v54, %v11008_v25  ;;  %v1727_v26 = vcombine.low %v11299_v63, %v912_v58  ;;  %v1728_v4 = vcombine.low %v914_v60, %v11296_v11  ;;  %v1729_v8 = vcombine.low %v11302_v39, %v913_v59  ;;  %9994 = vmatprep.subr.bf16.mxu1 %v10489_v52 }
  0x76   : > { %15129 = vst [vmem:[#allocation20_spill] sm:$0xff] %v11328_v6  ;;  %15130 = vst [vmem:[#allocation21_spill] sm:$0xff] %v11331_v29  ;;  %v1736_v61 = vrot.slane %v1726_v62, %v11008_v25  ;;  %v1453_v20 = vcombine.high %v11328_v6, %v11328_v6  ;;  %v1454_v18 = vcombine.high %v11331_v29, %v11331_v29  ;;  %9649 = vmatpush3.bf16.msra.mxu0 %v10510_v57 }
  0x77   : > { %15131 = vst [vmem:[#allocation22_spill] sm:$0xff] %v11334_v5  ;;  %v1455_v22 = vcombine.high %v11334_v5, %v11334_v5  ;;  %v9117_v21 = vcombine.low %v11015_v28, %v11256_v41  ;;  %v1743_v23 = vrot.slane %v1727_v26, %v11008_v25  ;;  %v1750_v30 = vrot.slane %v1728_v4, %v11008_v25  ;;  %v10493_v28 = vld [vmem:[%s14953_s1 + $0x160] sm:$0xff]   ;;  %v10517_v41 = vld [vmem:[%s14953_s1 + $0x1e8] sm:$0xff]  }
  0x78   : > { %v1757_v37 = vrot.slane %v1729_v8, %v11008_v25  ;;  %v1470_v2 = vrot.slane %v651_v9, %v11008_v25  ;;  %9650 = vmatprep.subr.bf16.mxu0 %v10514_v3  ;;  %v9118_v54 = vcombine.low %v11191_v46, %v11309_v27  ;;  %v11373_v57 = vrot.slane %v11286_v49, %v11008_v25  ;;  %v11377_v9 = vld [vmem:[%s10973_s9 + $0x24] sm:$0xf]  ;;  %v322_v3 = vld [vmem:[%s10973_s9 + $0x28] sm:$0xf] }
  0x79   : > { %v1463_v53 = vrot.slane %v9117_v21, %v11008_v25  ;;  %v2195_v38 = vcombine.low %v11331_v29, %v1452_v0  ;;  %9995 = vmatpush3.bf16.msra.mxu1 %v10489_v52  ;;  %v1759_v58 = vcombine.high %v1736_v61, %v1743_v23  ;;  %v2196_v60 = vcombine.low %v1454_v18, %v11328_v6  ;;  %v10518_v46 = vld [vmem:[%s14953_s1 + $0x1a8] sm:$0xff]  }
  0x7a   : > { %v1761_v59 = vcombine.high %v1750_v30, %v1757_v37  ;;  %v2197_v62 = vcombine.low %v11334_v5, %v1453_v20  ;;  %9996 = vmatprep.subr.bf16.mxu1 %v10492_v12  ;;  %v11386_v4 = vrot.slane %v9118_v54, %v11008_v25  ;;  %v1758_v0 = vcombine.low %v1736_v61, %v1743_v23  ;;  %v10521_v61 = vld [vmem:[%s14953_s1 + $0x1f0] sm:$0xff]  }
  0x7b   : > { %v1471_v26 = vcombine.low %v1463_v53, %v1470_v2  ;;  %v2205_v52 = vrot.slane %v2195_v38, %v11008_v25  ;;  %9651 = vmatpush3.bf16.msra.mxu0 %v10516_v36  ;;  %v1775_v8 = vrot.slane %v1759_v58, %v11008_v25  ;;  %v2212_v20 = vrot.slane %v2196_v60, %v11008_v25  ;;  %v10499_v2 = vld [vmem:[%s14953_s1 + $0x168] sm:$0xff]   ;;  %v10522_v60 = vld [vmem:[%s14953_s1 + $0x1b0] sm:$0xff]  }
  0x7c   : > { %v1789_v18 = vrot.slane %v1761_v59, %v11008_v25  ;;  %v2219_v21 = vrot.slane %v2197_v62, %v11008_v25  ;;  %9652 = vmatprep.subr.bf16.mxu0 %v10517_v41  ;;  %v1510_v23 = vcombine.low %v11386_v4, %v11373_v57  ;;  %v1760_v53 = vcombine.low %v1750_v30, %v1757_v37 }
  0x7d   : > { %v11403_v36 = vrot.slane %v1471_v26, %v11008_v25  ;;  %v11408_v54 = vrot.slane %v1758_v0, %v11008_v25  ;;  %9997 = vmatpush3.bf16.msra.mxu1 %v10492_v12  ;;  %v2228_v58 = vcombine.high %v2205_v52, %v2212_v20  ;;  %v2227_v59 = vcombine.low %v2205_v52, %v2212_v20 }
  0x7e   : > { %v1792_v38 = vcombine.low %v1775_v8, %v1789_v18  ;;  %v11411_v41 = vcombine.low %v11377_v9, %v322_v3  ;;  %9998 = vmatprep.subr.bf16.mxu1 %v10493_v28  ;;  %v11417_v62 = vrot.slane %v1510_v23, %v11008_v25  ;;  %v11421_v37 = vrot.slane %v1760_v53, %v11008_v25 }
  0x7f   : > { %15132 = vst [vmem:[#allocation23_spill] sm:$0xff] %v11403_v36  ;;  %v2198_v30 = vcombine.low %v1455_v22, %v11403_v36  ;;  %v11425_v12 = vcombine.low %v11394_v19, %v11394_v19  ;;  %9653 = vmatpush3.bf16.msra.mxu0 %v10518_v46  ;;  %v2244_v3 = vrot.slane %v2228_v58, %v11008_v25  ;;  %v487_v52 = vshrl.u32 %v11188_v45, 16  ;;  %v10524_v58 = vld [vmem:[%s14953_s1 + $0x1f8] sm:$0xff]  }
  0x80   : > { %15133 = vst [vmem:[#allocation24_spill] sm:$0xff] %v11417_v62  ;;  %2640 = vmatprep.mubr.bf16.mxu0 %v1792_v38  ;;  %v11429_v26 = vrot.slane %v2227_v59, %v11008_v25  ;;  %v491_v0 = vshrl.u32 %v11411_v41, 16  ;;  %9654 = vmatprep.subr.bf16.mxu0 %v10521_v61  ;;  %v1790_v18 = vcombine.low %v11408_v54, %v11421_v37  ;;  %v493_v23 = vshll.u32 %v11411_v41, 16  ;;  %v10503_v38 = vld [vmem:[%s14953_s1 + $0x170] sm:$0xff]  }
  0x81   : > { %v2226_v22 = vrot.slane %v2198_v30, %v11008_v25  ;;  %9999 = vmatpush3.bf16.msra.mxu1 %v10493_v28  ;;  %v489_v20 = vor.u32 %v487_v52, %v11220_v10  ;;  %v498_v53 = vshll.u32 %v11425_v12, 16  ;;  %v635_v61 = vrot.slane %v11411_v41, 1  ;;  %v10526_v52 = vld [vmem:[%s14953_s1 + $0x1b8] sm:$0xff]  }
  0x82   : > { %10000 = vmatprep.subr.bf16.mxu1 %v10499_v2  ;;  %2641 = vmatmul.mubr.bf16.gmra.mrb[4].mxu0 %v1790_v18  ;;  %v915_v30 = vcombine.high %v11302_v39, %v11302_v39  ;;  %v495_v8 = vrot.slane %v493_v23, 1  ;;  %v930_v36 = vrot.slane %v15134_v14, %v11008_v25  ;;  %v11461_v18 = vld [vmem:[%s10973_s9 + $0x30] sm:$0xf]  ;;  %v15135_v6 = vrot.slane %v11425_v12, 1 }
  0x83   : > { %v2230_v28 = vcombine.high %v2219_v21, %v2226_v22  ;;  %v2229_v10 = vcombine.low %v2219_v21, %v2226_v22  ;;  %v500_v46 = vrot.slane %v498_v53, 1  ;;  %v9105_v7 = vcombine.low %v11169_v17, %v489_v20  ;;  %v325_v21 = vld [vmem:[%s10973_s9 + $0x34] sm:$0xf]  ;;  %9655 = vmatpush3.bf16.msra.mxu0 %v10522_v60  ;;  %v11474_v20 = vld [vmem:[%s10973_s9 + $0x38] sm:$0x3] }
  0x84   : > { %v637_v23 = vsel %vm15101_vm1, %v635_v61, %v15135_v6  ;;  %v1480_v17 = vcombine.high %v11226_v15, %v11309_v27  ;;  %v496_v14 = vor.u32 %v495_v8, %v491_v0  ;;  %v1481_v15 = vcombine.high %v11286_v49, %v11286_v49  ;;  %9656 = vmatprep.subr.bf16.mxu0 %v10524_v58 }
  0x85   : > { %v2258_v22 = vrot.slane %v2230_v28, %v11008_v25  ;;  %v11466_v59 = vrot.slane %v2229_v10, %v11008_v25  ;;  %10001 = vmatpush3.bf16.msra.mxu1 %v10499_v2  ;;  %v923_v45 = vrot.slane %v9105_v7, %v11008_v25  ;;  %v941_v53 = vcombine.high %v637_v23, %v637_v23  ;;  %v10508_v28 = vld [vmem:[%s14953_s1 + $0x178] sm:$0xff]  }
  0x86   : > { %v962_v60 = vrot.slane %v637_v23, %v11008_v25  ;;  %10002 = vmatprep.subr.bf16.mxu1 %v10503_v38  ;;  %v1495_v27 = vrot.slane %v1480_v17, %v11008_v25  ;;  %v501_v7 = vsel %vm15100_vm0, %v496_v14, %v500_v46  ;;  %v1511_v8 = vcombine.high %v11386_v4, %v11373_v57  ;;  %v10513_v4 = vld [vmem:[%s14953_s1 + $0x40] sm:$0xff]  }
  0x87   : > { %v2261_v10 = vcombine.low %v2244_v3, %v2258_v22  ;;  %v2259_v6 = vcombine.low %v11429_v26, %v11466_v59  ;;  %v931_v2 = vcombine.low %v923_v45, %v930_v36  ;;  %v969_v0 = vrot.slane %v941_v53, %v11008_v25  ;;  %9657 = vmatpush3.bf16.msra.mxu0 %v10526_v52 }
  0x88   : > { %v9106_v3 = vcombine.low %v11377_v9, %v501_v7  ;;  %v940_v61 = vcombine.high %v11411_v41, %v501_v7  ;;  %v1509_v22 = vrot.slane %v1481_v15, %v11008_v25  ;;  %v11494_v49 = vcombine.low %v11461_v18, %v325_v21  ;;  %v10540_v41 = vld [vmem:[%s14953_s1 + $0x200] sm:$0xff]  }
  0x89   : > { %2696 = vmatprep.mubr.bf16.mxu1 %v2261_v10  ;;  %v11497_v58 = vrot.slane %v931_v2, %v11008_v25  ;;  %v11500_v36 = vrot.slane %v1511_v8, %v11008_v25  ;;  %v11504_v57 = vcombine.low %v11474_v20, %v11474_v20  ;;  %v502_v9 = vshrl.u32 %v11425_v12, 16  ;;  %10003 = vmatpush3.bf16.msra.mxu1 %v10503_v38 }
  0x8a   : > { %2697 = vmatmul.mubr.bf16.gmra.mrb[4].mxu1 %v2259_v6  ;;  %v948_v52 = vrot.slane %v9106_v3, %v11008_v25  ;;  %v955_v21 = vrot.slane %v940_v61, %v11008_v25  ;;  %v1512_v23 = vcombine.low %v1495_v27, %v1509_v22  ;;  %v1513_v17 = vcombine.high %v1495_v27, %v1509_v22 }
  0x8b   : > { %15136 = vst [vmem:[#allocation25_spill] sm:$0xff] %v11500_v36  ;;  %v1793_v14 = vcombine.low %v915_v30, %v11497_v58  ;;  %v2262_v45 = vcombine.low %v11417_v62, %v11500_v36  ;;  %v9130_v53 = vcombine.high %v11417_v62, %v11500_v36  ;;  %v11520_v10 = vor.u32 %v502_v9, %v500_v46 }
  0x8c   : > { %10004 = vmatprep.subr.bf16.mxu1 %v10508_v28  ;;  %v970_v6 = vcombine.low %v948_v52, %v962_v60  ;;  %v971_v15 = vcombine.high %v948_v52, %v962_v60  ;;  %v972_v7 = vcombine.low %v955_v21, %v969_v0  ;;  %v973_v2 = vcombine.high %v955_v21, %v969_v0 }
  0x8d   : > { %10070 = vmatprep.subr.bf16.mxu0 %v10540_v41  ;;  %v1803_v8 = vrot.slane %v1793_v14, %v11008_v25  ;;  %v11524_v38 = vrot.slane %v1512_v23, %v11008_v25  ;;  %v11527_v30 = vrot.slane %v1513_v17, %v11008_v25  ;;  %v2272_v27 = vrot.slane %v2262_v45, %v11008_v25 }
  0x8e   : > { %v11531_v3 = vrot.slane %v970_v6, %v11008_v25  ;;  %v11534_v46 = vrot.slane %v972_v7, %v11008_v25  ;;  %v11537_v60 = vrot.slane %v971_v15, %v11008_v25  ;;  %v11540_v0 = vrot.slane %v973_v2, %v11008_v25  ;;  %10005 = vmatpush3.bf16.msra.mxu1 %v10508_v28 }
  0x8f   : > { %15137 = vst [vmem:[#allocation26_spill] sm:$0xff] %v11524_v38  ;;  %15138 = vst [vmem:[#allocation27_spill] sm:$0xff] %v11527_v30  ;;  %v2264_v61 = vcombine.low %v11524_v38, %v11527_v30  ;;  %v9131_v22 = vcombine.high %v11524_v38, %v11527_v30  ;;  %v2279_v9 = vrot.slane %v9130_v53, %v11008_v25  ;;  %v506_v41 = vshrl.u32 %v11494_v49, 16 }
  0x90   : > { %9534 = vmatprep.subr.bf16.mxu1 %v10513_v4  ;;  %v1794_v52 = vcombine.low %v11531_v3, %v11537_v60  ;;  %v9124_v21 = vcombine.high %v11531_v3, %v11537_v60  ;;  %v1796_v28 = vcombine.low %v11534_v46, %v11540_v0  ;;  %v508_v7 = vshll.u32 %v11494_v49, 16 }
  0x91   : > { %v2286_v17 = vrot.slane %v2264_v61, %v11008_v25  ;;  %v2293_v14 = vrot.slane %v9131_v22, %v11008_v25  ;;  %v2295_v45 = vcombine.high %v2272_v27, %v2279_v9  ;;  %v2294_v53 = vcombine.low %v2272_v27, %v2279_v9 }
  0x92   : > { %v1810_v4 = vrot.slane %v1794_v52, %v11008_v25  ;;  %v1817_v6 = vrot.slane %v9124_v21, %v11008_v25  ;;  %v1824_v15 = vrot.slane %v1796_v28, %v11008_v25  ;;  %v510_v28 = vrot.slane %v508_v7, 1  ;;  %v343_v7 = vld [vmem:[%s10973_s9 + $0x7c] sm:$0xf] }
  0x93   : > { %v2297_v2 = vcombine.high %v2286_v17, %v2293_v14  ;;  %v2311_v36 = vrot.slane %v2295_v45, %v11008_v25  ;;  %v2296_v38 = vcombine.low %v2286_v17, %v2293_v14  ;;  %v11564_v23 = vrot.slane %v2294_v53, %v11008_v25 }
  0x94   : > { %v1826_v61 = vcombine.high %v1803_v8, %v1810_v4  ;;  %v1828_v22 = vcombine.high %v1817_v6, %v1824_v15  ;;  %v1825_v27 = vcombine.low %v1803_v8, %v1810_v4  ;;  %v1827_v9 = vcombine.low %v1817_v6, %v1824_v15  ;;  %v11584_v15 = vld [vmem:[%s10973_s9 + $0x78] sm:$0xf] }
  0x95   : > { %15139 = vst [vmem:[#allocation28_spill] sm:$0xff] %v11564_v23  ;;  %v2325_v52 = vrot.slane %v2297_v2, %v11008_v25  ;;  %v11568_v21 = vrot.slane %v2296_v38, %v11008_v25  ;;  %v513_v62 = vshll.u32 %v11504_v57, 16  ;;  %v511_v6 = vor.u32 %v510_v28, %v506_v41  ;;  %v11588_v2 = vld [vmem:[%s10973_s9 + $0x80] sm:$0x3] }
  0x96   : > { %v1842_v17 = vrot.slane %v1826_v61, %v11008_v25  ;;  %v1856_v14 = vrot.slane %v1828_v22, %v11008_v25  ;;  %v11574_v45 = vrot.slane %v1825_v27, %v11008_v25  ;;  %v11577_v53 = vrot.slane %v1827_v9, %v11008_v25 }
  0x97   : > { %v2328_v8 = vcombine.low %v2311_v36, %v2325_v52  ;;  %v2326_v4 = vcombine.low %v11564_v23, %v11568_v21  ;;  %v11581_v38 = vrot.slane %v513_v62, 1  ;;  %v638_v27 = vrot.slane %v11494_v49, 1 }
  0x98   : > { %v1859_v61 = vcombine.low %v1842_v17, %v1856_v14  ;;  %v1857_v22 = vcombine.low %v11574_v45, %v11577_v53  ;;  %v14981_v9 = vrot.slane %v11504_v57, 1  ;;  %v1005_v62 = vcombine.high %v11540_v0, %v11540_v0 }
  0x99   : > { %2704 = vmatprep.mubr.bf16.mxu1 %v2328_v8  ;;  %v516_v36 = vsel %vm15100_vm0, %v511_v6, %v11581_v38  ;;  %v9107_v41 = vcombine.low %v11394_v19, %v11520_v10  ;;  %v15140_v52 = vrot.slane %v11425_v12, 1  ;;  %v592_v6 = vshrl.u32 %v11230_v16, 16 }
  0x9a   : > { %2648 = vmatprep.mubr.bf16.mxu0 %v1859_v61  ;;  %2705 = vmatmul.mubr.bf16.gmra.mrb[8].mxu1 %v2326_v4  ;;  %v640_v17 = vsel %vm15101_vm1, %v638_v27, %v14981_v9  ;;  %v9108_v14 = vcombine.low %v11461_v18, %v516_v36  ;;  %v1030_v8 = vcombine.high %v11494_v49, %v516_v36 }
  0x9b   : > { %v1020_v28 = vrot.slane %v15140_v52, %v11008_v25  ;;  %2649 = vmatmul.mubr.bf16.gmra.mrb[8].mxu0 %v1857_v22  ;;  %v1013_v5 = vrot.slane %v9107_v41, %v11008_v25  ;;  %v1031_v19 = vcombine.high %v640_v17, %v640_v17  ;;  %v1052_v12 = vrot.slane %v640_v17, %v11008_v25 }
  0x9c   : > { %v9125_v10 = vcombine.high %v11534_v46, %v11540_v0  ;;  %v1038_v4 = vrot.slane %v9108_v14, %v11008_v25  ;;  %v11615_v61 = vrot.slane %v1030_v8, %v11008_v25  ;;  %v9050_v18 = vcombine.low %v11584_v15, %v343_v7  ;;  %v11628_v8 = vld [vmem:[%s10973_s9 + $0x3c] sm:$0xf] }
  0x9d   : > { %v11620_v49 = vcombine.low %v11588_v2, %v11588_v2  ;;  %v1021_v22 = vcombine.low %v1013_v5, %v1020_v28  ;;  %v11623_v27 = vrot.slane %v1031_v19, %v11008_v25  ;;  %v594_v41 = vor.u32 %v592_v6, %v11281_v47 }
  0x9e   : > { %v1870_v36 = vrot.slane %v9125_v10, %v11008_v25  ;;  %v1060_v52 = vcombine.low %v1038_v4, %v1052_v12  ;;  %v1061_v17 = vcombine.high %v1038_v4, %v1052_v12  ;;  %v596_v14 = vshrl.u32 %v9050_v18, 16 }
  0x9f   : > { %v598_v9 = vshll.u32 %v9050_v18, 16  ;;  %v1028_v7 = vrot.slane %v1021_v22, %v11008_v25  ;;  %v1062_v42 = vcombine.low %v11615_v61, %v11623_v27  ;;  %v603_v5 = vshll.u32 %v11620_v49, 16 }
  0xa0   : > { %v656_v28 = vrot.slane %v9050_v18, 1  ;;  %v11636_v19 = vrot.slane %v1060_v52, %v11008_v25  ;;  %v11639_v47 = vrot.slane %v1061_v17, %v11008_v25  ;;  %v14994_v12 = vrot.slane %v11620_v49, 1 }
  0xa1   : > { %v600_v6 = vrot.slane %v598_v9, 1  ;;  %v11643_v10 = vrot.slane %v1062_v42, %v11008_v25  ;;  %v11645_v4 = vcombine.low %v1005_v62, %v1028_v7  ;;  %v11647_v22 = vrot.slane %v603_v5, 1 }
  0xa2   : > { %v1545_v29 = vcombine.high %v11527_v30, %v11527_v30  ;;  %v1092_v52 = vcombine.high %v11636_v19, %v11636_v19  ;;  %v1094_v17 = vcombine.high %v11639_v47, %v11639_v47  ;;  %v1861_v9 = vcombine.low %v1028_v7, %v11636_v19 }
  0xa3   : > { %v601_v56 = vor.u32 %v600_v6, %v596_v14  ;;  %v658_v42 = vsel %vm15101_vm1, %v656_v28, %v14994_v12  ;;  %v9119_v62 = vcombine.low %v11195_v48, %v594_v41  ;;  %v15141_v5 = vrot.slane %v11230_v16, 1 }
  0xa4   : > { %v11664_v30 = vcombine.low %v11628_v8, %v328_v51  ;;  %v1862_v44 = vcombine.low %v11639_v47, %v1092_v52  ;;  %v1863_v35 = vcombine.low %v1094_v17, %v11643_v10  ;;  %v1877_v14 = vrot.slane %v1861_v9, %v11008_v25 }
  0xa5   : > { %v1560_v55 = vrot.slane %v15141_v5, %v11008_v25  ;;  %v606_v7 = vsel %vm15100_vm0, %v601_v56, %v11647_v22  ;;  %v1553_v28 = vrot.slane %v9119_v62, %v11008_v25  ;;  %v1571_v16 = vcombine.high %v658_v42, %v658_v42 }
  0xa6   : > { %v9120_v48 = vcombine.low %v11584_v15, %v606_v7  ;;  %v1570_v41 = vcombine.high %v9050_v18, %v606_v7  ;;  %v1884_v6 = vrot.slane %v1862_v44, %v11008_v25  ;;  %v1891_v51 = vrot.slane %v1863_v35, %v11008_v25 }
  0xa7   : > { %v1893_v5 = vcombine.high %v1870_v36, %v1877_v14  ;;  %v1592_v52 = vrot.slane %v658_v42, %v11008_v25  ;;  %v1561_v12 = vcombine.low %v1553_v28, %v1560_v55  ;;  %v1599_v56 = vrot.slane %v1571_v16, %v11008_v25 }
  0xa8   : > { %v1578_v17 = vrot.slane %v9120_v48, %v11008_v25  ;;  %v1585_v9 = vrot.slane %v1570_v41, %v11008_v25  ;;  %v1895_v62 = vcombine.high %v1884_v6, %v1891_v51  ;;  %v1892_v18 = vcombine.low %v1870_v36, %v1877_v14 }
  0xa9   : > { %v1909_v15 = vrot.slane %v1893_v5, %v11008_v25  ;;  %v1894_v7 = vcombine.low %v1884_v6, %v1891_v51  ;;  %v1568_v44 = vrot.slane %v1561_v12, %v11008_v25  ;;  %v11709_v5 = vcombine.low %v11680_v34, %v11680_v34 }
  0xaa   : > { %v1600_v35 = vcombine.low %v1578_v17, %v1592_v52  ;;  %v1601_v33 = vcombine.high %v1578_v17, %v1592_v52  ;;  %v1602_v32 = vcombine.low %v1585_v9, %v1599_v56  ;;  %v1923_v55 = vrot.slane %v1895_v62, %v11008_v25 }
  0xab   : > { %v1603_v42 = vcombine.high %v1585_v9, %v1599_v56  ;;  %v11686_v28 = vrot.slane %v1892_v18, %v11008_v25  ;;  %v11689_v48 = vrot.slane %v1894_v7, %v11008_v25  ;;  %v11700_v14 = vcombine.low %v1545_v29, %v1568_v44 }
  0xac   : > { %v11692_v41 = vrot.slane %v1600_v35, %v11008_v25  ;;  %v11695_v36 = vrot.slane %v1602_v32, %v11008_v25  ;;  %v11698_v12 = vrot.slane %v1601_v33, %v11008_v25  ;;  %v1926_v16 = vcombine.low %v1909_v15, %v1923_v55 }
  0xad   : > { %15145 = vst [vmem:[#allocation32_spill] sm:$0xff] %v11700_v14  ;;  %v11703_v6 = vrot.slane %v1603_v42, %v11008_v25  ;;  %v1924_v51 = vcombine.low %v11686_v28, %v11689_v48  ;;  %v517_v17 = vshrl.u32 %v11504_v57, 16  ;;  %v521_v9 = vshrl.u32 %v11664_v30, 16 }
  0xae   : > { %15142 = vst [vmem:[#allocation29_spill] sm:$0xff] %v11692_v41  ;;  %15143 = vst [vmem:[#allocation30_spill] sm:$0xff] %v11695_v36  ;;  %v1632_v32 = vcombine.high %v11692_v41, %v11692_v41  ;;  %v1633_v33 = vcombine.high %v11695_v36, %v11695_v36  ;;  %v1634_v29 = vcombine.high %v11698_v12, %v11698_v12  ;;  %2656 = vmatprep.mubr.bf16.mxu0 %v1926_v16 }
  0xaf   : > { %15144 = vst [vmem:[#allocation31_spill] sm:$0xff] %v11698_v12  ;;  %15146 = vst [vmem:[#allocation33_spill] sm:$0xff] %v11703_v6  ;;  %v2329_v52 = vcombine.low %v1568_v44, %v11692_v41  ;;  %v523_v56 = vshll.u32 %v11664_v30, 16  ;;  %v528_v62 = vshll.u32 %v11709_v5, 16  ;;  %2657 = vmatmul.mubr.bf16.gmra.mrb[12].mxu0 %v1924_v51  ;;  %v519_v44 = vor.u32 %v517_v17, %v11581_v38 }
  0xb0   : > { %v2330_v15 = vcombine.low %v11698_v12, %v1632_v32  ;;  %v2331_v18 = vcombine.low %v1634_v29, %v11695_v36  ;;  %v2332_v7 = vcombine.low %v11703_v6, %v1633_v33  ;;  %v641_v16 = vrot.slane %v11664_v30, 1 }
  0xb1   : > { %v2339_v35 = vrot.slane %v2329_v52, %v11008_v25  ;;  %v525_v55 = vrot.slane %v523_v56, 1  ;;  %v530_v42 = vrot.slane %v528_v62, 1  ;;  %v15003_v33 = vrot.slane %v11709_v5, 1 }
  0xb2   : > { %v2346_v41 = vrot.slane %v2330_v15, %v11008_v25  ;;  %v2353_v14 = vrot.slane %v2331_v18, %v11008_v25  ;;  %v2360_v32 = vrot.slane %v2332_v7, %v11008_v25  ;;  %v1063_v51 = vcombine.high %v11615_v61, %v11623_v27  ;;  %v11750_v27 = vld [vmem:[%s10973_s9 + $0x48] sm:$0xf] }
  0xb3   : > { %v526_v29 = vor.u32 %v525_v55, %v521_v9  ;;  %v1093_v38 = vcombine.high %v11643_v10, %v11643_v10  ;;  %v9109_v52 = vcombine.low %v11474_v20, %v519_v44  ;;  %v11743_v7 = vsel %vm15101_vm1, %v641_v16, %v15003_v33  ;;  %v331_v20 = vld [vmem:[%s10973_s9 + $0x4c] sm:$0xf]  ;;  %v11754_v44 = vld [vmem:[%s10973_s9 + $0x50] sm:$0x3] }
  0xb4   : > { %v2362_v17 = vcombine.high %v2339_v35, %v2346_v41  ;;  %v2364_v56 = vcombine.high %v2353_v14, %v2360_v32  ;;  %v2361_v62 = vcombine.low %v2339_v35, %v2346_v41  ;;  %v2363_v15 = vcombine.low %v2353_v14, %v2360_v32 }
  0xb5   : > { %v11738_v18 = vsel %vm15100_vm0, %v526_v29, %v530_v42  ;;  %v11746_v9 = vrot.slane %v1063_v51, %v11008_v25  ;;  %v1103_v61 = vrot.slane %v9109_v52, %v11008_v25  ;;  %v15149_v32 = vrot.slane %v11504_v57, 1 }
  0xb6   : > { %v2378_v41 = vrot.slane %v2362_v17, %v11008_v25  ;;  %v2392_v14 = vrot.slane %v2364_v56, %v11008_v25  ;;  %v11759_v35 = vrot.slane %v2361_v62, %v11008_v25  ;;  %v11762_v55 = vrot.slane %v2363_v15, %v11008_v25 }
  0xb7   : > { %v1095_v16 = vcombine.high %v11746_v9, %v11746_v9  ;;  %v1110_v29 = vrot.slane %v15149_v32, %v11008_v25  ;;  %v9110_v51 = vcombine.low %v11628_v8, %v11738_v18  ;;  %v1142_v52 = vrot.slane %v11743_v7, %v11008_v25 }
  0xb8   : > { %15147 = vst [vmem:[#allocation34_spill] sm:$0xff] %v11759_v35  ;;  %15148 = vst [vmem:[#allocation35_spill] sm:$0xff] %v11762_v55  ;;  %v2395_v17 = vcombine.low %v2378_v41, %v2392_v14  ;;  %v2393_v56 = vcombine.low %v11759_v35, %v11762_v55  ;;  %v1927_v62 = vcombine.low %v11746_v9, %v1093_v38  ;;  %v607_v15 = vshrl.u32 %v11620_v49, 16 }
  0xb9   : > { %v1111_v33 = vcombine.low %v1103_v61, %v1110_v29  ;;  %v1128_v36 = vrot.slane %v9110_v51, %v11008_v25  ;;  %v1635_v57 = vcombine.high %v11703_v6, %v11703_v6  ;;  %v15150_v8 = vrot.slane %v11620_v49, 1 }
  0xba   : > { %2712 = vmatprep.mubr.bf16.mxu1 %v2395_v17  ;;  %v1937_v41 = vrot.slane %v1927_v62, %v11008_v25  ;;  %v609_v14 = vor.u32 %v607_v15, %v11647_v22  ;;  %v11786_v12 = vcombine.low %v11750_v27, %v331_v20  ;;  %v11790_v38 = vcombine.low %v11754_v44, %v11754_v44 }
  0xbb   : > { %v1650_v32 = vrot.slane %v15150_v8, %v11008_v25  ;;  %2713 = vmatmul.mubr.bf16.gmra.mrb[12].mxu1 %v2393_v56  ;;  %v11793_v61 = vrot.slane %v1111_v33, %v11008_v25  ;;  %v1150_v29 = vcombine.low %v1128_v36, %v1142_v52  ;;  %v1151_v51 = vcombine.high %v1128_v36, %v1142_v52 }
  0xbc   : > { %v532_v49 = vshrl.u32 %v11709_v5, 16  ;;  %v9121_v17 = vcombine.low %v11588_v2, %v609_v14  ;;  %v536_v62 = vshrl.u32 %v11786_v12, 16  ;;  %v538_v22 = vshll.u32 %v11786_v12, 16 }
  0xbd   : > { %v543_v20 = vshll.u32 %v11790_v38, 16  ;;  %v11801_v15 = vrot.slane %v1150_v29, %v11008_v25  ;;  %v11804_v56 = vrot.slane %v1151_v51, %v11008_v25  ;;  %v1928_v33 = vcombine.low %v1095_v16, %v11793_v61 }
  0xbe   : > { %v534_v8 = vor.u32 %v532_v49, %v530_v42  ;;  %v1643_v36 = vrot.slane %v9121_v17, %v11008_v25  ;;  %v540_v52 = vrot.slane %v538_v22, 1  ;;  %v644_v2 = vrot.slane %v11786_v12, 1 }
  0xbf   : > { %15151 = vst [vmem:[#allocation36_spill] sm:$0xff] %v11804_v56  ;;  %v11808_v6 = vrot.slane %v543_v20, 1  ;;  %v1929_v14 = vcombine.low %v11801_v15, %v11804_v56  ;;  %v9126_v29 = vcombine.high %v11801_v15, %v11804_v56  ;;  %v1944_v35 = vrot.slane %v1928_v33, %v11008_v25 }
  0xc0   : > { %v3283_v51 = vcombine.low %v11793_v61, %v11801_v15  ;;  %v1651_v16 = vcombine.low %v1643_v36, %v1650_v32  ;;  %v541_v42 = vor.u32 %v540_v52, %v536_v62  ;;  %v645_v49 = vrot.slane %v11790_v38, 1 }
  0xc1   : > { %v1120_v17 = vcombine.high %v11664_v30, %v11738_v18  ;;  %v1951_v22 = vrot.slane %v1929_v14, %v11008_v25  ;;  %v1958_v20 = vrot.slane %v9126_v29, %v11008_v25  ;;  %v1960_v55 = vcombine.high %v1937_v41, %v1944_v35 }
  0xc2   : > { %v1959_v23 = vcombine.low %v1937_v41, %v1944_v35  ;;  %v11824_v56 = vrot.slane %v1651_v16, %v11008_v25  ;;  %v546_v33 = vsel %vm15100_vm0, %v541_v42, %v11808_v6  ;;  %v646_v32 = vsel %vm15101_vm1, %v644_v2, %v645_v49 }
  0xc3   : > { %v1121_v62 = vcombine.high %v11743_v7, %v11743_v7  ;;  %v1962_v30 = vcombine.high %v1951_v22, %v1958_v20  ;;  %v1976_v18 = vrot.slane %v1960_v55, %v11008_v25  ;;  %v1961_v36 = vcombine.low %v1951_v22, %v1958_v20 }
  0xc4   : > { %v11835_v52 = vrot.slane %v1959_v23, %v11008_v25  ;;  %v2396_v35 = vcombine.low %v1635_v57, %v11824_v56  ;;  %v1135_v41 = vrot.slane %v1120_v17, %v11008_v25  ;;  %v9111_v29 = vcombine.low %v11680_v34, %v534_v8 }
  0xc5   : > { %v1149_v14 = vrot.slane %v1121_v62, %v11008_v25  ;;  %v1990_v2 = vrot.slane %v1962_v30, %v11008_v25  ;;  %v11843_v16 = vrot.slane %v1961_v36, %v11008_v25  ;;  %v15152_v7 = vrot.slane %v11709_v5, 1 }
  0xc6   : > { %v9112_v23 = vcombine.low %v11750_v27, %v546_v33  ;;  %v2403_v42 = vrot.slane %v2396_v35, %v11008_v25  ;;  %v1193_v17 = vrot.slane %v9111_v29, %v11008_v25  ;;  %v1232_v62 = vrot.slane %v646_v32, %v11008_v25 }
  0xc7   : > { %v1200_v55 = vrot.slane %v15152_v7, %v11008_v25  ;;  %v1152_v57 = vcombine.low %v1135_v41, %v1149_v14  ;;  %v1153_v22 = vcombine.high %v1135_v41, %v1149_v14  ;;  %v1993_v20 = vcombine.low %v1976_v18, %v1990_v2 }
  0xc8   : > { %v1991_v34 = vcombine.low %v11835_v52, %v11843_v16  ;;  %v1218_v8 = vrot.slane %v9112_v23, %v11008_v25  ;;  %v2404_v30 = vcombine.high %v2403_v42, %v2403_v42  ;;  %v11856_v5 = vrot.slane %v2403_v42, %v11008_v25 }
  0xc9   : > { %v11859_v27 = vrot.slane %v1152_v57, %v11008_v25  ;;  %v11862_v36 = vrot.slane %v1153_v22, %v11008_v25  ;;  %2664 = vmatprep.mubr.bf16.mxu0 %v1993_v20  ;;  %v1201_v35 = vcombine.low %v1193_v17, %v1200_v55  ;;  %v1724_v14 = vcombine.high %v11177_v40, %v11183_v43 }
  0xca   : > { %v1240_v18 = vcombine.low %v1218_v8, %v1232_v62  ;;  %v1241_v41 = vcombine.high %v1218_v8, %v1232_v62  ;;  %v2418_v29 = vrot.slane %v2404_v30, %v11008_v25  ;;  %2665 = vmatmul.mubr.bf16.gmra.mrb[16].mxu0 %v1991_v34  ;;  %v547_v40 = vshrl.u32 %v11790_v38, 16 }
  0xcb   : > { %v1185_v2 = vcombine.high %v11862_v36, %v11862_v36  ;;  %v1994_v7 = vcombine.low %v11859_v27, %v11862_v36  ;;  %v9127_v23 = vcombine.high %v11859_v27, %v11862_v36  ;;  %v1208_v42 = vrot.slane %v1201_v35, %v11008_v25 }
  0xcc   : > { %v11875_v55 = vrot.slane %v1240_v18, %v11008_v25  ;;  %v11878_v57 = vrot.slane %v1241_v41, %v11008_v25  ;;  %2720 = vmatprep.mubr.bf16.mxu1 %v2418_v29  ;;  %v1210_v17 = vcombine.high %v11786_v12, %v546_v33  ;;  %v1211_v20 = vcombine.high %v646_v32, %v646_v32 }
  0xcd   : > { %v2004_v43 = vrot.slane %v1994_v7, %v11008_v25  ;;  %v2011_v22 = vrot.slane %v9127_v23, %v11008_v25  ;;  %2721 = vmatmul.mubr.bf16.gmra.mrb[16].mxu1 %v11856_v5  ;;  %v11888_v62 = vcombine.low %v1185_v2, %v1208_v42  ;;  %v549_v30 = vor.u32 %v547_v40, %v11808_v6 }
  0xce   : > { %v1272_v34 = vcombine.high %v11875_v55, %v11875_v55  ;;  %v1996_v8 = vcombine.low %v1208_v42, %v11875_v55  ;;  %10006 = vmatprep.mubr.bf16.mxu1 %v1724_v14  ;;  %v1225_v41 = vrot.slane %v1210_v17, %v11008_v25  ;;  %v1239_v29 = vrot.slane %v1211_v20, %v11008_v25 }
  0xcf   : > { %v2027_v35 = vcombine.high %v2004_v43, %v2011_v22  ;;  %v2026_v18 = vcombine.low %v2004_v43, %v2011_v22  ;;  %v1274_v32 = vcombine.high %v11878_v57, %v11878_v57  ;;  %v9113_v7 = vcombine.low %v11754_v44, %v549_v30  ;;  %v10515_v44 = vld [vmem:[%s14953_s1] sm:$0xff]   ;;  %v10519_v30 = vld [vmem:[%s14953_s1 + $0x48] sm:$0xff]  }
  0xd0   : > { %v1997_v12 = vcombine.low %v11878_v57, %v1272_v34  ;;  %v2018_v33 = vrot.slane %v1996_v8, %v11008_v25  ;;  %v1242_v14 = vcombine.low %v1225_v41, %v1239_v29  ;;  %v1243_v23 = vcombine.high %v1225_v41, %v1239_v29 }
  0xd1   : > { %v2043_v2 = vrot.slane %v2027_v35, %v11008_v25  ;;  %v11900_v6 = vrot.slane %v2026_v18, %v11008_v25  ;;  %v1283_v40 = vrot.slane %v9113_v7, %v11008_v25  ;;  %v1290_v43 = vrot.slane %v645_v49, %v11008_v25 }
  0xd2   : > { %v2025_v42 = vrot.slane %v1997_v12, %v11008_v25  ;;  %v2064_v22 = vcombine.low %v11123_v50, %v11126_v24  ;;  %v11913_v17 = vrot.slane %v1242_v14, %v11008_v25  ;;  %v11916_v20 = vrot.slane %v1243_v23, %v11008_v25 }
  0xd3   : > { %v1858_v34 = vcombine.high %v11574_v45, %v11577_v53  ;;  %v1925_v38 = vcombine.high %v11686_v28, %v11689_v48  ;;  %v1291_v35 = vcombine.low %v1283_v40, %v1290_v43  ;;  %v1992_v53 = vcombine.high %v11835_v52, %v11843_v16  ;;  %v10520_v16 = vld [vmem:[%s14953_s1 + $0x8] sm:$0xff]   ;;  %v10523_v40 = vld [vmem:[%s14953_s1 + $0x50] sm:$0xff]  }
  0xd4   : > { %v2029_v49 = vcombine.high %v2018_v33, %v2025_v42  ;;  %v2028_v8 = vcombine.low %v2018_v33, %v2025_v42  ;;  %v2092_v18 = vrot.slane %v2064_v22, %v11008_v25  ;;  %v1273_v41 = vcombine.high %v11913_v17, %v11913_v17 }
  0xd5   : > { %v1275_v29 = vcombine.high %v11916_v20, %v11916_v20  ;;  %v2061_v45 = vcombine.low %v1274_v32, %v11913_v17  ;;  %v15153_v12 = vcombine.high %v11408_v54, %v11421_v37  ;;  %v11941_v33 = vrot.slane %v1291_v35, %v11008_v25  ;;  %v10525_v35 = vld [vmem:[%s14953_s1 + $0x10] sm:$0xff]  }
  0xd6   : > { %v2057_v28 = vrot.slane %v2029_v49, %v11008_v25  ;;  %v11935_v48 = vrot.slane %v2028_v8, %v11008_v25  ;;  %v3081_v7 = vcombine.low %v11293_v13, %v11299_v63  ;;  %v2062_v32 = vcombine.low %v11916_v20, %v1273_v41 }
  0xd7   : > { %10007 = vmatmul.mubr.bf16.vlgmr.msra.gmra.mrb[20].mxu1 %v15153_v12  ;;  %v2071_v52 = vrot.slane %v2061_v45, %v11008_v25  ;;  %v9160_v54 = vcombine.high %v11293_v13, %v11299_v63  ;;  %v2063_v23 = vcombine.low %v1275_v29, %v11941_v33  ;;  %v3083_v22 = vcombine.low %v11296_v11, %v11302_v39 }
  0xd8   : > { %9535 = vmatpush3.bf16.msra.mxu1 %v10515_v44  ;;  %10010 = vmatprep.mubr.bf16.mxu1 %v1858_v34  ;;  %v2060_v37 = vcombine.low %v2043_v2, %v2057_v28  ;;  %v2058_v14 = vcombine.low %v11900_v6, %v11935_v48  ;;  %v2078_v43 = vrot.slane %v2062_v32, %v11008_v25 }
  0xd9   : > { %9536 = vmatprep.subr.bf16.mxu1 %v10519_v30  ;;  %v11964_v13 = vrot.slane %v3081_v7, %v11008_v25  ;;  %v11967_v63 = vrot.slane %v9160_v54, %v11008_v25  ;;  %v2085_v2 = vrot.slane %v2063_v23, %v11008_v25  ;;  %v9161_v44 = vcombine.high %v11296_v11, %v11302_v39 }
  0xda   : > { %2672 = vmatprep.mubr.bf16.mxu0 %v2060_v37  ;;  %v2059_v34 = vcombine.high %v11900_v6, %v11935_v48  ;;  %v1002_v49 = vcombine.high %v11531_v3, %v11531_v3  ;;  %v2094_v8 = vcombine.high %v2071_v52, %v2078_v43  ;;  %v2093_v30 = vcombine.low %v2071_v52, %v2078_v43  ;;  %v10527_v6 = vld [vmem:[%s14953_s1 + $0x58] sm:$0xff]  }
  0xdb   : > { %2673 = vmatmul.mubr.bf16.gmra.mrb[20].mxu0 %v2058_v14  ;;  %v11980_v41 = vrot.slane %v3083_v22, %v11008_v25  ;;  %v2096_v29 = vcombine.high %v2085_v2, %v2092_v18  ;;  %v2095_v45 = vcombine.low %v2085_v2, %v2092_v18  ;;  %v11983_v11 = vrot.slane %v9161_v44, %v11008_v25  ;;  %v10528_v14 = vld [vmem:[%s14953_s1 + $0x18] sm:$0xff]  }
  0xdc   : > { %9537 = vmatpush3.bf16.msra.mxu1 %v10520_v16  ;;  %v4778_v39 = vcombine.high %v11964_v13, %v11967_v63  ;;  %v2110_v28 = vrot.slane %v2094_v8, %v11008_v25  ;;  %v2103_v48 = vrot.slane %v2093_v30, %v11008_v25  ;;  %v4777_v12 = vcombine.low %v11964_v13, %v11967_v63 }
  0xdd   : > { %9538 = vmatprep.subr.bf16.mxu1 %v10523_v40  ;;  %v1003_v18 = vcombine.high %v11534_v46, %v11534_v46  ;;  %v2124_v7 = vrot.slane %v2096_v29, %v11008_v25  ;;  %v2117_v32 = vrot.slane %v2095_v45, %v11008_v25  ;;  %v4780_v52 = vcombine.high %v11980_v41, %v11983_v11 }
  0xde   : > { %v4794_v16 = vrot.slane %v4778_v39, %v11008_v25  ;;  %v4779_v54 = vcombine.low %v11980_v41, %v11983_v11  ;;  %v12004_v37 = vrot.slane %v4777_v12, %v11008_v25  ;;  %v3149_v44 = vcombine.low %v11537_v60, %v1002_v49  ;;  %v10531_v49 = vld [vmem:[%s14953_s1 + $0x68] sm:$0xff]  }
  0xdf   : > { %10011 = vmatmul.mubr.bf16.gmra.mrb[24].mxu1 %v1925_v38  ;;  %v1004_v38 = vcombine.high %v11537_v60, %v11537_v60  ;;  %v2127_v23 = vcombine.low %v2110_v28, %v2124_v7  ;;  %v2125_v40 = vcombine.low %v2103_v48, %v2117_v32  ;;  %v4808_v43 = vrot.slane %v4780_v52, %v11008_v25 }
  0xe0   : > { %9539 = vmatpush3.bf16.msra.mxu1 %v10525_v35  ;;  %10014 = vmatprep.mubr.bf16.mxu1 %v1992_v53  ;;  %15154 = vst [vmem:[#allocation37_spill] sm:$0xff] %v12004_v37  ;;  %v2126_v22 = vcombine.high %v2103_v48, %v2117_v32  ;;  %v10529_v53 = vld [vmem:[%s14953_s1 + $0x60] sm:$0xff]   ;;  %v12016_v2 = vrot.slane %v4779_v54, %v11008_v25 }
  0xe1   : > { %9540 = vmatprep.subr.bf16.mxu1 %v10527_v6  ;;  %v3150_v8 = vcombine.low %v1004_v38, %v11534_v46  ;;  %v15155_v30 = vcombine.low %v11497_v58, %v11531_v3  ;;  %2680 = vmatprep.mubr.bf16.mxu0 %v2127_v23  ;;  %v4811_v29 = vcombine.low %v4794_v16, %v4808_v43  ;;  %v10530_v3 = vld [vmem:[%s14953_s1 + $0x20] sm:$0xff]   ;;  %v15158_v43 = vld [vmem:[#allocation28_spill] sm:$0xff] }
  0xe2   : > { %v3214_v45 = vcombine.low %v11540_v0, %v1003_v18  ;;  %v2193_v39 = vcombine.high %v11214_v1, %v11246_v31  ;;  %v2260_v6 = vcombine.high %v11429_v26, %v11466_v59  ;;  %v4809_v46 = vcombine.low %v12004_v37, %v12016_v2  ;;  %v10536_v1 = vld [vmem:[%s14953_s1 + $0x38] sm:$0xff]  }
  0xe3   : > { %v12024_v35 = vrot.slane %v15155_v30, %v11008_v25  ;;  %2681 = vmatmul.mubr.bf16.gmra.mrb[24].mxu0 %v2125_v40  ;;  %v12034_v60 = vrot.slane %v3149_v44, %v11008_v25  ;;  %v12037_v58 = vrot.slane %v3150_v8, %v11008_v25  ;;  %v3216_v28 = vcombine.low %v11636_v19, %v11639_v47 }
  0xe4   : > { %9541 = vmatpush3.bf16.msra.mxu1 %v10528_v14  ;;  %5462 = vmatprep.mubr.bf16.mxu0 %v4811_v29  ;;  %v12043_v0 = vrot.slane %v3214_v45, %v11008_v25  ;;  %v9162_v48 = vcombine.high %v11636_v19, %v11639_v47  ;;  %v12058_v7 = vrot.slane %v11645_v4, %v11008_v25  ;;  %v15159_v29 = vld [vmem:[#allocation35_spill] sm:$0xff]  ;;  %v15160_v45 = vld [vmem:[#allocation34_spill] sm:$0xff] }
  0xe5   : > { %9542 = vmatprep.subr.bf16.mxu1 %v10529_v53  ;;  %v4813_v12 = vcombine.high %v12024_v35, %v12034_v60  ;;  %v4812_v18 = vcombine.low %v12024_v35, %v12034_v60  ;;  %v3281_v32 = vcombine.low %v11643_v10, %v11746_v9  ;;  %v12067_v47 = vrot.slane %v3216_v28, %v11008_v25  ;;  %v10533_v53 = vld [vmem:[%s14953_s1 + $0x70] sm:$0xff]  }
  0xe6   : > { %v4815_v52 = vcombine.high %v12037_v58, %v12043_v0  ;;  %v4814_v19 = vcombine.low %v12037_v58, %v12043_v0  ;;  %v12070_v16 = vrot.slane %v9162_v48, %v11008_v25 }
  0xe7   : > { %10015 = vmatmul.mubr.bf16.gmra.mrb[28].mxu1 %v2059_v34  ;;  %v4829_v4 = vrot.slane %v4813_v12, %v11008_v25  ;;  %v12074_v54 = vrot.slane %v4812_v18, %v11008_v25  ;;  %v10532_v34 = vld [vmem:[%s14953_s1 + $0x28] sm:$0xff]   ;;  %v12080_v14 = vrot.slane %v3281_v32, %v11008_v25  ;;  %v4848_v40 = vcombine.high %v12058_v7, %v12067_v47 }
  0xe8   : > { %10018 = vmatprep.mubr.bf16.mxu1 %v2126_v22  ;;  %9543 = vmatpush3.bf16.msra.mxu1 %v10530_v3  ;;  %v4843_v38 = vrot.slane %v4815_v52, %v11008_v25  ;;  %v12084_v23 = vrot.slane %v4814_v19, %v11008_v25  ;;  %v4847_v8 = vcombine.low %v12058_v7, %v12067_v47  ;;  %v10534_v19 = vld [vmem:[%s14953_s1 + $0x30] sm:$0xff]  }
  0xe9   : > { %15156 = vst [vmem:[#allocation38_spill] sm:$0xff] %v12074_v54  ;;  %9544 = vmatprep.subr.bf16.mxu1 %v10531_v49  ;;  %v4850_v44 = vcombine.high %v12070_v16, %v12080_v14  ;;  %v4849_v30 = vcombine.low %v12070_v16, %v12080_v14  ;;  %v4864_v12 = vrot.slane %v4848_v40, %v11008_v25 }
  0xea   : > { %15157 = vst [vmem:[#allocation39_spill] sm:$0xff] %v12084_v23  ;;  %v4846_v49 = vcombine.low %v4829_v4, %v4843_v38  ;;  %v4844_v28 = vcombine.low %v12074_v54, %v12084_v23  ;;  %v12108_v32 = vrot.slane %v4847_v8, %v11008_v25  ;;  %v12117_v4 = vld [vmem:[%s10973_s9] sm:$0xf]  ;;  %v313_v38 = vld [vmem:[%s10973_s9 + $0x4] sm:$0xf]  ;;  %v10535_v8 = vld [vmem:[%s14953_s1 + $0x78] sm:$0xff]   ;;  %v12208_v23 = vrot.slane %v11888_v62, %v11008_v25 }
  0xeb   : > { %5463 = vmatmul.mubr.bf16.vlgmr.msra.gmra.mrb[28].mxu0 %v4809_v46  ;;  %v4878_v18 = vrot.slane %v4850_v44, %v11008_v25  ;;  %v12111_v52 = vrot.slane %v4849_v30, %v11008_v25  ;;  %v1182_v46 = vcombine.high %v11801_v15, %v11801_v15  ;;  %v9163_v44 = vcombine.high %v11643_v10, %v11746_v9  ;;  %v12130_v30 = vld [vmem:[%s10973_s9 + $0x8] sm:$0x3]  ;;  %v10629_v10 = vld [vmem:[%s14953_s1 + $0x200] sm:$0xff]  }
  0xec   : > { %9545 = vmatpush3.bf16.msra.mxu1 %v10532_v34  ;;  %15161 = vst [vmem:[#allocation28_spill] sm:$0xff] %v12108_v32  ;;  %5470 = vmatprep.mubr.bf16.mxu0 %v4846_v49  ;;  %v15163_v34 = vld [vmem:[#allocation36_spill] sm:$0xff]  ;;  %v10542_v9 = vld [vmem:[%s14953_s1 + $0x208] sm:$0xff]   ;;  %v12167_v31 = vcombine.low %v12130_v30, %v12130_v30  ;;  %v15166_v62 = vcombine.high %v15158_v43, %v11568_v21 }
  0xed   : > { %15162 = vst [vmem:[#allocation35_spill] sm:$0xff] %v12111_v52  ;;  %9546 = vmatprep.subr.bf16.mxu1 %v10533_v53  ;;  %v1184_v40 = vcombine.high %v15163_v34, %v15163_v34  ;;  %v4881_v48 = vcombine.low %v4864_v12, %v4878_v18  ;;  %v12138_v53 = vrot.slane %v3283_v51, %v11008_v25 }
  0xee   : > { %10071 = vmatpush3.bf16.msra.mxu0 %v10629_v10  ;;  %v3284_v61 = vcombine.low %v15163_v34, %v1182_v46  ;;  %v12153_v15 = vrot.slane %v9163_v44, %v11008_v25  ;;  %v12157_v12 = vcombine.low %v12117_v4, %v313_v38  ;;  %v3351_v18 = vcombine.low %v11875_v55, %v11878_v57 }
  0xef   : > { %10019 = vmatmul.mubr.bf16.gmra.mrb[32].mxu1 %v2193_v39  ;;  %v3348_v51 = vcombine.low %v1184_v40, %v11859_v27  ;;  %v1183_v39 = vcombine.high %v11859_v27, %v11859_v27  ;;  %v453_v46 = vshll.u32 %v12167_v31, 16  ;;  %v12190_v40 = vld [vmem:[%s14953_s1 + $0x80] sm:$0xff]   ;;  %10072 = vmatprep.subr.bf16.mxu0 %v10542_v9  ;;  %v627_v49 = vrot.slane %v12167_v31, 1 }
  0xf0   : > { %10022 = vmatprep.mubr.bf16.mxu1 %v2260_v6  ;;  %9547 = vmatpush3.bf16.msra.mxu1 %v10534_v19  ;;  %v12174_v38 = vrot.slane %v3284_v61, %v11008_v25  ;;  %v4883_v59 = vcombine.high %v12153_v15, %v12138_v53  ;;  %v4882_v6 = vcombine.low %v12153_v15, %v12138_v53  ;;  %v446_v19 = vshrl.u32 %v12157_v12, 16 }
  0xf1   : > { %v12177_v26 = vrot.slane %v3348_v51, %v11008_v25  ;;  %9548 = vmatprep.subr.bf16.mxu1 %v10535_v8  ;;  %v448_v27 = vshll.u32 %v12157_v12, 16  ;;  %v626_v34 = vrot.slane %v12157_v12, 1  ;;  %v455_v42 = vrot.slane %v453_v46, 1 }
  0xf2   : > { %v4899_v10 = vrot.slane %v4883_v59, %v11008_v25  ;;  %v12198_v61 = vrot.slane %v4882_v6, %v11008_v25  ;;  %10073 = vmatpush3.bf16.msra.mxu0 %v10542_v9  ;;  %v3349_v3 = vcombine.low %v11862_v36, %v1183_v39  ;;  %v12211_v9 = vrot.slane %v3351_v18, %v11008_v25 }
  0xf3   : > { %v4885_v44 = vcombine.high %v12174_v38, %v12177_v26  ;;  %v4884_v8 = vcombine.low %v12174_v38, %v12177_v26  ;;  %5471 = vmatmul.mubr.bf16.gmra.mrb[32].mxu0 %v4844_v28  ;;  %v450_v51 = vrot.slane %v448_v27, 1  ;;  %v10544_v28 = vld [vmem:[%s14953_s1 + $0x210] sm:$0xff]   ;;  %v628_v36 = vsel %vm15101_vm1, %v626_v34, %v627_v49 }
  0xf4   : > { %15164 = vst [vmem:[#allocation34_spill] sm:$0xff] %v12198_v61  ;;  %9549 = vmatpush3.bf16.msra.mxu1 %v10536_v1  ;;  %5478 = vmatprep.mubr.bf16.mxu0 %v4881_v48  ;;  %v12218_v48 = vrot.slane %v3349_v3, %v11008_v25  ;;  %v9164_v39 = vcombine.high %v11875_v55, %v11878_v57  ;;  %v10546_v3 = vld [vmem:[%s14953_s1 + $0x218] sm:$0xff]  }
  0xf5   : > { %v4913_v22 = vrot.slane %v4885_v44, %v11008_v25  ;;  %v12204_v59 = vrot.slane %v4884_v8, %v11008_v25  ;;  %v451_v1 = vor.u32 %v450_v51, %v446_v19  ;;  %10030 = vmatprep.subr.bf16.mxu1 %v12190_v40  ;;  %v2858_v27 = vcombine.high %v628_v36, %v628_v36 }
  0xf6   : > { %v2879_v19 = vrot.slane %v628_v36, %v11008_v25  ;;  %v15167_v55 = vcombine.high %v15160_v45, %v15159_v29  ;;  %v12237_v21 = vrot.slane %v9164_v39, %v11008_v25  ;;  %v4918_v43 = vcombine.high %v12218_v48, %v12208_v23  ;;  %10074 = vmatprep.subr.bf16.mxu0 %v10544_v28  ;;  %v15169_v36 = vld [vmem:[#allocation11_spill] sm:$0xff] }
  0xf7   : > { %15165 = vst [vmem:[#allocation36_spill] sm:$0xff] %v12204_v59  ;;  %10023 = vmatmul.mubr.bf16.gmra.mrb[36].mxu1 %v15166_v62  ;;  %v4916_v18 = vcombine.low %v4899_v10, %v4913_v22  ;;  %v456_v57 = vsel %vm15100_vm0, %v451_v1, %v455_v42  ;;  %v4917_v22 = vcombine.low %v12218_v48, %v12208_v23  ;;  %v457_v29 = vshrl.u32 %v12167_v31, 16 }
  0xf8   : > { %10026 = vmatprep.mubr.bf16.mxu1 %v15167_v55  ;;  %v9156_v46 = vcombine.low %v12117_v4, %v456_v57  ;;  %v2857_v34 = vcombine.high %v12157_v12, %v456_v57  ;;  %v2886_v44 = vrot.slane %v2858_v27, %v11008_v25  ;;  %v4920_v45 = vcombine.high %v12211_v9, %v12237_v21  ;;  %v15172_v55 = vld [vmem:[#allocation12_spill] sm:$0xff]  ;;  %v15173_v57 = vld [vmem:[#allocation13_spill] sm:$0xff] }
  0xf9   : > { %v4934_v10 = vrot.slane %v4918_v43, %v11008_v25  ;;  %v4919_v8 = vcombine.low %v12211_v9, %v12237_v21  ;;  %v12253_v51 = vrot.slane %v4917_v22, %v11008_v25  ;;  %10075 = vmatpush3.bf16.msra.mxu0 %v10544_v28  ;;  %v459_v1 = vor.u32 %v457_v29, %v455_v42  ;;  %v10550_v42 = vld [vmem:[%s14953_s1 + $0x220] sm:$0xff]  }
  0xfa   : > { %v2865_v4 = vrot.slane %v9156_v46, %v11008_v25  ;;  %v2872_v12 = vrot.slane %v2857_v34, %v11008_v25  ;;  %v822_v31 = vcombine.high %v15169_v36, %v15169_v36  ;;  %10076 = vmatprep.subr.bf16.mxu0 %v10546_v3  ;;  %v15170_v39 = vcombine.low %v12108_v32, %v12111_v52 }
  0xfb   : > { %15168 = vst [vmem:[#allocation40_spill] sm:$0xff] %v12253_v51  ;;  %v4948_v62 = vrot.slane %v4920_v45, %v11008_v25  ;;  %v12264_v27 = vrot.slane %v4919_v8, %v11008_v25  ;;  %v823_v28 = vcombine.high %v15172_v55, %v15172_v55  ;;  %v824_v43 = vcombine.high %v15173_v57, %v15173_v57 }
  0xfc   : > { %5479 = vmatmul.mubr.bf16.gmra.mrb[36].mxu0 %v15170_v39  ;;  %v2887_v22 = vcombine.low %v2865_v4, %v2879_v19  ;;  %v2888_v46 = vcombine.high %v2865_v4, %v2879_v19  ;;  %v2889_v34 = vcombine.low %v2872_v12, %v2886_v44  ;;  %v2890_v29 = vcombine.high %v2872_v12, %v2886_v44 }
  0xfd   : > { %15171 = vst [vmem:[#allocation11_spill] sm:$0xff] %v12264_v27  ;;  %5486 = vmatprep.mubr.bf16.mxu0 %v4916_v18  ;;  %v4951_v39 = vcombine.low %v4934_v10, %v4948_v62  ;;  %v4949_v45 = vcombine.low %v12253_v51, %v12264_v27  ;;  %v9157_v8 = vcombine.low %v12130_v30, %v459_v1  ;;  %v10551_v10 = vld [vmem:[%s14953_s1 + $0x228] sm:$0xff]  }
  0xfe   : > { %v2937_v6 = vrot.slane %v627_v49, %v11008_v25  ;;  %10077 = vmatpush3.bf16.msra.mxu0 %v10546_v3  ;;  %v15174_v54 = vcombine.high %v11856_v5, %v11856_v5  ;;  %v2897_v32 = vrot.slane %v2887_v22, %v11008_v25  ;;  %v2904_v18 = vrot.slane %v2889_v34, %v11008_v25  ;;  %v15175_v5 = vld [vmem:[#allocation14_spill] sm:$0xff] }
  0xff   : > { %v2911_v19 = vrot.slane %v2888_v46, %v11008_v25  ;;  %v2918_v44 = vrot.slane %v2890_v29, %v11008_v25  ;;  %v2930_v30 = vrot.slane %v9157_v8, %v11008_v25  ;;  %v3014_v49 = vcombine.low %v15173_v57, %v822_v31  ;;  %10078 = vmatprep.subr.bf16.mxu0 %v10550_v42 }
 0x100   : > { %10027 = vmatmul.mubr.bf16.gmra.mrb[40].mxu1 %v15174_v54  ;;  %v3015_v3 = vcombine.low %v824_v43, %v15172_v55  ;;  %v3016_v54 = vcombine.low %v15175_v5, %v823_v28 }
 0x101   : > { %v2946_v4 = vcombine.low %v2897_v32, %v2911_v19  ;;  %v9158_v12 = vcombine.high %v2897_v32, %v2911_v19  ;;  %v2948_v1 = vcombine.low %v2904_v18, %v2918_v44  ;;  %v9159_v62 = vcombine.high %v2904_v18, %v2918_v44  ;;  %v10552_v32 = vld [vmem:[%s14953_s1 + $0x230] sm:$0xff]  }
 0x102   : > { %v2938_v22 = vcombine.low %v2930_v30, %v2937_v6  ;;  %v3030_v46 = vrot.slane %v3014_v49, %v11008_v25  ;;  %v3037_v34 = vrot.slane %v3015_v3, %v11008_v25  ;;  %v3044_v29 = vrot.slane %v3016_v54, %v11008_v25  ;;  %10079 = vmatpush3.bf16.msra.mxu0 %v10550_v42 }
 0x103   : > { %v2956_v8 = vrot.slane %v2946_v4, %v11008_v25  ;;  %v2963_v31 = vrot.slane %v9158_v12, %v11008_v25  ;;  %v2970_v55 = vrot.slane %v2948_v1, %v11008_v25  ;;  %v2977_v28 = vrot.slane %v9159_v62, %v11008_v25  ;;  %10080 = vmatprep.subr.bf16.mxu0 %v10551_v10 }
 0x104   : > { %v15176_v6 = vcombine.low %v12198_v61, %v12204_v59  ;;  %v2945_v57 = vrot.slane %v2938_v22, %v11008_v25  ;;  %v3048_v43 = vcombine.high %v3037_v34, %v3044_v29  ;;  %v1362_v42 = vcombine.high %v11123_v50, %v11123_v50  ;;  %v345_v61 = vld [vmem:[%s10973_s9 + $0x84] sm:$0xf]  ;;  %v347_v59 = vld [vmem:[%s10973_s9 + $0x8c] sm:$0x3] }
 0x105   : > { %v3416_v18 = vcombine.low %v11913_v17, %v11916_v20  ;;  %v2978_v19 = vcombine.low %v2956_v8, %v2963_v31  ;;  %v2979_v44 = vcombine.high %v2956_v8, %v2963_v31  ;;  %v2980_v30 = vcombine.low %v2970_v55, %v2977_v28 }
 0x106   : > { %5487 = vmatmul.mubr.bf16.gmra.mrb[40].mxu0 %v15176_v6  ;;  %v2981_v49 = vcombine.high %v2970_v55, %v2977_v28  ;;  %v3013_v3 = vcombine.low %v2945_v57, %v15169_v36  ;;  %v3076_v54 = vrot.slane %v3048_v43, %v11008_v25  ;;  %v9165_v4 = vcombine.high %v11913_v17, %v11916_v20 }
 0x107   : > { %5494 = vmatprep.mubr.bf16.mxu0 %v4951_v39  ;;  %v12314_v12 = vrot.slane %v3416_v18, %v11008_v25  ;;  %10081 = vmatpush3.bf16.msra.mxu0 %v10551_v10  ;;  %v2995_v1 = vrot.slane %v2979_v44, %v11008_v25  ;;  %v12319_v22 = vrot.slane %v2978_v19, %v11008_v25 }
 0x108   : > { %v3009_v62 = vrot.slane %v2981_v49, %v11008_v25  ;;  %v12322_v39 = vrot.slane %v2980_v30, %v11008_v25  ;;  %10082 = vmatprep.subr.bf16.mxu0 %v10552_v32  ;;  %v3023_v36 = vrot.slane %v3013_v3, %v11008_v25  ;;  %v12326_v8 = vrot.slane %v9165_v4, %v11008_v25 }
 0x109   : > { %15177 = vst [vmem:[#allocation12_spill] sm:$0xff] %v12319_v22  ;;  %v15179_v17 = vcombine.low %v11941_v33, %v11123_v50  ;;  %v3482_v10 = vcombine.low %v11126_v24, %v1362_v42  ;;  %v3047_v28 = vcombine.low %v3037_v34, %v3044_v29  ;;  %v825_v6 = vcombine.high %v15175_v5, %v15175_v5  ;;  %v10541_v33 = vld [vmem:[%s14953_s1 + $0x88] sm:$0xff]  }
 0x10a   : > { %15178 = vst [vmem:[#allocation13_spill] sm:$0xff] %v12322_v39  ;;  %v3012_v31 = vcombine.low %v2995_v1, %v3009_v62  ;;  %v3010_v55 = vcombine.low %v12319_v22, %v12322_v39  ;;  %v3046_v57 = vcombine.high %v3023_v36, %v3030_v46  ;;  %v4953_v18 = vcombine.high %v12314_v12, %v12326_v8  ;;  %v15181_v34 = vld [vmem:[#allocation19_spill] sm:$0xff] }
 0x10b   : > { %v12332_v20 = vrot.slane %v15179_v17, %v11008_v25  ;;  %v12340_v43 = vrot.slane %v3482_v10, %v11008_v25  ;;  %v3045_v50 = vcombine.low %v3023_v36, %v3030_v46  ;;  %10083 = vmatpush3.bf16.msra.mxu0 %v10552_v32  ;;  %v12348_v42 = vrot.slane %v3047_v28, %v11008_v25  ;;  %v12358_v46 = vld [vmem:[%s14953_s1 + $0x238] sm:$0xff]   ;;  %v15183_v17 = vld [vmem:[#allocation15_spill] sm:$0xff] }
 0x10c   : > { %3919 = vmatprep.mubr.bf16.mxu1 %v3012_v31  ;;  %v4952_v5 = vcombine.low %v12314_v12, %v12326_v8  ;;  %v3080_v29 = vcombine.low %v825_v6, %v15181_v34  ;;  %v3115_v19 = vcombine.high %v11967_v63, %v11980_v41  ;;  %v3062_v32 = vrot.slane %v3046_v57, %v11008_v25  ;;  %v15186_v34 = vld [vmem:[#allocation17_spill] sm:$0xff] }
 0x10d   : > { %15180 = vst [vmem:[#allocation14_spill] sm:$0xff] %v12348_v42  ;;  %3920 = vmatmul.mubr.bf16.vlgmr.msra.gmra.mrb[44].mxu1 %v3010_v55  ;;  %v4955_v44 = vcombine.high %v12332_v20, %v12340_v43  ;;  %v4969_v30 = vrot.slane %v4953_v18, %v11008_v25  ;;  %v12369_v49 = vrot.slane %v3045_v50, %v11008_v25  ;;  %v15184_v18 = vld [vmem:[#allocation16_spill] sm:$0xff] }
 0x10e   : > { %5495 = vmatmul.mubr.bf16.gmra.mrb[44].mxu0 %v4949_v45  ;;  %10031 = vmatpush3.bf16.msra.mxu1 %v12190_v40  ;;  %v4954_v3 = vcombine.low %v12332_v20, %v12340_v43  ;;  %v12374_v4 = vrot.slane %v4952_v5, %v11008_v25  ;;  %v3090_v45 = vrot.slane %v3080_v29, %v11008_v25  ;;  %v15185_v5 = vld [vmem:[#allocation21_spill] sm:$0xff] }
 0x10f   : > { %15182 = vst [vmem:[#allocation19_spill] sm:$0xff] %v12369_v49  ;;  %v3079_v1 = vcombine.low %v3062_v32, %v3076_v54  ;;  %v4983_v62 = vrot.slane %v4955_v44, %v11008_v25  ;;  %10032 = vmatprep.subr.bf16.mxu1 %v10541_v33  ;;  %v3143_v36 = vrot.slane %v3115_v19, %v11008_v25  ;;  %v10543_v54 = vld [vmem:[%s14953_s1 + $0x90] sm:$0xff]  }
 0x110   : > { %v1363_v40 = vcombine.high %v15183_v17, %v15183_v17  ;;  %v3077_v10 = vcombine.low %v12369_v49, %v12348_v42  ;;  %v12386_v55 = vrot.slane %v4954_v3, %v11008_v25  ;;  %v3113_v28 = vcombine.high %v3090_v45, %v11964_v13  ;;  %10084 = vmatprep.subr.bf16.mxu0 %v12358_v46  ;;  %v15195_v49 = vld [vmem:[#allocation32_spill] sm:$0xff] }
 0x111   : > { %3927 = vmatprep.mubr.bf16.mxu1 %v3079_v1  ;;  %v4986_v6 = vcombine.low %v4969_v30, %v4983_v62  ;;  %v1364_v57 = vcombine.high %v11126_v24, %v11126_v24  ;;  %v3549_v29 = vcombine.low %v15186_v34, %v15185_v5  ;;  %v3112_v44 = vcombine.low %v3090_v45, %v11964_v13 }
 0x112   : > { %v3484_v50 = vcombine.low %v15184_v18, %v1363_v40  ;;  %v4984_v19 = vcombine.low %v12374_v4, %v12386_v55  ;;  %10033 = vmatpush3.bf16.msra.mxu1 %v10541_v33  ;;  %v3129_v32 = vrot.slane %v3113_v28, %v11008_v25  ;;  %v3114_v3 = vcombine.low %v11967_v63, %v11980_v41  ;;  %v10545_v41 = vld [vmem:[%s14953_s1 + $0x98] sm:$0xff]  }
 0x113   : > { %5502 = vmatprep.mubr.bf16.mxu0 %v4986_v6  ;;  %v3483_v30 = vcombine.low %v1364_v57, %v15183_v17  ;;  %v12409_v1 = vrot.slane %v3549_v29, %v11008_v25  ;;  %v3180_v62 = vcombine.high %v11983_v11, %v12024_v35  ;;  %v12414_v40 = vrot.slane %v3112_v44, %v11008_v25 }
 0x114   : > { %v12406_v24 = vrot.slane %v3484_v50, %v11008_v25  ;;  %v3146_v33 = vcombine.low %v3129_v32, %v3143_v36  ;;  %v12417_v13 = vrot.slane %v3114_v3, %v11008_v25  ;;  %v3182_v63 = vcombine.high %v12034_v60, %v12037_v58  ;;  %10034 = vmatprep.subr.bf16.mxu1 %v10543_v54  ;;  %v15187_v36 = vld [vmem:[#allocation18_spill] sm:$0xff] }
 0x115   : > { %3928 = vmatmul.mubr.bf16.gmra.mrb[48].mxu1 %v3077_v10  ;;  %v12425_v45 = vrot.slane %v3483_v30, %v11008_v25  ;;  %v4990_v17 = vcombine.high %v15187_v36, %v12409_v1  ;;  %v4989_v28 = vcombine.low %v15187_v36, %v12409_v1  ;;  %v3196_v57 = vrot.slane %v3180_v62, %v11008_v25  ;;  %v15188_v3 = vld [vmem:[#allocation22_spill] sm:$0xff]  ;;  %v15189_v30 = vld [vmem:[#allocation20_spill] sm:$0xff] }
 0x116   : > { %5503 = vmatmul.mubr.bf16.gmra.mrb[48].mxu0 %v4984_v19  ;;  %3935 = vmatprep.mubr.bf16.mxu1 %v3146_v33  ;;  %v3144_v6 = vcombine.low %v12414_v40, %v12417_v13  ;;  %v3210_v18 = vrot.slane %v3182_v63, %v11008_v25  ;;  %v9166_v10 = vcombine.high %v15186_v34, %v15185_v5  ;;  %v10549_v34 = vld [vmem:[%s14953_s1 + $0xa0] sm:$0xff]  }
 0x117   : > { %v4988_v50 = vcombine.high %v12425_v45, %v12406_v24  ;;  %v5018_v29 = vrot.slane %v4990_v17, %v11008_v25  ;;  %v4987_v19 = vcombine.low %v12425_v45, %v12406_v24  ;;  %v12443_v32 = vrot.slane %v4989_v28, %v11008_v25  ;;  %10035 = vmatpush3.bf16.msra.mxu1 %v10543_v54  ;;  %v15190_v54 = vld [vmem:[#allocation23_spill] sm:$0xff]  ;;  %v15191_v28 = vld [vmem:[#allocation24_spill] sm:$0xff] }
 0x118   : > { %v3213_v44 = vcombine.low %v3196_v57, %v3210_v18  ;;  %v3551_v62 = vcombine.low %v15189_v30, %v15188_v3  ;;  %v9167_v33 = vcombine.high %v15189_v30, %v15188_v3  ;;  %v12450_v5 = vrot.slane %v9166_v10, %v11008_v25  ;;  %10036 = vmatprep.subr.bf16.mxu1 %v10545_v41 }
 0x119   : > { %v5004_v63 = vrot.slane %v4988_v50, %v11008_v25  ;;  %v12457_v17 = vrot.slane %v4987_v19, %v11008_v25  ;;  %v15192_v57 = vcombine.low %v15190_v54, %v15191_v28  ;;  %v3179_v10 = vcombine.low %v11983_v11, %v12024_v35  ;;  %10085 = vmatpush3.bf16.msra.mxu0 %v12358_v46 }
 0x11a   : > { %v12469_v3 = vrot.slane %v3551_v62, %v11008_v25  ;;  %v12472_v30 = vrot.slane %v9167_v33, %v11008_v25  ;;  %v3181_v50 = vcombine.low %v12034_v60, %v12037_v58  ;;  %v3247_v19 = vcombine.high %v12043_v0, %v12058_v7  ;;  %v10553_v62 = vld [vmem:[%s14953_s1 + $0xa8] sm:$0xff]  }
 0x11b   : > { %v12463_v18 = vrot.slane %v15192_v57, %v11008_v25  ;;  %v5021_v54 = vcombine.low %v5004_v63, %v5018_v29  ;;  %v5019_v57 = vcombine.low %v12457_v17, %v12443_v32  ;;  %v12481_v11 = vrot.slane %v3179_v10, %v11008_v25  ;;  %10037 = vmatpush3.bf16.msra.mxu1 %v10545_v41 }
 0x11c   : > { %v3249_v35 = vcombine.high %v12067_v47, %v12070_v16  ;;  %v5023_v46 = vcombine.high %v12450_v5, %v12469_v3  ;;  %v12490_v58 = vrot.slane %v3181_v50, %v11008_v25  ;;  %v5022_v29 = vcombine.low %v12450_v5, %v12469_v3  ;;  %10038 = vmatprep.subr.bf16.mxu1 %v10549_v34 }
 0x11d   : > { %v5025_v60 = vcombine.high %v12472_v30, %v12463_v18  ;;  %5510 = vmatprep.mubr.bf16.mxu0 %v5021_v54  ;;  %3936 = vmatmul.mubr.bf16.gmra.mrb[52].mxu1 %v3144_v6  ;;  %v5024_v41 = vcombine.low %v12472_v30, %v12463_v18  ;;  %v3263_v33 = vrot.slane %v3247_v19, %v11008_v25 }
 0x11e   : > { %v3277_v63 = vrot.slane %v3249_v35, %v11008_v25  ;;  %5511 = vmatmul.mubr.bf16.gmra.mrb[52].mxu0 %v5019_v57  ;;  %3943 = vmatprep.mubr.bf16.mxu1 %v3213_v44  ;;  %v5039_v10 = vrot.slane %v5023_v46, %v11008_v25  ;;  %v3211_v31 = vcombine.low %v12481_v11, %v12490_v58  ;;  %v15193_v44 = vld [vmem:[#allocation26_spill] sm:$0xff]  ;;  %v15194_v46 = vld [vmem:[#allocation25_spill] sm:$0xff] }
 0x11f   : > { %v5053_v50 = vrot.slane %v5025_v60, %v11008_v25  ;;  %v12506_v42 = vrot.slane %v5022_v29, %v11008_v25  ;;  %v12509_v6 = vrot.slane %v5024_v41, %v11008_v25  ;;  %v1542_v19 = vcombine.high %v15191_v28, %v15191_v28  ;;  %10039 = vmatpush3.bf16.msra.mxu1 %v10549_v34  ;;  %v10555_v29 = vld [vmem:[%s14953_s1 + $0xb0] sm:$0xff]  }
 0x120   : > { %v3280_v54 = vcombine.low %v3263_v33, %v3277_v63  ;;  %v1543_v35 = vcombine.high %v15193_v44, %v15193_v44  ;;  %v1544_v60 = vcombine.high %v15194_v46, %v15194_v46  ;;  %v12519_v22 = vrot.slane %v15195_v49, %v11008_v25  ;;  %10040 = vmatprep.subr.bf16.mxu1 %v10553_v62  ;;  %v15197_v63 = vld [vmem:[#allocation27_spill] sm:$0xff] }
 0x121   : > { %v5056_v57 = vcombine.low %v5039_v10, %v5053_v50  ;;  %v5054_v28 = vcombine.low %v12506_v42, %v12509_v6  ;;  %v3617_v34 = vcombine.low %v15194_v46, %v1542_v19  ;;  %v3246_v41 = vcombine.low %v12043_v0, %v12058_v7  ;;  %v15198_v7 = vld [vmem:[#allocation31_spill] sm:$0xff] }
 0x122   : > { %15196 = vst [vmem:[#allocation15_spill] sm:$0xff] %v12519_v22  ;;  %v3248_v33 = vcombine.low %v12067_v47, %v12070_v16  ;;  %v3618_v49 = vcombine.low %v1544_v60, %v15193_v44  ;;  %v3619_v10 = vcombine.low %v15197_v63, %v1543_v35  ;;  %v3314_v50 = vcombine.high %v12080_v14, %v12153_v15  ;;  %v15199_v47 = vld [vmem:[#allocation29_spill] sm:$0xff] }
 0x123   : > { %5518 = vmatprep.mubr.bf16.mxu0 %v5056_v57  ;;  %v3316_v39 = vcombine.high %v12138_v53, %v12174_v38  ;;  %v12538_v51 = vrot.slane %v3617_v34, %v11008_v25  ;;  %v12541_v19 = vrot.slane %v3246_v41, %v11008_v25  ;;  %v5092_v16 = vcombine.low %v15199_v47, %v15198_v7  ;;  %v10556_v60 = vld [vmem:[%s14953_s1 + $0xb8] sm:$0xff]  }
 0x124   : > { %v12544_v0 = vrot.slane %v3248_v33, %v11008_v25  ;;  %10041 = vmatpush3.bf16.msra.mxu1 %v10553_v62  ;;  %v12549_v57 = vrot.slane %v3618_v49, %v11008_v25  ;;  %v12552_v44 = vrot.slane %v3619_v10, %v11008_v25  ;;  %v3330_v35 = vrot.slane %v3314_v50, %v11008_v25  ;;  %v15200_v41 = vld [vmem:[#allocation33_spill] sm:$0xff]  ;;  %v15201_v33 = vld [vmem:[#allocation30_spill] sm:$0xff] }
 0x125   : > { %v3344_v46 = vrot.slane %v3316_v39, %v11008_v25  ;;  %10042 = vmatprep.subr.bf16.mxu1 %v10555_v29  ;;  %3944 = vmatmul.mubr.bf16.gmra.mrb[56].mxu1 %v3211_v31  ;;  %v9242_v62 = vcombine.high %v15199_v47, %v15198_v7  ;;  %v5094_v49 = vcombine.low %v15201_v33, %v15200_v41 }
 0x126   : > { %v3278_v34 = vcombine.low %v12541_v19, %v12544_v0  ;;  %v9243_v63 = vcombine.high %v15201_v33, %v15200_v41  ;;  %5519 = vmatmul.mubr.bf16.gmra.mrb[56].mxu0 %v5054_v28  ;;  %3951 = vmatprep.mubr.bf16.mxu1 %v3280_v54  ;;  %v5058_v39 = vcombine.high %v12538_v51, %v12549_v57 }
 0x127   : > { %v5060_v31 = vcombine.high %v12552_v44, %v12519_v22  ;;  %v5057_v10 = vcombine.low %v12538_v51, %v12549_v57  ;;  %v5059_v50 = vcombine.low %v12552_v44, %v12519_v22  ;;  %v3347_v7 = vcombine.low %v3330_v35, %v3344_v46 }
 0x128   : > { %v5102_v47 = vrot.slane %v5092_v16, %v11008_v25  ;;  %v5109_v41 = vrot.slane %v9242_v62, %v11008_v25  ;;  %10043 = vmatpush3.bf16.msra.mxu1 %v10555_v29  ;;  %v5074_v54 = vrot.slane %v5058_v39, %v11008_v25  ;;  %v5116_v27 = vrot.slane %v5094_v49, %v11008_v25  ;;  %v346_v49 = vld [vmem:[%s10973_s9 + $0x88] sm:$0xf] }
 0x129   : > { %v5088_v28 = vrot.slane %v5060_v31, %v11008_v25  ;;  %v12580_v33 = vrot.slane %v5057_v10, %v11008_v25  ;;  %10044 = vmatprep.subr.bf16.mxu1 %v10556_v60  ;;  %v12584_v35 = vrot.slane %v5059_v50, %v11008_v25  ;;  %v5123_v16 = vrot.slane %v9243_v63, %v11008_v25 }
 0x12a   : > { %v5125_v46 = vcombine.high %v5102_v47, %v5109_v41  ;;  %v3313_v29 = vcombine.low %v12080_v14, %v12153_v15  ;;  %v3315_v39 = vcombine.low %v12138_v53, %v12174_v38  ;;  %v5124_v31 = vcombine.low %v5102_v47, %v5109_v41 }
 0x12b   : > { %v5091_v62 = vcombine.low %v5074_v54, %v5088_v28  ;;  %v3381_v10 = vcombine.high %v12177_v26, %v12218_v48  ;;  %v5089_v50 = vcombine.low %v12580_v33, %v12584_v35  ;;  %v5127_v52 = vcombine.high %v5116_v27, %v5123_v16 }
 0x12c   : > { %v5141_v63 = vrot.slane %v5125_v46, %v11008_v25  ;;  %v12600_v22 = vrot.slane %v3313_v29, %v11008_v25  ;;  %10045 = vmatpush3.bf16.msra.mxu1 %v10556_v60  ;;  %v12603_v14 = vrot.slane %v3315_v39, %v11008_v25  ;;  %v5126_v53 = vcombine.low %v5116_v27, %v5123_v16 }
 0x12d   : > { %5526 = vmatprep.mubr.bf16.mxu0 %v5091_v62  ;;  %v12606_v15 = vrot.slane %v5124_v31, %v11008_v25  ;;  %v3383_v38 = vcombine.high %v12208_v23, %v12211_v9  ;;  %3952 = vmatmul.mubr.bf16.gmra.mrb[60].mxu1 %v3278_v34  ;;  %v5155_v47 = vrot.slane %v5127_v52, %v11008_v25 }
 0x12e   : > { %v3397_v41 = vrot.slane %v3381_v10, %v11008_v25  ;;  %v9052_v54 = vcombine.low %v345_v61, %v346_v49  ;;  %v9053_v28 = vcombine.low %v347_v59, %v347_v59  ;;  %5527 = vmatmul.mubr.bf16.gmra.mrb[60].mxu0 %v5089_v50  ;;  %3959 = vmatprep.mubr.bf16.mxu1 %v3347_v7 }
 0x12f   : > { %v3345_v60 = vcombine.low %v12600_v22, %v12603_v14  ;;  %v12615_v27 = vrot.slane %v5126_v53, %v11008_v25  ;;  %v3411_v16 = vrot.slane %v3383_v38, %v11008_v25  ;;  %v5158_v46 = vcombine.low %v5141_v63, %v5155_v47 }
 0x130   : > { %v611_v29 = vshrl.u32 %v9052_v54, 16  ;;  %v613_v62 = vshll.u32 %v9052_v54, 16  ;;  %v618_v34 = vshll.u32 %v9053_v28, 16  ;;  %v659_v31 = vrot.slane %v9052_v54, 1 }
 0x131   : > { %v5156_v52 = vcombine.low %v12606_v15, %v12615_v27  ;;  %v3414_v39 = vcombine.low %v3397_v41, %v3411_v16  ;;  %v660_v10 = vrot.slane %v9053_v28, 1  ;;  %5534 = vmatprep.mubr.bf16.mxu0 %v5158_v46  ;;  %v3380_v50 = vcombine.low %v12177_v26, %v12218_v48 }
 0x132   : > { %v615_v7 = vrot.slane %v613_v62, 1  ;;  %v620_v49 = vrot.slane %v618_v34, 1  ;;  %v3382_v53 = vcombine.low %v12208_v23, %v12211_v9  ;;  %v3448_v38 = vcombine.high %v12237_v21, %v12314_v12 }
 0x133   : > { %v661_v63 = vsel %vm15101_vm1, %v659_v31, %v660_v10  ;;  %v3450_v47 = vcombine.high %v12326_v8, %v12332_v20  ;;  %v622_v41 = vshrl.u32 %v9053_v28, 16  ;;  %v12630_v46 = vrot.slane %v3380_v50, %v11008_v25 }
 0x134   : > { %v616_v16 = vor.u32 %v615_v7, %v611_v29  ;;  %v4689_v37 = vcombine.high %v661_v63, %v661_v63  ;;  %v12633_v62 = vrot.slane %v3382_v53, %v11008_v25  ;;  %v4710_v9 = vrot.slane %v661_v63, %v11008_v25 }
 0x135   : > { %v624_v26 = vor.u32 %v622_v41, %v620_v49  ;;  %3960 = vmatmul.mubr.bf16.gmra.mrb[64].mxu1 %v3345_v60  ;;  %v3464_v48 = vrot.slane %v3448_v38, %v11008_v25  ;;  %v3478_v34 = vrot.slane %v3450_v47, %v11008_v25  ;;  %v4768_v50 = vrot.slane %v660_v10, %v11008_v25 }
 0x136   : > { %v621_v23 = vsel %vm15100_vm0, %v616_v16, %v620_v49  ;;  %5535 = vmatmul.mubr.bf16.gmra.mrb[64].mxu0 %v5156_v52  ;;  %3967 = vmatprep.mubr.bf16.mxu1 %v3414_v39  ;;  %v4717_v31 = vrot.slane %v4689_v37, %v11008_v25  ;;  %v3447_v60 = vcombine.low %v12237_v21, %v12314_v12 }
 0x137   : > { %v9240_v28 = vcombine.low %v345_v61, %v621_v23  ;;  %v4688_v29 = vcombine.high %v9052_v54, %v621_v23  ;;  %v9241_v7 = vcombine.low %v347_v59, %v624_v26  ;;  %v3449_v49 = vcombine.low %v12326_v8, %v12332_v20 }
 0x138   : > { %v3412_v52 = vcombine.low %v12630_v46, %v12633_v62  ;;  %v3481_v61 = vcombine.low %v3464_v48, %v3478_v34  ;;  %v3515_v37 = vcombine.high %v12340_v43, %v12425_v45  ;;  %v3517_v59 = vcombine.high %v12406_v24, %v15187_v36 }
 0x139   : > { %v4696_v53 = vrot.slane %v9240_v28, %v11008_v25  ;;  %v4703_v63 = vrot.slane %v4688_v29, %v11008_v25  ;;  %v4761_v54 = vrot.slane %v9241_v7, %v11008_v25  ;;  %v12655_v10 = vrot.slane %v3447_v60, %v11008_v25  ;;  %v12667_v34 = vpop.f32.mrb[0].mxu0 }
 0x13a   : > { %v12658_v38 = vrot.slane %v3449_v49, %v11008_v25  ;;  %v3545_v48 = vrot.slane %v3517_v59, %v11008_v25 }
 0x13b   : > { %v4718_v21 = vcombine.low %v4696_v53, %v4710_v9  ;;  %v4719_v12 = vcombine.high %v4696_v53, %v4710_v9  ;;  %v4720_v39 = vcombine.low %v4703_v63, %v4717_v31  ;;  %v4721_v8 = vcombine.high %v4703_v63, %v4717_v31 }
 0x13c   : > { %v4769_v20 = vcombine.low %v4761_v54, %v4768_v50  ;;  %v3531_v9 = vrot.slane %v3515_v37, %v11008_v25  ;;  %v12670_v50 = vpop.f32.mrb[1].mxu0  ;;  %v3479_v49 = vcombine.low %v12655_v10, %v12658_v38  ;;  %v3514_v53 = vcombine.low %v12340_v43, %v12425_v45 }
 0x13d   : > { %v4728_v47 = vrot.slane %v4718_v21, %v11008_v25  ;;  %v4735_v41 = vrot.slane %v4720_v39, %v11008_v25  ;;  %v4742_v16 = vrot.slane %v4719_v12, %v11008_v25  ;;  %v4749_v26 = vrot.slane %v4721_v8, %v11008_v25  ;;  %3968 = vmatmul.mubr.bf16.gmra.mrb[68].mxu1 %v3412_v52  ;;  %v12676_v63 = vpop.f32.mrb[2].mxu0 }
 0x13e   : > { %v4776_v23 = vrot.slane %v4769_v20, %v11008_v25  ;;  %3975 = vmatprep.mubr.bf16.mxu1 %v3481_v61  ;;  %v12679_v21 = vpop.f32.mrb[3].mxu0  ;;  %v3516_v61 = vcombine.low %v12406_v24, %v15187_v36  ;;  %v3582_v12 = vcombine.high %v12409_v1, %v12450_v5  ;;  %v3584_v39 = vcombine.high %v12469_v3, %v12472_v30 }
 0x13f   : > { %v4750_v28 = vcombine.high %v4728_v47, %v4728_v47  ;;  %v4751_v29 = vcombine.high %v4735_v41, %v4735_v41  ;;  %v4752_v31 = vcombine.high %v4742_v16, %v4742_v16  ;;  %v5159_v7 = vcombine.low %v11824_v56, %v4728_v47 }
 0x140   : > { %v4753_v60 = vcombine.high %v4749_v26, %v4749_v26  ;;  %v3548_v20 = vcombine.low %v3531_v9, %v3545_v48 }
 0x141   : > { %v5160_v52 = vcombine.low %v4742_v16, %v4750_v28  ;;  %v5161_v54 = vcombine.low %v4752_v31, %v4735_v41  ;;  %v5162_v37 = vcombine.low %v4749_v26, %v4751_v29  ;;  %v5169_v59 = vrot.slane %v5159_v7, %v11008_v25 }
 0x142   : > { %v5226_v56 = vcombine.low %v4753_v60, %v4776_v23  ;;  %v12692_v41 = vrot.slane %v3514_v53, %v11008_v25  ;;  %v12695_v28 = vrot.slane %v3516_v61, %v11008_v25  ;;  %v3598_v29 = vrot.slane %v3582_v12, %v11008_v25  ;;  %v9484_v53 = vpop.f32.mrb[0].mxu1 }
 0x143   : > { %v5176_v43 = vrot.slane %v5160_v52, %v11008_v25  ;;  %v5183_v45 = vrot.slane %v5161_v54, %v11008_v25  ;;  %v5190_v8 = vrot.slane %v5162_v37, %v11008_v25  ;;  %v3612_v31 = vrot.slane %v3584_v39, %v11008_v25 }
 0x144   : > { %v5233_v47 = vrot.slane %v5226_v56, %v11008_v25  ;;  %v3546_v61 = vcombine.low %v12692_v41, %v12695_v28  ;;  %v3583_v12 = vcombine.low %v12469_v3, %v12472_v30  ;;  %v3649_v39 = vcombine.high %v12463_v18, %v12538_v51 }
 0x145   : > { %v5192_v16 = vcombine.high %v5169_v59, %v5176_v43  ;;  %v5194_v24 = vcombine.high %v5183_v45, %v5190_v8  ;;  %v5191_v36 = vcombine.low %v5169_v59, %v5176_v43  ;;  %v5193_v26 = vcombine.low %v5183_v45, %v5190_v8  ;;  %3976 = vmatmul.mubr.bf16.gmra.mrb[72].mxu1 %v3479_v49  ;;  %v9485_v49 = vpop.f32.mrb[1].mxu1 }
 0x146   : > { %v5234_v23 = vcombine.high %v5233_v47, %v5233_v47  ;;  %3983 = vmatprep.mubr.bf16.mxu1 %v3548_v20  ;;  %v3581_v59 = vcombine.low %v12409_v1, %v12450_v5  ;;  %v9487_v56 = vpop.f32.mrb[2].mxu1  ;;  %v4985_v43 = vcombine.high %v12374_v4, %v12386_v55  ;;  %v3615_v8 = vcombine.low %v3598_v29, %v3612_v31 }
 0x147   : > { %v5208_v9 = vrot.slane %v5192_v16, %v11008_v25  ;;  %v5222_v48 = vrot.slane %v5194_v24, %v11008_v25  ;;  %v12702_v7 = vrot.slane %v5191_v36, %v11008_v25  ;;  %v12705_v60 = vrot.slane %v5193_v26, %v11008_v25  ;;  %v9488_v45 = vpop.f32.mrb[3].mxu1 }
 0x148   : > { %v5248_v37 = vrot.slane %v5234_v23, %v11008_v25  ;;  %v3651_v20 = vcombine.high %v12549_v57, %v12552_v44  ;;  %v5020_v1 = vcombine.high %v12457_v17, %v12443_v32  ;;  %v5055_v5 = vcombine.high %v12506_v42, %v12509_v6 }
 0x149   : > { %v5225_v52 = vcombine.low %v5208_v9, %v5222_v48  ;;  %v5223_v54 = vcombine.low %v12702_v7, %v12705_v60  ;;  %v12727_v3 = vrot.slane %v3581_v59, %v11008_v25  ;;  %v5090_v30 = vcombine.high %v12580_v33, %v12584_v35 }
 0x14a   : > { %v5157_v16 = vcombine.high %v12606_v15, %v12615_v27  ;;  %v12734_v24 = vrot.slane %v3583_v12, %v11008_v25  ;;  %v3665_v32 = vrot.slane %v3649_v39, %v11008_v25  ;;  %v3145_v17 = vcombine.high %v12414_v40, %v12417_v13  ;;  %v15206_v39 = vld [vmem:[#allocation38_spill] sm:$0xff] }
 0x14b   : > { %5542 = vmatprep.mubr.bf16.mxu0 %v5225_v52  ;;  %v3212_v36 = vcombine.high %v12481_v11, %v12490_v58  ;;  %v3679_v26 = vrot.slane %v3651_v20, %v11008_v25  ;;  %v3279_v23 = vcombine.high %v12541_v19, %v12544_v0  ;;  %v3346_v29 = vcombine.high %v12600_v22, %v12603_v14  ;;  %v15202_v52 = vld [vmem:[#allocation37_spill] sm:$0xff] }
 0x14c   : > { %5543 = vmatmul.mubr.bf16.gmra.mrb[68].mxu0 %v5223_v54  ;;  %v3413_v31 = vcombine.high %v12630_v46, %v12633_v62  ;;  %v12749_v9 = vrot.slane %v5233_v47, %v11008_v25  ;;  %v3480_v40 = vcombine.high %v12655_v10, %v12658_v38  ;;  %v12753_v13 = vadd.f32 %v9485_v49, %v9484_v53 }
 0x14d   : > { %5550 = vmatprep.mubr.bf16.mxu0 %v5248_v37  ;;  %3984 = vmatmul.mubr.bf16.gmra.mrb[76].mxu1 %v3546_v61  ;;  %v12755_v48 = vadd.f32 %v9488_v45, %v9487_v56  ;;  %v4810_v54 = vcombine.high %v15202_v52, %v12016_v2  ;;  %v12761_v37 = vadd.f32 %v12670_v50, %v12667_v34  ;;  %v15207_v45 = vld [vmem:[#allocation39_spill] sm:$0xff] }
 0x14e   : > { %3991 = vmatprep.mubr.bf16.mxu1 %v3615_v8  ;;  %v3613_v59 = vcombine.low %v12727_v3, %v12734_v24  ;;  %v3648_v47 = vcombine.low %v12463_v18, %v12538_v51  ;;  %v3650_v61 = vcombine.low %v12549_v57, %v12552_v44  ;;  %v12771_v53 = vadd.f32 %v12679_v21, %v12676_v63  ;;  %v15203_v51 = vld [vmem:[#allocation15_spill] sm:$0xff]  ;;  %v15205_v44 = vld [vmem:[#allocation28_spill] sm:$0xff] }
 0x14f   : > { %v3682_v49 = vcombine.low %v3665_v32, %v3679_v26  ;;  %v3691_v18 = vcombine.high %v15203_v51, %v15203_v51  ;;  %v15204_v57 = vld [vmem:[#allocation35_spill] sm:$0xff]  ;;  %v15208_v8 = vcombine.high %v15206_v39, %v15207_v45  ;;  %v5224_v33 = vcombine.high %v12702_v7, %v12705_v60 }
 0x150   : > { %v12775_v2 = vrot.slane %v3648_v47, %v11008_v25  ;;  %v12778_v34 = vrot.slane %v3650_v61, %v11008_v25  ;;  %v4880_v50 = vcombine.high %v15205_v44, %v15204_v57  ;;  %v15211_v61 = vld [vmem:[#allocation11_spill] sm:$0xff]  ;;  %v3698_v44 = vrot.slane %v15203_v51, %v11008_v25  ;;  %v15216_v51 = vld [vmem:[#allocation14_spill] sm:$0xff] }
 0x151   : > { %v3705_v56 = vrot.slane %v3691_v18, %v11008_v25  ;;  %v15215_v25 = vld [vmem:[#allocation19_spill] sm:$0xff]  ;;  %v5249_v11 = vcombine.high %v12749_v9, %v12749_v9  ;;  %v3547_v58 = vcombine.high %v12692_v41, %v12695_v28  ;;  %v3614_v14 = vcombine.high %v12727_v3, %v12734_v24 }
 0x152   : > { %v3680_v63 = vcombine.low %v12775_v2, %v12778_v34  ;;  %v3681_v27 = vcombine.high %v12775_v2, %v12778_v34  ;;  %v3706_v62 = vcombine.high %v3698_v44, %v3698_v44 }
 0x154   : > { %5551 = vmatmul.mubr.bf16.gmra.mrb[72].mxu0 %v12749_v9 }
 0x155   : > { %10086 = vmatprep.mubr.bf16.mxu0 %v4810_v54  ;;  %3992 = vmatmul.mubr.bf16.gmra.mrb[80].mxu1 %v3613_v59  ;;  %v9448_v21 = vpop.f32.mrb[4].mxu0  ;;  %v15209_v54 = vld [vmem:[#allocation36_spill] sm:$0xff]  ;;  %v15210_v59 = vld [vmem:[#allocation34_spill] sm:$0xff] }
 0x156   : > { %3999 = vmatprep.mubr.bf16.mxu1 %v3682_v49  ;;  %v9449_v12 = vpop.f32.mrb[5].mxu0  ;;  %v4915_v47 = vcombine.high %v15210_v59, %v15209_v54  ;;  %v15212_v49 = vld [vmem:[#allocation40_spill] sm:$0xff] }
 0x157   : > { %v12790_v20 = vadd.f32 %v9449_v12, %v9448_v21  ;;  %v9451_v32 = vpop.f32.mrb[6].mxu0  ;;  %v4950_v18 = vcombine.high %v15212_v49, %v15211_v61  ;;  %v15213_v21 = vld [vmem:[#allocation13_spill] sm:$0xff]  ;;  %v15214_v12 = vld [vmem:[#allocation12_spill] sm:$0xff] }
 0x158   : > { %v9452_v26 = vpop.f32.mrb[7].mxu0  ;;  %v3011_v45 = vcombine.high %v15214_v12, %v15213_v21 }
 0x159   : > { %v12792_v52 = vadd.f32 %v9452_v26, %v9451_v32  ;;  %v15217_v32 = vcombine.high %v15215_v25, %v15216_v51 }
 0x15c   : > { %10087 = vmatmul.mubr.bf16.vlgmr.msra.gmra.mrb[76].mxu0 %v15208_v8 }
 0x15d   : > { %10090 = vmatprep.mubr.bf16.mxu0 %v4880_v50  ;;  %4000 = vmatmul.mubr.bf16.gmra.mrb[84].mxu1 %v3680_v63  ;;  %v9490_v57 = vpop.f32.mrb[4].mxu1 }
 0x15e   : > { %4007 = vmatprep.mubr.bf16.mxu1 %v3705_v56  ;;  %v9491_v39 = vpop.f32.mrb[5].mxu1 }
 0x15f   : > { %v12802_v50 = vadd.f32 %v9491_v39, %v9490_v57  ;;  %v9493_v63 = vpop.f32.mrb[6].mxu1 }
 0x160   : > { %v9494_v8 = vpop.f32.mrb[7].mxu1 }
 0x161   : > { %v12804_v56 = vadd.f32 %v9494_v8, %v9493_v63 }
 0x164   : > { %10091 = vmatmul.mubr.bf16.gmra.mrb[80].mxu0 %v4915_v47 }
 0x165   : > { %10094 = vmatprep.mubr.bf16.mxu0 %v4950_v18  ;;  %4008 = vmatmul.mubr.bf16.gmra.mrb[88].mxu1 %v3698_v44 }
 0x166   : > { %10046 = vmatprep.mubr.bf16.mxu1 %v3011_v45 }
 0x16c   : > { %10095 = vmatmul.mubr.bf16.gmra.mrb[84].mxu0 %v4985_v43 }
 0x16d   : > { %10098 = vmatprep.mubr.bf16.mxu0 %v5020_v1  ;;  %10047 = vmatmul.mubr.bf16.vlgmr.msra.gmra.mrb[20].mxu1 %v15217_v32  ;;  %v9496_v26 = vpop.f32.mrb[8].mxu1 }
 0x16e   : > { %10050 = vmatprep.mubr.bf16.mxu1 %v3145_v17  ;;  %v9497_v54 = vpop.f32.mrb[9].mxu1  ;;  %v9454_v59 = vpop.f32.mrb[8].mxu0 }
 0x16f   : > { %v12815_v47 = vadd.f32 %v9497_v54, %v9496_v26  ;;  %v9499_v61 = vpop.f32.mrb[10].mxu1  ;;  %v9455_v49 = vpop.f32.mrb[9].mxu0 }
 0x170   : > { %v9500_v4 = vpop.f32.mrb[11].mxu1  ;;  %v12820_v55 = vadd.f32 %v9455_v49, %v9454_v59  ;;  %v9457_v43 = vpop.f32.mrb[10].mxu0 }
 0x171   : > { %v12825_v1 = vadd.f32 %v9500_v4, %v9499_v61  ;;  %v9458_v42 = vpop.f32.mrb[11].mxu0 }
 0x172   : > { %v12830_v6 = vadd.f32 %v9458_v42, %v9457_v43 }
 0x174   : > { %10099 = vmatmul.mubr.bf16.gmra.mrb[88].mxu0 %v5055_v5 }
 0x175   : > { %10102 = vmatprep.mubr.bf16.mxu0 %v5090_v30  ;;  %10051 = vmatmul.mubr.bf16.gmra.mrb[24].mxu1 %v3212_v36 }
 0x176   : > { %10054 = vmatprep.mubr.bf16.mxu1 %v3279_v23 }
 0x17c   : > { %10103 = vmatmul.mubr.bf16.gmra.mrb[92].mxu0 %v5157_v16 }
 0x17d   : > { %10106 = vmatprep.mubr.bf16.mxu0 %v5224_v33  ;;  %10055 = vmatmul.mubr.bf16.gmra.mrb[28].mxu1 %v3346_v29 }
 0x17e   : > { %10058 = vmatprep.mubr.bf16.mxu1 %v3413_v31 }
 0x182   : > { %v9460_v19 = vpop.f32.mrb[12].mxu0 }
 0x183   : > { %v9461_v0 = vpop.f32.mrb[13].mxu0 }
 0x184   : > { %10107 = vmatmul.mubr.bf16.gmra.mrb[96].mxu0 %v5249_v11  ;;  %v12850_v22 = vadd.f32 %v9461_v0, %v9460_v19  ;;  %v9463_v35 = vpop.f32.mrb[14].mxu0  ;;  %v10557_v11 = vld [vmem:[#allocation2 + $0x140] sm:$0xff]   ;;  %v10558_v19 = vld [vmem:[#allocation2 + $0x148] sm:$0xff]  }
 0x185   : > { %10059 = vmatmul.mubr.bf16.gmra.mrb[32].mxu1 %v3480_v40  ;;  %v9464_v15 = vpop.f32.mrb[15].mxu0  ;;  %10110 = vmatprep.subr.bf16.mxu0 %v10557_v11 }
 0x186   : > { %10062 = vmatprep.mubr.bf16.mxu1 %v3547_v58  ;;  %v12856_v46 = vadd.f32 %v9464_v15, %v9463_v35  ;;  %10111 = vmatpush3.bf16.msra.mxu0 %v10557_v11 }
 0x187   : > { %10112 = vmatprep.subr.bf16.mxu0 %v10558_v19 }
 0x18a   : > { %10113 = vmatpush3.bf16.msra.mxu0 %v10558_v19 }
 0x18d   : > { %10063 = vmatmul.mubr.bf16.gmra.mrb[36].mxu1 %v3614_v14 }
 0x18e   : > { %10066 = vmatprep.mubr.bf16.mxu1 %v3681_v27  ;;  %v9502_v10 = vpop.f32.mrb[12].mxu1 }
 0x18f   : > { %v9503_v38 = vpop.f32.mrb[13].mxu1 }
 0x190   : > { %v12858_v41 = vadd.f32 %v9503_v38, %v9502_v10  ;;  %v9505_v28 = vpop.f32.mrb[14].mxu1 }
 0x191   : > { %v9506_v7 = vpop.f32.mrb[15].mxu1 }
 0x192   : > { %v12860_v60 = vadd.f32 %v9506_v7, %v9505_v28 }
 0x195   : > { %10067 = vmatmul.mubr.bf16.gmra.mrb[40].mxu1 %v3706_v62 }
 0x19d   : > { %v9466_v5 = vpop.f32.mrb[16].mxu0 }
 0x19e   : > { %v9467_v3 = vpop.f32.mrb[17].mxu0 }
 0x19f   : > { %v12862_v30 = vadd.f32 %v9467_v3, %v9466_v5  ;;  %v9469_v16 = vpop.f32.mrb[18].mxu0 }
 0x1a0   : > { %v9508_v24 = vpop.f32.mrb[16].mxu1  ;;  %v9470_v17 = vpop.f32.mrb[19].mxu0 }
 0x1a1   : > { %v9509_v36 = vpop.f32.mrb[17].mxu1  ;;  %v12864_v23 = vadd.f32 %v9470_v17, %v9469_v16 }
 0x1a2   : > { %v12866_v29 = vadd.f32 %v9509_v36, %v9508_v24  ;;  %v9511_v31 = vpop.f32.mrb[18].mxu1 }
 0x1a3   : > { %v9512_v9 = vpop.f32.mrb[19].mxu1 }
 0x1ae   : > { %v9472_v40 = vpop.f32.mrb[20].mxu0 }
 0x1af   : > { %v9473_v2 = vpop.f32.mrb[21].mxu0 }
 0x1b0   : > { %v12868_v34 = vadd.f32 %v9473_v2, %v9472_v40  ;;  %v9475_v18 = vpop.f32.mrb[22].mxu0 }
 0x1b1   : > { %v9476_v57 = vpop.f32.mrb[23].mxu0 }
 0x1b2   : > { %v12870_v44 = vadd.f32 %v9476_v57, %v9475_v18  ;;  %v10560_v57 = vld [vmem:[#allocation2 + $0x100] sm:$0xff]  }
 0x1b3   : > { %9750 = vmatprep.subr.bf16.mxu1 %v10560_v57 }
 0x1b6   : > { %v9478_v39 = vpop.f32.mrb[24].mxu0 }
 0x1b7   : > { %v9479_v21 = vpop.f32.mrb[25].mxu0 }
 0x1b8   : > { %v12872_v12 = vadd.f32 %v9479_v21, %v9478_v39  ;;  %v9481_v45 = vpop.f32.mrb[26].mxu0 }
 0x1b9   : > { %v9482_v63 = vpop.f32.mrb[27].mxu0 }
 0x1ba   : > { %v12874_v8 = vadd.f32 %v9482_v63, %v9481_v45 }
 0x1be   : > { %v9658_v25 = vpop.f32.mrb[28].mxu0 }
 0x1bf   : > { %v9659_v51 = vpop.f32.mrb[29].mxu0 }
 0x1c0   : > { %v12876_v32 = vadd.f32 %v9659_v51, %v9658_v25  ;;  %v9661_v26 = vpop.f32.mrb[30].mxu0  ;;  %v10561_v25 = vld [vmem:[#allocation2 + $0xc0] sm:$0xff]  }
 0x1c1   : > { %v9662_v54 = vpop.f32.mrb[31].mxu0  ;;  %9751 = vmatpush3.bf16.msra.mxu1 %v10561_v25 }
 0x1c2   : > { %v12878_v59 = vadd.f32 %v9662_v54, %v9661_v26 }
 0x1c6   : > { %v9664_v61 = vpop.f32.mrb[32].mxu0 }
 0x1c7   : > { %v9665_v49 = vpop.f32.mrb[33].mxu0 }
 0x1c8   : > { %v12880_v4 = vadd.f32 %v9665_v49, %v9664_v61  ;;  %v9667_v43 = vpop.f32.mrb[34].mxu0 }
 0x1c9   : > { %v9668_v42 = vpop.f32.mrb[35].mxu0 }
 0x1ca   : > { %v12882_v33 = vadd.f32 %v9668_v42, %v9667_v43 }
 0x1cf   : > { %v9670_v58 = vpop.f32.mrb[36].mxu0 }
 0x1d0   : > { %v9671_v0 = vpop.f32.mrb[37].mxu0 }
 0x1d1   : > { %v12884_v35 = vadd.f32 %v9671_v0, %v9670_v58  ;;  %v9673_v14 = vpop.f32.mrb[38].mxu0 }
 0x1d2   : > { %v9674_v15 = vpop.f32.mrb[39].mxu0 }
 0x1d3   : > { %v12886_v27 = vadd.f32 %v9674_v15, %v9673_v14 }
 0x1d9   : > { %v9676_v62 = vpop.f32.mrb[40].mxu0 }
 0x1da   : > { %v9677_v10 = vpop.f32.mrb[41].mxu0 }
 0x1db   : > { %v12888_v38 = vadd.f32 %v9677_v10, %v9676_v62  ;;  %v9679_v28 = vpop.f32.mrb[42].mxu0 }
 0x1dc   : > { %v9680_v7 = vpop.f32.mrb[43].mxu0 }
 0x1dd   : > { %v12890_v5 = vadd.f32 %v9680_v7, %v9679_v28 }
 0x1e0   : > { %v9550_v3 = vpop.f32.mrb[44].mxu1 }
 0x1e1   : > { %v9682_v16 = vpop.f32.mrb[44].mxu0  ;;  %v9551_v24 = vpop.f32.mrb[45].mxu1 }
 0x1e2   : > { %v9683_v17 = vpop.f32.mrb[45].mxu0  ;;  %v9552_v36 = vadd.f32 %v9551_v24, %v9550_v3  ;;  %v9553_v31 = vpop.f32.mrb[46].mxu1 }
 0x1e3   : > { %v12892_v9 = vadd.f32 %v9683_v17, %v9682_v16  ;;  %v9685_v40 = vpop.f32.mrb[46].mxu0  ;;  %v9554_v2 = vpop.f32.mrb[47].mxu1 }
 0x1e4   : > { %v9686_v18 = vpop.f32.mrb[47].mxu0  ;;  %v9555_v39 = vadd.f32 %v9554_v2, %v9553_v31  ;;  %v12897_v45 = vadd.f32 %v9552_v36, %v12761_v37 }
 0x1e5   : > { %v12894_v21 = vadd.f32 %v9686_v18, %v9685_v40 }
 0x1e6   : > { %v12900_v63 = vadd.f32 %v9555_v39, %v12771_v53  ;;  %v10559_v53 = vld [vmem:[#allocation2 + $0x150] sm:$0xff]  }
 0x1e7   : > { %10114 = vmatprep.subr.bf16.mxu0 %v10559_v53 }
 0x1e8   : > { %v9556_v51 = vpop.f32.mrb[48].mxu1  ;;  %10115 = vmatpush3.bf16.msra.mxu0 %v10559_v53  ;;  %v10563_v53 = vld [vmem:[#allocation2 + $0x108] sm:$0xff]  }
 0x1e9   : > { %v9688_v26 = vpop.f32.mrb[48].mxu0  ;;  %v9557_v54 = vpop.f32.mrb[49].mxu1  ;;  %9752 = vmatprep.subr.bf16.mxu1 %v10563_v53 }
 0x1ea   : > { %v9689_v61 = vpop.f32.mrb[49].mxu0  ;;  %v9558_v49 = vadd.f32 %v9557_v54, %v9556_v51  ;;  %v9559_v43 = vpop.f32.mrb[50].mxu1 }
 0x1eb   : > { %v12902_v42 = vadd.f32 %v9689_v61, %v9688_v26  ;;  %v9691_v11 = vpop.f32.mrb[50].mxu0  ;;  %v9560_v58 = vpop.f32.mrb[51].mxu1 }
 0x1ec   : > { %v9692_v19 = vpop.f32.mrb[51].mxu0  ;;  %v9561_v0 = vadd.f32 %v9560_v58, %v9559_v43  ;;  %v12907_v14 = vadd.f32 %v9558_v49, %v12790_v20 }
 0x1ed   : > { %v12904_v37 = vadd.f32 %v9692_v19, %v9691_v11  ;;  %v10562_v19 = vld [vmem:[#allocation2 + $0x158] sm:$0xff]  }
 0x1ee   : > { %v12910_v15 = vadd.f32 %v9561_v0, %v12792_v52  ;;  %10116 = vmatprep.subr.bf16.mxu0 %v10562_v19 }
 0x1ef   : > { %10117 = vmatpush3.bf16.msra.mxu0 %v10562_v19 }
 0x1f0   : > { %v9562_v62 = vpop.f32.mrb[52].mxu1 }
 0x1f1   : > { %v9563_v10 = vpop.f32.mrb[53].mxu1  ;;  %v9694_v28 = vpop.f32.mrb[52].mxu0 }
 0x1f2   : > { %v9564_v7 = vadd.f32 %v9563_v10, %v9562_v62  ;;  %v9565_v3 = vpop.f32.mrb[54].mxu1  ;;  %v9695_v16 = vpop.f32.mrb[53].mxu0 }
 0x1f3   : > { %v9566_v24 = vpop.f32.mrb[55].mxu1  ;;  %v12912_v17 = vadd.f32 %v9695_v16, %v9694_v28  ;;  %v9697_v36 = vpop.f32.mrb[54].mxu0  ;;  %v10564_v28 = vld [vmem:[#allocation2 + $0xc8] sm:$0xff]  }
 0x1f4   : > { %v9567_v31 = vadd.f32 %v9566_v24, %v9565_v3  ;;  %v9698_v40 = vpop.f32.mrb[55].mxu0  ;;  %v12915_v20 = vadd.f32 %v9564_v7, %v12820_v55  ;;  %9753 = vmatpush3.bf16.msra.mxu1 %v10564_v28 }
 0x1f5   : > { %v12917_v2 = vadd.f32 %v9698_v40, %v9697_v36  ;;  %v10565_v40 = vld [vmem:[#allocation2 + $0x110] sm:$0xff]  }
 0x1f6   : > { %v12920_v52 = vadd.f32 %v9567_v31, %v12830_v6  ;;  %9754 = vmatprep.subr.bf16.mxu1 %v10565_v40  ;;  %v10568_v40 = vld [vmem:[#allocation2 + $0x118] sm:$0xff]  }
 0x1f8   : > { %15218 = vst [vmem:[#allocation16_spill] sm:$0xff] %v12920_v52  ;;  %v9568_v18 = vpop.f32.mrb[56].mxu1 }
 0x1f9   : > { %v9569_v57 = vpop.f32.mrb[57].mxu1  ;;  %v9700_v39 = vpop.f32.mrb[56].mxu0 }
 0x1fa   : > { %v9570_v25 = vadd.f32 %v9569_v57, %v9568_v18  ;;  %v9571_v51 = vpop.f32.mrb[58].mxu1  ;;  %v9701_v26 = vpop.f32.mrb[57].mxu0 }
 0x1fb   : > { %v9572_v54 = vpop.f32.mrb[59].mxu1  ;;  %v12922_v61 = vadd.f32 %v9701_v26, %v9700_v39  ;;  %v9703_v49 = vpop.f32.mrb[58].mxu0  ;;  %v10566_v39 = vld [vmem:[#allocation2 + $0xd0] sm:$0xff]  }
 0x1fc   : > { %v9573_v43 = vadd.f32 %v9572_v54, %v9571_v51  ;;  %v9704_v11 = vpop.f32.mrb[59].mxu0  ;;  %v12925_v55 = vadd.f32 %v9570_v25, %v12850_v22  ;;  %9755 = vmatpush3.bf16.msra.mxu1 %v10566_v39 }
 0x1fd   : > { %v12927_v58 = vadd.f32 %v9704_v11, %v9703_v49  ;;  %9756 = vmatprep.subr.bf16.mxu1 %v10568_v40 }
 0x1fe   : > { %v12930_v6 = vadd.f32 %v9573_v43, %v12856_v46 }
 0x200   : > { %v9574_v0 = vpop.f32.mrb[60].mxu1 }
 0x201   : > { %v9575_v62 = vpop.f32.mrb[61].mxu1  ;;  %v9706_v10 = vpop.f32.mrb[60].mxu0 }
 0x202   : > { %v9576_v7 = vadd.f32 %v9575_v62, %v9574_v0  ;;  %v9577_v3 = vpop.f32.mrb[62].mxu1  ;;  %v9707_v16 = vpop.f32.mrb[61].mxu0 }
 0x203   : > { %v9578_v24 = vpop.f32.mrb[63].mxu1  ;;  %v12932_v22 = vadd.f32 %v9707_v16, %v9706_v10  ;;  %v9709_v36 = vpop.f32.mrb[62].mxu0 }
 0x204   : > { %v9579_v31 = vadd.f32 %v9578_v24, %v9577_v3  ;;  %v9710_v46 = vpop.f32.mrb[63].mxu0  ;;  %v12935_v18 = vadd.f32 %v9576_v7, %v12862_v30 }
 0x205   : > { %v12937_v57 = vadd.f32 %v9710_v46, %v9709_v36 }
 0x206   : > { %15219 = vst [vmem:[#allocation21_spill] sm:$0xff] %v12935_v18  ;;  %v12940_v25 = vadd.f32 %v9579_v31, %v12864_v23  ;;  %v10567_v23 = vld [vmem:[#allocation2 + $0x160] sm:$0xff]  }
 0x207   : > { %10118 = vmatprep.subr.bf16.mxu0 %v10567_v23 }
 0x208   : > { %15220 = vst [vmem:[#allocation17_spill] sm:$0xff] %v12940_v25  ;;  %v9580_v51 = vpop.f32.mrb[64].mxu1  ;;  %10119 = vmatpush3.bf16.msra.mxu0 %v10567_v23 }
 0x209   : > { %v9581_v26 = vpop.f32.mrb[65].mxu1  ;;  %v9712_v54 = vpop.f32.mrb[64].mxu0 }
 0x20a   : > { %v9582_v49 = vadd.f32 %v9581_v26, %v9580_v51  ;;  %v9583_v43 = vpop.f32.mrb[66].mxu1  ;;  %v9713_v11 = vpop.f32.mrb[65].mxu0  ;;  %v10571_v26 = vld [vmem:[#allocation2 + $0x120] sm:$0xff]  }
 0x20b   : > { %v9584_v19 = vpop.f32.mrb[67].mxu1  ;;  %v12942_v0 = vadd.f32 %v9713_v11, %v9712_v54  ;;  %v9715_v53 = vpop.f32.mrb[66].mxu0 }
 0x20c   : > { %v9585_v30 = vadd.f32 %v9584_v19, %v9583_v43  ;;  %v9716_v62 = vpop.f32.mrb[67].mxu0  ;;  %v12945_v10 = vadd.f32 %v9582_v49, %v12868_v34  ;;  %v10569_v34 = vld [vmem:[#allocation2 + $0xd8] sm:$0xff]  }
 0x20d   : > { %v12947_v28 = vadd.f32 %v9716_v62, %v9715_v53  ;;  %9757 = vmatpush3.bf16.msra.mxu1 %v10569_v34 }
 0x20e   : > { %15221 = vst [vmem:[#allocation18_spill] sm:$0xff] %v12945_v10  ;;  %v12950_v7 = vadd.f32 %v9585_v30, %v12870_v44  ;;  %9758 = vmatprep.subr.bf16.mxu1 %v10571_v26  ;;  %v10570_v30 = vld [vmem:[#allocation2 + $0x168] sm:$0xff]  }
 0x20f   : > { %10120 = vmatprep.subr.bf16.mxu0 %v10570_v30 }
 0x210   : > { %15222 = vst [vmem:[#allocation22_spill] sm:$0xff] %v12950_v7  ;;  %v9586_v3 = vpop.f32.mrb[68].mxu1  ;;  %10121 = vmatpush3.bf16.msra.mxu0 %v10570_v30 }
 0x211   : > { %v9587_v16 = vpop.f32.mrb[69].mxu1 }
 0x212   : > { %v9588_v24 = vadd.f32 %v9587_v16, %v9586_v3  ;;  %v9589_v36 = vpop.f32.mrb[70].mxu1 }
 0x213   : > { %v9590_v31 = vpop.f32.mrb[71].mxu1 }
 0x214   : > { %v9591_v46 = vadd.f32 %v9590_v31, %v9589_v36  ;;  %v12953_v39 = vadd.f32 %v9588_v24, %v12872_v12  ;;  %v10572_v12 = vld [vmem:[#allocation2 + $0xe0] sm:$0xff]  }
 0x215   : > { %9759 = vmatpush3.bf16.msra.mxu1 %v10572_v12 }
 0x216   : > { %15223 = vst [vmem:[#allocation20_spill] sm:$0xff] %v12953_v39  ;;  %v12956_v51 = vadd.f32 %v9591_v46, %v12874_v8 }
 0x218   : > { %15224 = vst [vmem:[#allocation23_spill] sm:$0xff] %v12956_v51  ;;  %v9592_v44 = vpop.f32.mrb[72].mxu1 }
 0x219   : > { %v9593_v54 = vpop.f32.mrb[73].mxu1 }
 0x21a   : > { %v9594_v49 = vadd.f32 %v9593_v54, %v9592_v44  ;;  %v9595_v43 = vpop.f32.mrb[74].mxu1  ;;  %v10787_v54 = vmov 1983009808  }
 0x21b   : > { %v9596_v11 = vpop.f32.mrb[75].mxu1 }
 0x21c   : > { %v9597_v19 = vadd.f32 %v9596_v11, %v9595_v43  ;;  %v12959_v53 = vadd.f32 %v9594_v49, %v12753_v13  ;;  %v4168_v49 = vunpack.c.l.s4 %v10787_v54  ;;  %v15231_v54 = vld [vmem:[#allocation10_spill] sm:$0xff] }
 0x21e   : > { %15225 = vst [vmem:[#allocation24_spill] sm:$0xff] %v12959_v53  ;;  %v12962_v23 = vadd.f32 %v9597_v19, %v12755_v48 }
 0x21f   : > { %v9718_v62 = vpop.f32.mrb[68].mxu0 }
 0x220   : > { %15226 = vst [vmem:[#allocation26_spill] sm:$0xff] %v12962_v23  ;;  %v9719_v8 = vpop.f32.mrb[69].mxu0  ;;  %v9598_v24 = vpop.f32.mrb[76].mxu1 }
 0x221   : > { %v12964_v3 = vadd.f32 %v9719_v8, %v9718_v62  ;;  %v9721_v16 = vpop.f32.mrb[70].mxu0  ;;  %v9599_v31 = vpop.f32.mrb[77].mxu1 }
 0x222   : > { %v9722_v36 = vpop.f32.mrb[71].mxu0  ;;  %v9600_v13 = vadd.f32 %v9599_v31, %v9598_v24  ;;  %v9601_v40 = vpop.f32.mrb[78].mxu1 }
 0x223   : > { %v12966_v46 = vadd.f32 %v9722_v36, %v9721_v16  ;;  %v9602_v34 = vpop.f32.mrb[79].mxu1  ;;  %v4169_v16 = vunpack.c.0.s8 %v4168_v49 }
 0x224   : > { %v9603_v44 = vadd.f32 %v9602_v34, %v9601_v40  ;;  %v12969_v26 = vadd.f32 %v9600_v13, %v12802_v50  ;;  %v9268_v50 = vld [vmem:[%s14954_s2] ss:$0 sm:$0xff]  ;;  %v10573_v40 = vld [vmem:[#allocation2 + $0x128] sm:$0xff]  }
 0x225   : > { %15227 = vst [vmem:[#allocation25_spill] sm:$0xff] %v12966_v46  ;;  %v12986_v49 = vsub.s32 %v4169_v16, %v15231_v54  ;;  %9760 = vmatprep.subr.bf16.mxu1 %v10573_v40 }
 0x226   : > { %15228 = vst [vmem:[#allocation32_spill] sm:$0xff] %v12969_v26  ;;  %v12972_v43 = vadd.f32 %v9603_v44, %v12804_v56  ;;  %v9269_v56 = vld [vmem:[%s14955_s3] ss:$0 sm:$0xff]  ;;  %v6277_v44 = vcombine.high %v9268_v50, %v9268_v50 }
 0x227   : > { %v9724_v48 = vpop.f32.mrb[72].mxu0 }
 0x228   : > { %15229 = vst [vmem:[#allocation27_spill] sm:$0xff] %v12972_v43  ;;  %v9725_v11 = vpop.f32.mrb[73].mxu0  ;;  %v9604_v12 = vpop.f32.mrb[80].mxu1  ;;  %v10576_v43 = vld [vmem:[#allocation2 + $0x130] sm:$0xff]  }
 0x229   : > { %v12974_v19 = vadd.f32 %v9725_v11, %v9724_v48  ;;  %v9727_v30 = vpop.f32.mrb[74].mxu0  ;;  %v9605_v8 = vpop.f32.mrb[81].mxu1  ;;  %v10574_v48 = vld [vmem:[#allocation2 + $0xe8] sm:$0xff]  }
 0x22a   : > { %v9728_v62 = vpop.f32.mrb[75].mxu0  ;;  %v9606_v24 = vadd.f32 %v9605_v8, %v9604_v12  ;;  %v9607_v36 = vpop.f32.mrb[82].mxu1  ;;  %v6394_v30 = vcombine.high %v9269_v56, %v9269_v56  ;;  %9761 = vmatpush3.bf16.msra.mxu1 %v10574_v48 }
 0x22b   : > { %v9608_v31 = vpop.f32.mrb[83].mxu1  ;;  %9762 = vmatprep.subr.bf16.mxu1 %v10576_v43 }
 0x22c   : > { %v9609_v13 = vadd.f32 %v9608_v31, %v9607_v36  ;;  %v12983_v34 = vadd.f32 %v9606_v24, %v12815_v47  ;;  %v12994_v31 = vrot.slane %v9268_v50, %v12986_v49 }
 0x22e   : > { %15230 = vst [vmem:[#allocation31_spill] sm:$0xff] %v12983_v34  ;;  %v12989_v12 = vadd.f32 %v9609_v13, %v12825_v1  ;;  %v12999_v1 = vrot.slane %v6277_v44, %v12986_v49  ;;  %v10575_v13 = vld [vmem:[#allocation2 + $0x170] sm:$0xff]  }
 0x22f   : > { %v10088_v11 = vpop.f32.mrb[76].mxu0  ;;  %10122 = vmatprep.subr.bf16.mxu0 %v10575_v13 }
 0x230   : > { %15232 = vst [vmem:[#allocation29_spill] sm:$0xff] %v12989_v12  ;;  %v5601_v62 = vadd.f32 %v10088_v11, %v12880_v4  ;;  %v5592_v8 = vpop.f32.mrb[77].mxu0  ;;  %v9610_v24 = vpop.f32.mrb[84].mxu1  ;;  %v13002_v4 = vrot.slane %v9269_v56, %v12986_v49  ;;  %10123 = vmatpush3.bf16.msra.mxu0 %v10575_v13  ;;  %v13041_v13 = vadd.s32 16, %v15231_v54  ;;  %v10577_v12 = vld [vmem:[#allocation2 + $0xf0] sm:$0xff]  }
 0x231   : > { %v5593_v36 = vadd.f32 %v12876_v32, %v5592_v8  ;;  %v10089_v47 = vpop.f32.mrb[78].mxu0  ;;  %v9611_v34 = vpop.f32.mrb[85].mxu1  ;;  %v13011_v8 = vrot.slane %v6394_v30, %v12986_v49  ;;  %9763 = vmatpush3.bf16.msra.mxu1 %v10577_v12 }
 0x232   : > { %v5743_v16 = vcombine.high %v5601_v62, %v5601_v62  ;;  %v5604_v26 = vadd.f32 %v10089_v47, %v12882_v33  ;;  %v5595_v40 = vpop.f32.mrb[79].mxu0  ;;  %v13005_v32 = vrot.slane %v5601_v62, %v12986_v49  ;;  %v13008_v48 = vadd.f32 %v9611_v34, %v9610_v24  ;;  %v9613_v11 = vpop.f32.mrb[86].mxu1  ;;  %15233 = vst [vmem:[#allocation33_spill] sm:$0xff] %v13041_v13 }
 0x233   : > { %v5596_v50 = vadd.f32 %v12878_v59, %v5595_v40  ;;  %v5709_v33 = vcombine.high %v5593_v36, %v5593_v36  ;;  %v13014_v44 = vrot.slane %v5593_v36, %v12986_v49  ;;  %v9614_v47 = vpop.f32.mrb[87].mxu1  ;;  %v13024_v34 = vcombine.high %v12994_v31, %v12994_v31 }
 0x234   : > { %v13017_v56 = vrot.slane %v5743_v16, %v12986_v49  ;;  %v5760_v62 = vcombine.high %v5604_v26, %v5604_v26  ;;  %v13020_v59 = vrot.slane %v5604_v26, %v12986_v49  ;;  %v9615_v30 = vadd.f32 %v9614_v47, %v9613_v11 }
 0x235   : > { %v5726_v43 = vcombine.high %v5596_v50, %v5596_v50  ;;  %v13028_v36 = vcombine.high %v13002_v4, %v13002_v4  ;;  %v13032_v24 = vcombine.high %v12999_v1, %v12999_v1  ;;  %v13038_v40 = vcombine.high %v13011_v8, %v13011_v8 }
 0x236   : > { %v13043_v11 = vstv %s9270_s13  ;;  %v13046_v47 = vrot.slane %v5709_v33, %v12986_v49  ;;  %v13051_v51 = vrot.slane %v5596_v50, %v12986_v49  ;;  %v13057_v54 = vrot.slane %v5760_v62, %v12986_v49 }
 0x237   : > { %v10092_v26 = vpop.f32.mrb[80].mxu0  ;;  %15234 = vst [vmem:[#allocation30_spill] sm:$0xff] %v13043_v11  ;;  %v13063_v50 = vrot.slane %v5726_v43, %v12986_v49  ;;  %v13094_v12 = vadd.s32 1, %v13043_v11 }
 0x238   : > { %v5617_v16 = vadd.f32 %v10092_v26, %v12888_v38  ;;  %v5608_v23 = vpop.f32.mrb[81].mxu0  ;;  %v9616_v25 = vpop.f32.mrb[88].mxu1 }
 0x239   : > { %v5609_v33 = vadd.f32 %v12884_v35, %v5608_v23  ;;  %v10093_v53 = vpop.f32.mrb[82].mxu0  ;;  %v9617_v62 = vpop.f32.mrb[89].mxu1  ;;  %15235 = vst [vmem:[#allocation37_spill] sm:$0xff] %v13094_v12 }
 0x23a   : > { %v5811_v7 = vcombine.high %v5617_v16, %v5617_v16  ;;  %v13066_v38 = vrot.slane %v5617_v16, %v12986_v49  ;;  %v5620_v26 = vadd.f32 %v10093_v53, %v12890_v5  ;;  %v5611_v39 = vpop.f32.mrb[83].mxu0  ;;  %v9618_v23 = vadd.f32 %v9617_v62, %v9616_v25  ;;  %v9619_v13 = vpop.f32.mrb[90].mxu1 }
 0x23b   : > { %v5777_v18 = vcombine.high %v5609_v33, %v5609_v33  ;;  %v13070_v10 = vrot.slane %v5609_v33, %v12986_v49  ;;  %v5612_v35 = vadd.f32 %v12886_v27, %v5611_v39  ;;  %v9620_v53 = vpop.f32.mrb[91].mxu1  ;;  %v13116_v33 = vadd.f32 %v9615_v30, %v12860_v60 }
 0x23c   : > { %v13076_v46 = vrot.slane %v5811_v7, %v12986_v49  ;;  %v5828_v16 = vcombine.high %v5620_v26, %v5620_v26  ;;  %v13079_v5 = vrot.slane %v5620_v26, %v12986_v49  ;;  %v13097_v13 = vadd.f32 %v9618_v23, %v12866_v29 }
 0x23d   : > { %v13084_v52 = vrot.slane %v5777_v18, %v12986_v49  ;;  %v5794_v27 = vcombine.high %v5612_v35, %v5612_v35  ;;  %v13087_v25 = vrot.slane %v5612_v35, %v12986_v49  ;;  %v13107_v53 = vadd.f32 %v13008_v48, %v12858_v41  ;;  %15238 = vst [vmem:[#allocation28_spill] sm:$0xff] %v13116_v33 }
 0x23e   : > { %15236 = vst [vmem:[#allocation15_spill] sm:$0xff] %v13097_v13  ;;  %v13110_v7 = vrot.slane %v5828_v16, %v12986_v49 }
 0x23f   : > { %v10096_v35 = vpop.f32.mrb[84].mxu0  ;;  %15237 = vst [vmem:[#allocation35_spill] sm:$0xff] %v13107_v53  ;;  %v13121_v26 = vrot.slane %v5794_v27, %v12986_v49 }
 0x240   : > { %v5633_v23 = vadd.f32 %v10096_v35, %v12902_v42  ;;  %v5624_v18 = vpop.f32.mrb[85].mxu0  ;;  %v10048_v39 = vpop.f32.mrb[20].mxu1 }
 0x241   : > { %v5625_v48 = vadd.f32 %v12892_v9, %v5624_v18  ;;  %v10097_v16 = vpop.f32.mrb[86].mxu0  ;;  %v10223_v35 = vadd.f32 %v12907_v14, %v10048_v39  ;;  %v4049_v62 = vpop.f32.mrb[21].mxu1 }
 0x242   : > { %v5879_v29 = vcombine.high %v5633_v23, %v5633_v23  ;;  %v13127_v42 = vrot.slane %v5633_v23, %v12986_v49  ;;  %v5636_v60 = vadd.f32 %v10097_v16, %v12904_v37  ;;  %v5627_v30 = vpop.f32.mrb[87].mxu0  ;;  %v13136_v9 = vadd.f32 %v12897_v45, %v4049_v62  ;;  %v13138_v18 = vpop.f32.mrb[22].mxu1 }
 0x243   : > { %v5845_v43 = vcombine.high %v5625_v48, %v5625_v48  ;;  %v13132_v27 = vrot.slane %v5625_v48, %v12986_v49  ;;  %v5628_v41 = vadd.f32 %v12894_v21, %v5627_v30  ;;  %v13148_v39 = vpop.f32.mrb[23].mxu1  ;;  %v10578_v30 = vld [vmem:[#allocation2 + $0x178] sm:$0xff]   ;;  %v4200_v33 = vcombine.high %v10223_v35, %v10223_v35 }
 0x244   : > { %15239 = vst [vmem:[#allocation38_spill] sm:$0xff] %v13127_v42  ;;  %v13143_v37 = vrot.slane %v5879_v29, %v12986_v49  ;;  %v5896_v16 = vcombine.high %v5636_v60, %v5636_v60  ;;  %v13146_v14 = vrot.slane %v5636_v60, %v12986_v49  ;;  %v4207_v11 = vrot.slane %v10223_v35, %v12986_v49 }
 0x245   : > { %15240 = vst [vmem:[#allocation39_spill] sm:$0xff] %v13132_v27  ;;  %v13153_v45 = vrot.slane %v5845_v43, %v12986_v49  ;;  %v5862_v62 = vcombine.high %v5628_v41, %v5628_v41  ;;  %v13156_v48 = vrot.slane %v5628_v41, %v12986_v49  ;;  %10124 = vmatprep.subr.bf16.mxu0 %v10578_v30 }
 0x246   : > { %15241 = vst [vmem:[#allocation36_spill] sm:$0xff] %v13143_v37  ;;  %15242 = vst [vmem:[#allocation34_spill] sm:$0xff] %v13146_v14  ;;  %v13163_v23 = vrot.slane %v5896_v16, %v12986_v49  ;;  %v4214_v21 = vrot.slane %v4200_v33, %v12986_v49  ;;  %10125 = vmatpush3.bf16.msra.mxu0 %v10578_v30  ;;  %v4215_v35 = vcombine.high %v4207_v11, %v4207_v11 }
 0x247   : > { %15243 = vst [vmem:[#allocation11_spill] sm:$0xff] %v13153_v45  ;;  %15244 = vst [vmem:[#allocation40_spill] sm:$0xff] %v13156_v48  ;;  %v10100_v53 = vpop.f32.mrb[88].mxu0  ;;  %v13173_v29 = vrot.slane %v5862_v62, %v12986_v49  ;;  %v6189_v14 = vadd.f32 %v13005_v32, %v4207_v11  ;;  %v15249_v11 = vcombine.high %v13005_v32, %v13005_v32 }
 0x248   : > { %15245 = vst [vmem:[#allocation13_spill] sm:$0xff] %v13163_v23  ;;  %v5649_v60 = vadd.f32 %v10100_v53, %v12922_v61  ;;  %v5640_v13 = vpop.f32.mrb[89].mxu0  ;;  %v13183_v62 = vpop.f32.mrb[24].mxu1  ;;  %v4216_v33 = vcombine.high %v4214_v21, %v4214_v21  ;;  %v4166_v27 = vcombine.high %v13136_v9, %v13136_v9  ;;  %v6191_v37 = vadd.f32 %v13017_v56, %v4214_v21 }
 0x249   : > { %15246 = vst [vmem:[#allocation12_spill] sm:$0xff] %v13173_v29  ;;  %v5641_v41 = vadd.f32 %v12912_v17, %v5640_v13  ;;  %v10101_v12 = vpop.f32.mrb[90].mxu0  ;;  %v13189_v30 = vpop.f32.mrb[25].mxu1  ;;  %v6190_v13 = vadd.f32 %v15249_v11, %v4215_v35 }
 0x24a   : > { %v5947_v45 = vcombine.high %v5649_v60, %v5649_v60  ;;  %v13186_v16 = vrot.slane %v5649_v60, %v12986_v49  ;;  %v5652_v61 = vadd.f32 %v10101_v12, %v12927_v58  ;;  %v5643_v53 = vpop.f32.mrb[91].mxu0  ;;  %v13198_v23 = vpop.f32.mrb[26].mxu1 }
 0x24b   : > { %v5913_v48 = vcombine.high %v5641_v41, %v5641_v41  ;;  %v13192_v43 = vrot.slane %v5641_v41, %v12986_v49  ;;  %v5644_v17 = vadd.f32 %v12917_v2, %v5643_v53  ;;  %v13208_v41 = vpop.f32.mrb[27].mxu1  ;;  %v6307_v21 = vmul.f32 %v12994_v31, %v6190_v13 }
 0x24c   : > { %15247 = vst [vmem:[#allocation19_spill] sm:$0xff] %v13186_v16  ;;  %v13201_v60 = vrot.slane %v5947_v45, %v12986_v49  ;;  %v5964_v58 = vcombine.high %v5652_v61, %v5652_v61  ;;  %v13204_v12 = vrot.slane %v5652_v61, %v12986_v49  ;;  %v15256_v45 = vcombine.high %v13017_v56, %v13017_v56 }
 0x24d   : > { %15248 = vst [vmem:[#allocation14_spill] sm:$0xff] %v13192_v43  ;;  %v13213_v32 = vrot.slane %v5913_v48, %v12986_v49  ;;  %v5930_v35 = vcombine.high %v5644_v17, %v5644_v17  ;;  %v13216_v53 = vrot.slane %v5644_v17, %v12986_v49  ;;  %v6306_v61 = vmul.f32 %v12994_v31, %v6189_v14 }
 0x24e   : > { %15250 = vst [vmem:[#allocation41_spill] sm:$0xff] %v13201_v60  ;;  %15251 = vst [vmem:[#allocation42_spill] sm:$0xff] %v13204_v12  ;;  %v13223_v11 = vrot.slane %v5964_v58, %v12986_v49  ;;  %v6192_v16 = vadd.f32 %v15256_v45, %v4216_v33  ;;  %v6308_v2 = vmul.f32 %v13024_v34, %v6191_v37 }
 0x24f   : > { %15252 = vst [vmem:[#allocation43_spill] sm:$0xff] %v13213_v32  ;;  %15253 = vst [vmem:[#allocation44_spill] sm:$0xff] %v13216_v53  ;;  %v13231_v17 = vrot.slane %v5930_v35, %v12986_v49  ;;  %v10104_v29 = vpop.f32.mrb[92].mxu0  ;;  %v4173_v56 = vrot.slane %v13136_v9, %v12986_v49  ;;  %v6424_v37 = vadd.f32 %v13002_v4, %v6307_v21 }
 0x250   : > { %15254 = vst [vmem:[#allocation45_spill] sm:$0xff] %v13223_v11  ;;  %v5656_v43 = vpop.f32.mrb[93].mxu0  ;;  %v6309_v35 = vmul.f32 %v12999_v1, %v6192_v16  ;;  %v5665_v12 = vadd.f32 %v10104_v29, %v12942_v0  ;;  %v13249_v45 = vpop.f32.mrb[28].mxu1  ;;  %v6425_v13 = vadd.f32 %v13028_v36, %v6308_v2  ;;  %v4180_v48 = vrot.slane %v4166_v27, %v12986_v49 }
 0x251   : > { %15255 = vst [vmem:[#allocation46_spill] sm:$0xff] %v13231_v17  ;;  %v13247_v33 = vpop.f32.mrb[94].mxu0  ;;  %v13258_v16 = vpop.f32.mrb[29].mxu1  ;;  %v13263_v9 = vadd.f32 %v13002_v4, %v6306_v61  ;;  %v4181_v53 = vcombine.high %v4173_v56, %v4173_v56  ;;  %v6514_v14 = vmax.f32 %v6424_v37, 0.0  ;;  %v6181_v61 = vadd.f32 %v13014_v44, %v4173_v56 }
 0x252   : > { %v13256_v58 = vpop.f32.mrb[95].mxu0  ;;  %v6015_v29 = vcombine.high %v5665_v12, %v5665_v12  ;;  %v13265_v32 = vpop.f32.mrb[30].mxu1  ;;  %v6515_v21 = vmax.f32 %v6425_v13, 0.0  ;;  %v13268_v2 = vrot.slane %v5665_v12, %v12986_v49  ;;  %v4182_v27 = vcombine.high %v4180_v48, %v4180_v48 }
 0x253   : > { %15257 = vst [vmem:[#allocation47_spill] sm:$0xff] %v13263_v9  ;;  %15258 = vst [vmem:[#allocation48_spill] sm:$0xff] %v13265_v32  ;;  %v13270_v11 = vpop.f32.mrb[31].mxu1  ;;  %v13273_v60 = vadd.f32 %v13011_v8, %v6309_v35  ;;  %v15262_v17 = vcombine.high %v13014_v44, %v13014_v44  ;;  %v6183_v12 = vadd.f32 %v13046_v47, %v4180_v48 }
 0x254   : > { %15259 = vst [vmem:[#allocation49_spill] sm:$0xff] %v13268_v2  ;;  %15260 = vst [vmem:[#allocation50_spill] sm:$0xff] %v13270_v11  ;;  %v13276_v0 = vrot.slane %v6015_v29, %v12986_v49  ;;  %v13282_v37 = vcombine.low %v6514_v14, %v6515_v21  ;;  %v15263_v13 = vcombine.high %v13046_v47, %v13046_v47 }
 0x255   : > { %v6182_v32 = vadd.f32 %v15262_v17, %v4181_v53  ;;  %v5657_v35 = vadd.f32 %v12932_v22, %v5656_v43  ;;  %v6298_v29 = vmul.f32 %v12994_v31, %v6181_v61  ;;  %v10227_v44 = vadd.f32 %v12910_v15, %v13138_v18  ;;  %v10579_v43 = vld [vmem:[#allocation2 + $0x138] sm:$0xff]  }
 0x256   : > { %15261 = vst [vmem:[#allocation51_spill] sm:$0xff] %v13276_v0  ;;  %v6184_v11 = vadd.f32 %v15263_v13, %v4182_v27  ;;  %v6300_v17 = vmul.f32 %v12999_v1, %v6183_v12  ;;  %v10580_v13 = vld [vmem:[#allocation2 + $0xf8] sm:$0xff]   ;;  %9764 = vmatprep.subr.bf16.mxu1 %v10579_v43 }
 0x257   : > { %v6299_v56 = vmul.f32 %v13024_v34, %v6182_v32  ;;  %v13294_v53 = vpop.f32.mrb[96].mxu0  ;;  %v5981_v14 = vcombine.high %v5657_v35, %v5657_v35  ;;  %v6415_v32 = vadd.f32 %v13002_v4, %v6298_v29  ;;  %v4217_v18 = vcombine.high %v10227_v44, %v10227_v44  ;;  %9765 = vmatpush3.bf16.msra.mxu1 %v10580_v13 }
 0x258   : > { %v6301_v47 = vmul.f32 %v13032_v24, %v6184_v11  ;;  %v13300_v22 = vpop.f32.mrb[97].mxu0  ;;  %v13306_v61 = vpop.f32.mrb[32].mxu1  ;;  %v6417_v12 = vadd.f32 %v13011_v8, %v6300_v17  ;;  %v13311_v42 = vrot.slane %v5657_v35, %v12986_v49  ;;  %v4224_v48 = vrot.slane %v10227_v44, %v12986_v49 }
 0x259   : > { %v6416_v15 = vadd.f32 %v13028_v36, %v6299_v56  ;;  %v10109_v27 = vpop.f32.mrb[98].mxu0  ;;  %15264 = vst [vmem:[#allocation52_spill] sm:$0xff] %v13306_v61  ;;  %v13316_v21 = vpop.f32.mrb[33].mxu1  ;;  %v6505_v29 = vmax.f32 %v6415_v32, 0.0  ;;  %v4231_v0 = vrot.slane %v4217_v18, %v12986_v49  ;;  %v15268_v13 = vcombine.high %v13020_v59, %v13020_v59  ;;  %v10581_v18 = vld [vmem:[#allocation2 + $0x80] sm:$0xff]  }
 0x25a   : > { %v6418_v11 = vadd.f32 %v13038_v40, %v6301_v47  ;;  %v13314_v9 = vpop.f32.mrb[99].mxu0  ;;  %15265 = vst [vmem:[#allocation53_spill] sm:$0xff] %v13316_v21  ;;  %v13319_v27 = vrot.slane %v5981_v14, %v12986_v49  ;;  %v13322_v17 = vpop.f32.mrb[34].mxu1  ;;  %v6507_v47 = vmax.f32 %v6417_v12, 0.0  ;;  %v4232_v2 = vcombine.high %v4224_v48, %v4224_v48  ;;  %10142 = vmatprep.subr.bf16.mxu0 %v10581_v18 }
 0x25b   : > { %v6506_v56 = vmax.f32 %v6416_v15, 0.0  ;;  %v13326_v61 = vpop.f32.mrb[35].mxu1  ;;  %v4233_v43 = vcombine.high %v4231_v0, %v4231_v0  ;;  %v6193_v32 = vadd.f32 %v13020_v59, %v4224_v48  ;;  %v6195_v14 = vadd.f32 %v13057_v54, %v4231_v0 }
 0x25c   : > { %v6508_v44 = vmax.f32 %v6418_v11, 0.0  ;;  %v6194_v12 = vadd.f32 %v15268_v13, %v4232_v2  ;;  %v5668_v11 = vadd.f32 %v13247_v33, %v12947_v28  ;;  %v15269_v48 = vcombine.high %v13057_v54, %v13057_v54 }
 0x25d   : > { %v13328_v21 = vcombine.low %v6505_v29, %v6506_v56  ;;  %v6310_v0 = vmul.f32 %v13032_v24, %v6193_v32  ;;  %v6516_v35 = vmax.f32 %v13273_v60, 0.0  ;;  %v10233_v18 = vadd.f32 %v12915_v20, %v13189_v30 }
 0x25e   : > { %v13332_v15 = vcombine.low %v6507_v47, %v6508_v44  ;;  %v6196_v56 = vadd.f32 %v15269_v48, %v4233_v43  ;;  %v6312_v47 = vmul.f32 %v13024_v34, %v6195_v14  ;;  %v6311_v44 = vmul.f32 %v12994_v31, %v6194_v12 }
 0x25f   : > { %15266 = vst [vmem:[#allocation54_spill] sm:$0xff] %v13328_v21  ;;  %v6032_v59 = vcombine.high %v5668_v11, %v5668_v11  ;;  %v13351_v2 = vrot.slane %v5668_v11, %v12986_v49  ;;  %v6427_v33 = vadd.f32 %v13038_v40, %v6310_v0  ;;  %v10229_v43 = vadd.f32 %v12900_v63, %v13148_v39 }
 0x260   : > { %15267 = vst [vmem:[#allocation55_spill] sm:$0xff] %v13332_v15  ;;  %v6429_v54 = vadd.f32 %v13028_v36, %v6312_v47  ;;  %v13359_v32 = vpop.f32.mrb[36].mxu1  ;;  %v6313_v60 = vmul.f32 %v12999_v1, %v6196_v56  ;;  %v6428_v13 = vadd.f32 %v13002_v4, %v6311_v44  ;;  %v5660_v12 = vadd.f32 %v12937_v57, %v13256_v58 }
 0x261   : > { %v13367_v11 = vpop.f32.mrb[37].mxu1  ;;  %v6517_v48 = vmax.f32 %v6427_v33, 0.0  ;;  %v13370_v47 = vrot.slane %v6032_v59, %v12986_v49  ;;  %v4183_v63 = vcombine.high %v10229_v43, %v10229_v43  ;;  %v4190_v56 = vrot.slane %v10229_v43, %v12986_v49 }
 0x262   : > { %v6519_v0 = vmax.f32 %v6429_v54, 0.0  ;;  %v13372_v39 = vpop.f32.mrb[38].mxu1  ;;  %v6518_v28 = vmax.f32 %v6428_v13, 0.0  ;;  %v5998_v44 = vcombine.high %v5660_v12, %v5660_v12  ;;  %v13383_v33 = vrot.slane %v5660_v12, %v12986_v49 }
 0x263   : > { %v13377_v29 = vpop.f32.mrb[39].mxu1  ;;  %v13379_v57 = vcombine.low %v6516_v35, %v6517_v48  ;;  %v4197_v58 = vrot.slane %v4183_v63, %v12986_v49  ;;  %v10231_v59 = vadd.f32 %v12925_v55, %v13183_v62  ;;  %v13388_v54 = vadd.f32 %v13011_v8, %v6313_v60 }
 0x264   : > { %v13390_v13 = vcombine.low %v6518_v28, %v6519_v0  ;;  %v4198_v14 = vcombine.high %v4190_v56, %v4190_v56  ;;  %v6185_v43 = vadd.f32 %v13051_v51, %v4190_v56  ;;  %v13397_v12 = vrot.slane %v5998_v44, %v12986_v49 }
 0x265   : > { %v4199_v48 = vcombine.high %v4197_v58, %v4197_v58  ;;  %v6187_v63 = vadd.f32 %v13063_v50, %v4197_v58  ;;  %v15270_v62 = vcombine.high %v13051_v51, %v13051_v51  ;;  %v15271_v56 = vcombine.high %v13063_v50, %v13063_v50 }
 0x266   : > { %v6302_v60 = vmul.f32 %v12994_v31, %v6185_v43  ;;  %v4268_v35 = vcombine.high %v10231_v59, %v10231_v59  ;;  %v4275_v21 = vrot.slane %v10231_v59, %v12986_v49  ;;  %v5681_v43 = vadd.f32 %v13294_v53, %v12974_v19 }
 0x267   : > { %v6186_v28 = vadd.f32 %v15270_v62, %v4198_v14  ;;  %v6188_v58 = vadd.f32 %v15271_v56, %v4199_v48  ;;  %v6304_v44 = vmul.f32 %v12999_v1, %v6187_v63  ;;  %v15273_v53 = vcombine.high %v13066_v38, %v13066_v38 }
 0x268   : > { %v13412_v55 = vpop.f32.mrb[40].mxu1  ;;  %v6419_v14 = vadd.f32 %v13002_v4, %v6302_v60  ;;  %v4282_v59 = vrot.slane %v4268_v35, %v12986_v49  ;;  %v4283_v63 = vcombine.high %v4275_v21, %v4275_v21  ;;  %v6205_v19 = vadd.f32 %v13066_v38, %v4275_v21 }
 0x269   : > { %v6303_v51 = vmul.f32 %v13024_v34, %v6186_v28  ;;  %v13420_v62 = vpop.f32.mrb[41].mxu1  ;;  %v6305_v50 = vmul.f32 %v13032_v24, %v6188_v58  ;;  %v6421_v48 = vadd.f32 %v13011_v8, %v6304_v44  ;;  %v13434_v44 = vrot.slane %v5681_v43, %v12986_v49 }
 0x26a   : > { %15272 = vst [vmem:[#allocation56_spill] sm:$0xff] %v13420_v62  ;;  %v10069_v56 = vpop.f32.mrb[42].mxu1  ;;  %v6509_v0 = vmax.f32 %v6419_v14, 0.0  ;;  %v4284_v30 = vcombine.high %v4282_v59, %v4282_v59  ;;  %v6206_v58 = vadd.f32 %v15273_v53, %v4283_v63  ;;  %v6207_v28 = vadd.f32 %v13076_v46, %v4282_v59 }
 0x26b   : > { %v6420_v60 = vadd.f32 %v13028_v36, %v6303_v51  ;;  %v6422_v20 = vadd.f32 %v13038_v40, %v6305_v50  ;;  %v13436_v35 = vpop.f32.mrb[43].mxu1  ;;  %v6511_v15 = vmax.f32 %v6421_v48, 0.0  ;;  %v6322_v51 = vmul.f32 %v12999_v1, %v6205_v19 }
 0x26c   : > { %v15274_v21 = vcombine.high %v13076_v46, %v13076_v46  ;;  %v6323_v62 = vmul.f32 %v13032_v24, %v6206_v58  ;;  %v4234_v38 = vcombine.high %v10233_v18, %v10233_v18  ;;  %v6324_v43 = vmul.f32 %v12994_v31, %v6207_v28 }
 0x26d   : > { %v6510_v56 = vmax.f32 %v6420_v60, 0.0  ;;  %v6512_v14 = vmax.f32 %v6422_v20, 0.0  ;;  %v6439_v53 = vadd.f32 %v13011_v8, %v6322_v51  ;;  %v4241_v48 = vrot.slane %v10233_v18, %v12986_v49 }
 0x26e   : > { %v6208_v50 = vadd.f32 %v15274_v21, %v4284_v30  ;;  %v6440_v19 = vadd.f32 %v13038_v40, %v6323_v62  ;;  %v4248_v46 = vrot.slane %v4234_v38, %v12986_v49  ;;  %v15277_v62 = vcombine.high %v13070_v10, %v13070_v10 }
 0x26f   : > { %v13444_v63 = vcombine.low %v6509_v0, %v6510_v56  ;;  %v13449_v60 = vcombine.low %v6511_v15, %v6512_v14  ;;  %v6441_v0 = vadd.f32 %v13002_v4, %v6324_v43  ;;  %v4249_v30 = vcombine.high %v4241_v48, %v4241_v48 }
 0x270   : > { %v6325_v20 = vmul.f32 %v12994_v31, %v6208_v50  ;;  %v6529_v15 = vmax.f32 %v6439_v53, 0.0  ;;  %v6530_v58 = vmax.f32 %v6440_v19, 0.0  ;;  %v4250_v56 = vcombine.high %v4248_v46, %v4248_v46 }
 0x271   : > { %15275 = vst [vmem:[#allocation57_spill] sm:$0xff] %v13444_v63  ;;  %15276 = vst [vmem:[#allocation58_spill] sm:$0xff] %v13449_v60  ;;  %v6531_v51 = vmax.f32 %v6441_v0, 0.0  ;;  %v6197_v14 = vadd.f32 %v13070_v10, %v4241_v48  ;;  %v6198_v21 = vadd.f32 %v15277_v62, %v4249_v30  ;;  %v6199_v50 = vadd.f32 %v13084_v52, %v4248_v46 }
 0x272   : > { %v13468_v43 = vcombine.low %v6529_v15, %v6530_v58  ;;  %v15278_v18 = vcombine.high %v13084_v52, %v13084_v52  ;;  %v5673_v19 = vadd.f32 %v12964_v3, %v13300_v22  ;;  %v6442_v48 = vadd.f32 %v13002_v4, %v6325_v20 }
 0x273   : > { %v6314_v0 = vmul.f32 %v13032_v24, %v6197_v14  ;;  %v6315_v10 = vmul.f32 %v12994_v31, %v6198_v21  ;;  %v6316_v46 = vmul.f32 %v12994_v31, %v6199_v50  ;;  %v6520_v15 = vmax.f32 %v13388_v54, 0.0 }
 0x274   : > { %v6200_v53 = vadd.f32 %v15278_v18, %v4250_v56  ;;  %v6049_v58 = vcombine.high %v5673_v19, %v5673_v19  ;;  %v13482_v62 = vrot.slane %v5673_v19, %v12986_v49  ;;  %v13485_v52 = vrot.slane %v6531_v51, %v12986_v49 }
 0x275   : > { %v6431_v3 = vadd.f32 %v13038_v40, %v6314_v0  ;;  %v6433_v22 = vadd.f32 %v13002_v4, %v6316_v46  ;;  %v10235_v20 = vadd.f32 %v12930_v6, %v13198_v23  ;;  %v6970_v18 = vrot.slane %v13468_v43, %v12986_v49  ;;  %v15279_v23 = vld [vmem:[#allocation16_spill] sm:$0xff] }
 0x276   : > { %v6317_v30 = vmul.f32 %v13024_v34, %v6200_v53  ;;  %v13494_v56 = vadd.f32 %v13002_v4, %v6315_v10  ;;  %v13498_v14 = vrot.slane %v6049_v58, %v12986_v49  ;;  %v6532_v53 = vmax.f32 %v6442_v48, 0.0  ;;  %v15280_v58 = vld [vmem:[#allocation25_spill] sm:$0xff] }
 0x277   : > { %v6521_v51 = vmax.f32 %v6431_v3, 0.0  ;;  %v4285_v50 = vcombine.high %v10235_v20, %v10235_v20  ;;  %v6523_v19 = vmax.f32 %v6433_v22, 0.0  ;;  %v4292_v6 = vrot.slane %v10235_v20, %v12986_v49  ;;  %v15281_v3 = vld [vmem:[#allocation18_spill] sm:$0xff]  ;;  %v15288_v20 = vld [vmem:[#allocation36_spill] sm:$0xff] }
 0x278   : > { %v6434_v54 = vadd.f32 %v13028_v36, %v6317_v30  ;;  %v10237_v46 = vadd.f32 %v15279_v23, %v13208_v41  ;;  %v5676_v38 = vadd.f32 %v15280_v58, %v13314_v9  ;;  %v10239_v28 = vadd.f32 %v15281_v3, %v13249_v45 }
 0x279   : > { %v13505_v10 = vcombine.low %v6520_v15, %v6521_v51  ;;  %v4299_v30 = vrot.slane %v4285_v50, %v12986_v49  ;;  %v4300_v48 = vcombine.high %v4292_v6, %v4292_v6  ;;  %v6209_v22 = vadd.f32 %v13079_v5, %v4292_v6 }
 0x27a   : > { %v6524_v0 = vmax.f32 %v6434_v54, 0.0  ;;  %v4251_v54 = vcombine.high %v10237_v46, %v10237_v46  ;;  %v4258_v15 = vrot.slane %v10237_v46, %v12986_v49  ;;  %v15282_v9 = vcombine.high %v13079_v5, %v13079_v5 }
 0x27b   : > { %v4301_v59 = vcombine.high %v4299_v30, %v4299_v30  ;;  %v6211_v41 = vadd.f32 %v13110_v7, %v4299_v30  ;;  %v6326_v50 = vmul.f32 %v13024_v34, %v6209_v22 }
 0x27c   : > { %v13512_v21 = vcombine.low %v6523_v19, %v6524_v0  ;;  %v6210_v45 = vadd.f32 %v15282_v9, %v4300_v48  ;;  %v4265_v19 = vrot.slane %v4251_v54, %v12986_v49  ;;  %v15283_v0 = vcombine.high %v13110_v7, %v13110_v7 }
 0x27d   : > { %v6328_v23 = vmul.f32 %v13032_v24, %v6211_v41  ;;  %v4266_v30 = vcombine.high %v4258_v15, %v4258_v15  ;;  %v6201_v46 = vadd.f32 %v13087_v25, %v4258_v15  ;;  %v6443_v3 = vadd.f32 %v13028_v36, %v6326_v50 }
 0x27e   : > { %v6212_v6 = vadd.f32 %v15283_v0, %v4301_v59  ;;  %v6327_v58 = vmul.f32 %v12999_v1, %v6210_v45  ;;  %v4267_v51 = vcombine.high %v4265_v19, %v4265_v19  ;;  %v6203_v5 = vadd.f32 %v13121_v26, %v4265_v19 }
 0x27f   : > { %v6445_v22 = vadd.f32 %v13038_v40, %v6328_v23  ;;  %v15284_v7 = vcombine.high %v13087_v25, %v13087_v25  ;;  %v6318_v54 = vmul.f32 %v12999_v1, %v6201_v46  ;;  %v6533_v15 = vmax.f32 %v6443_v3, 0.0 }
 0x280   : > { %v6329_v48 = vmul.f32 %v12994_v31, %v6212_v6  ;;  %v6444_v41 = vadd.f32 %v13011_v8, %v6327_v58  ;;  %v15285_v9 = vcombine.high %v13121_v26, %v13121_v26  ;;  %v6320_v50 = vmul.f32 %v12994_v31, %v6203_v5 }
 0x281   : > { %v6202_v59 = vadd.f32 %v15284_v7, %v4266_v30  ;;  %v6535_v0 = vmax.f32 %v6445_v22, 0.0  ;;  %v6435_v25 = vadd.f32 %v13011_v8, %v6318_v54  ;;  %v13548_v30 = vcombine.low %v6532_v53, %v6533_v15 }
 0x282   : > { %v6204_v45 = vadd.f32 %v15285_v9, %v4267_v51  ;;  %v6534_v23 = vmax.f32 %v6444_v41, 0.0  ;;  %v6437_v58 = vadd.f32 %v13002_v4, %v6320_v50  ;;  %v6946_v26 = vrot.slane %v13512_v21, %v12986_v49 }
 0x283   : > { %v6319_v6 = vmul.f32 %v13032_v24, %v6202_v59  ;;  %v6066_v3 = vcombine.high %v5676_v38, %v5676_v38  ;;  %v13556_v5 = vrot.slane %v5676_v38, %v12986_v49  ;;  %v13559_v22 = vadd.f32 %v13002_v4, %v6329_v48  ;;  %v15286_v48 = vld [vmem:[#allocation21_spill] sm:$0xff] }
 0x284   : > { %v6321_v46 = vmul.f32 %v13024_v34, %v6204_v45  ;;  %v13561_v7 = vcombine.low %v6534_v23, %v6535_v0  ;;  %v6525_v59 = vmax.f32 %v6435_v25, 0.0  ;;  %v6527_v15 = vmax.f32 %v6437_v58, 0.0 }
 0x285   : > { %v6436_v51 = vadd.f32 %v13038_v40, %v6319_v6  ;;  %v4336_v21 = vcombine.high %v10239_v28, %v10239_v28  ;;  %v13567_v45 = vrot.slane %v6066_v3, %v12986_v49  ;;  %v4343_v38 = vrot.slane %v10239_v28, %v12986_v49 }
 0x286   : > { %v6438_v53 = vadd.f32 %v13028_v36, %v6321_v46  ;;  %v10241_v50 = vadd.f32 %v15286_v48, %v13258_v16 }
 0x287   : > { %v6526_v41 = vmax.f32 %v6436_v51, 0.0  ;;  %v4350_v23 = vrot.slane %v4336_v21, %v12986_v49  ;;  %v4351_v58 = vcombine.high %v4343_v38, %v4343_v38  ;;  %v15287_v51 = vld [vmem:[#allocation38_spill] sm:$0xff] }
 0x288   : > { %v6528_v9 = vmax.f32 %v6438_v53, 0.0  ;;  %v6221_v53 = vadd.f32 %v15287_v51, %v4343_v38  ;;  %v4302_v3 = vcombine.high %v10241_v50, %v10241_v50  ;;  %v4309_v16 = vrot.slane %v10241_v50, %v12986_v49 }
 0x289   : > { %v6939_v6 = vcombine.low %v6525_v59, %v6526_v41  ;;  %v4352_v28 = vcombine.high %v4350_v23, %v4350_v23  ;;  %v6223_v19 = vadd.f32 %v15288_v20, %v4350_v23  ;;  %v15289_v59 = vcombine.high %v15287_v51, %v15287_v51 }
 0x28a   : > { %v6955_v46 = vcombine.low %v6527_v15, %v6528_v9  ;;  %v6338_v21 = vmul.f32 %v12994_v31, %v6221_v53  ;;  %v4316_v15 = vrot.slane %v4302_v3, %v12986_v49  ;;  %v15290_v38 = vcombine.high %v15288_v20, %v15288_v20  ;;  %v15291_v53 = vld [vmem:[#allocation39_spill] sm:$0xff] }
 0x28b   : > { %v6953_v54 = vrot.slane %v6939_v6, %v12986_v49  ;;  %v6222_v41 = vadd.f32 %v15289_v59, %v4351_v58  ;;  %v6340_v23 = vmul.f32 %v12999_v1, %v6223_v19  ;;  %v4317_v0 = vcombine.high %v4309_v16, %v4309_v16 }
 0x28c   : > { %v6963_v48 = vrot.slane %v6955_v46, %v12986_v49  ;;  %v6224_v6 = vadd.f32 %v15290_v38, %v4352_v28  ;;  %v6455_v58 = vadd.f32 %v13002_v4, %v6338_v21  ;;  %v4318_v51 = vcombine.high %v4316_v15, %v4316_v15 }
 0x28d   : > { %v13587_v9 = vcombine.low %v6946_v26, %v6953_v54  ;;  %v6339_v46 = vmul.f32 %v13024_v34, %v6222_v41  ;;  %v6457_v54 = vadd.f32 %v13011_v8, %v6340_v23  ;;  %v6213_v20 = vadd.f32 %v15291_v53, %v4309_v16 }
 0x28e   : > { %v13596_v50 = vcombine.low %v6963_v48, %v6970_v18  ;;  %v6341_v26 = vmul.f32 %v13032_v24, %v6224_v6  ;;  %v15292_v19 = vcombine.high %v15291_v53, %v15291_v53  ;;  %v6545_v43 = vmax.f32 %v6455_v58, 0.0  ;;  %v15293_v18 = vld [vmem:[#allocation11_spill] sm:$0xff]  ;;  %v15296_v58 = vld [vmem:[#allocation22_spill] sm:$0xff] }
 0x28f   : > { %v6456_v28 = vadd.f32 %v13028_v36, %v6339_v46  ;;  %v6215_v48 = vadd.f32 %v15293_v18, %v4316_v15  ;;  %v15294_v59 = vcombine.high %v15293_v18, %v15293_v18  ;;  %v6547_v38 = vmax.f32 %v6457_v54, 0.0  ;;  %v15295_v46 = vld [vmem:[#allocation48_spill] sm:$0xff]  ;;  %v15297_v18 = vld [vmem:[#allocation50_spill] sm:$0xff] }
 0x290   : > { %v6214_v3 = vadd.f32 %v15292_v19, %v4317_v0  ;;  %v6458_v21 = vadd.f32 %v13038_v40, %v6341_v26  ;;  %v6330_v6 = vmul.f32 %v13024_v34, %v6213_v20  ;;  %v10243_v19 = vadd.f32 %v15296_v58, %v15295_v46  ;;  %v15298_v26 = vld [vmem:[#allocation17_spill] sm:$0xff] }
 0x291   : > { %v6216_v41 = vadd.f32 %v15294_v59, %v4318_v51  ;;  %v6546_v23 = vmax.f32 %v6456_v28, 0.0  ;;  %v6332_v53 = vmul.f32 %v13032_v24, %v6215_v48  ;;  %v10245_v54 = vadd.f32 %v15298_v26, %v15297_v18  ;;  %v10588_v48 = vld [vmem:[#allocation2 + $0x40] sm:$0xff]  }
 0x292   : > { %v6331_v16 = vmul.f32 %v12999_v1, %v6214_v3  ;;  %v6548_v15 = vmax.f32 %v6458_v21, 0.0  ;;  %v6447_v25 = vadd.f32 %v13028_v36, %v6330_v6  ;;  %v6536_v3 = vmax.f32 %v13559_v22, 0.0  ;;  %9830 = vmatprep.subr.bf16.mxu1 %v10588_v48 }
 0x293   : > { %v6333_v0 = vmul.f32 %v12994_v31, %v6216_v41  ;;  %v13622_v59 = vcombine.low %v6545_v43, %v6546_v23  ;;  %v6449_v20 = vadd.f32 %v13038_v40, %v6332_v53  ;;  %v4353_v28 = vcombine.high %v10243_v19, %v10243_v19 }
 0x294   : > { %v6448_v51 = vadd.f32 %v13011_v8, %v6331_v16  ;;  %v13626_v41 = vcombine.low %v6547_v38, %v6548_v15  ;;  %v6537_v63 = vmax.f32 %v6447_v25, 0.0  ;;  %v4360_v21 = vrot.slane %v10243_v19, %v12986_v49  ;;  %v15302_v38 = vld [vmem:[#allocation34_spill] sm:$0xff]  ;;  %v15304_v19 = vld [vmem:[#allocation13_spill] sm:$0xff] }
 0x295   : > { %15299 = vst [vmem:[#allocation16_spill] sm:$0xff] %v13622_v59  ;;  %v6539_v16 = vmax.f32 %v6449_v20, 0.0  ;;  %v4367_v58 = vrot.slane %v4353_v28, %v12986_v49  ;;  %v4319_v43 = vcombine.high %v10245_v54, %v10245_v54  ;;  %v13633_v23 = vadd.f32 %v13002_v4, %v6333_v0 }
 0x296   : > { %15300 = vst [vmem:[#allocation25_spill] sm:$0xff] %v13626_v41  ;;  %v6538_v46 = vmax.f32 %v6448_v51, 0.0  ;;  %v13635_v22 = vcombine.low %v6536_v3, %v6537_v63  ;;  %v4368_v53 = vcombine.high %v4360_v21, %v4360_v21  ;;  %v6225_v15 = vadd.f32 %v15302_v38, %v4360_v21 }
 0x297   : > { %v4369_v51 = vcombine.high %v4367_v58, %v4367_v58  ;;  %v6227_v18 = vadd.f32 %v15304_v19, %v4367_v58  ;;  %v4326_v26 = vrot.slane %v10245_v54, %v12986_v49  ;;  %v15305_v28 = vcombine.high %v15302_v38, %v15302_v38 }
 0x298   : > { %15301 = vst [vmem:[#allocation18_spill] sm:$0xff] %v13635_v22  ;;  %v13638_v25 = vcombine.low %v6538_v46, %v6539_v16  ;;  %v6342_v63 = vmul.f32 %v12994_v31, %v6225_v15  ;;  %v4333_v3 = vrot.slane %v4319_v43, %v12986_v49  ;;  %v15306_v46 = vcombine.high %v15304_v19, %v15304_v19 }
 0x299   : > { %v6226_v0 = vadd.f32 %v15305_v28, %v4368_v53  ;;  %v6344_v54 = vmul.f32 %v13024_v34, %v6227_v18  ;;  %v4334_v16 = vcombine.high %v4326_v26, %v4326_v26  ;;  %v15307_v28 = vld [vmem:[#allocation40_spill] sm:$0xff] }
 0x29a   : > { %15303 = vst [vmem:[#allocation21_spill] sm:$0xff] %v13638_v25  ;;  %v6228_v21 = vadd.f32 %v15306_v46, %v4369_v51  ;;  %v4335_v53 = vcombine.high %v4333_v3, %v4333_v3  ;;  %v6217_v15 = vadd.f32 %v15307_v28, %v4326_v26  ;;  %v13660_v43 = vadd.f32 %v13002_v4, %v6342_v63  ;;  %v15310_v46 = vld [vmem:[#allocation12_spill] sm:$0xff] }
 0x29b   : > { %v6343_v38 = vmul.f32 %v12994_v31, %v6226_v0  ;;  %v6461_v20 = vadd.f32 %v13028_v36, %v6344_v54  ;;  %v15309_v19 = vcombine.high %v15307_v28, %v15307_v28  ;;  %v6219_v18 = vadd.f32 %v15310_v46, %v4333_v3 }
 0x29c   : > { %15308 = vst [vmem:[#allocation38_spill] sm:$0xff] %v13660_v43  ;;  %v6345_v48 = vmul.f32 %v12999_v1, %v6228_v21  ;;  %v15311_v0 = vcombine.high %v15310_v46, %v15310_v46  ;;  %v6334_v26 = vmul.f32 %v12994_v31, %v6217_v15 }
 0x29d   : > { %v6218_v51 = vadd.f32 %v15309_v19, %v4334_v16  ;;  %v6460_v58 = vadd.f32 %v13002_v4, %v6343_v38  ;;  %v6551_v54 = vmax.f32 %v6461_v20, 0.0  ;;  %v6336_v16 = vmul.f32 %v12999_v1, %v6219_v18  ;;  %v15312_v38 = vld [vmem:[#allocation52_spill] sm:$0xff] }
 0x29e   : > { %v6220_v6 = vadd.f32 %v15311_v0, %v4335_v53  ;;  %v6451_v21 = vadd.f32 %v13002_v4, %v6334_v26  ;;  %v15313_v19 = vld [vmem:[#allocation24_spill] sm:$0xff]  ;;  %v15314_v0 = vld [vmem:[#allocation53_spill] sm:$0xff] }
 0x29f   : > { %v6335_v60 = vmul.f32 %v13024_v34, %v6218_v51  ;;  %v6550_v28 = vmax.f32 %v6460_v58, 0.0  ;;  %v10247_v59 = vadd.f32 %v15313_v19, %v15312_v38  ;;  %v6453_v46 = vadd.f32 %v13011_v8, %v6336_v16  ;;  %v15315_v20 = vld [vmem:[#allocation20_spill] sm:$0xff] }
 0x2a0   : > { %v6337_v3 = vmul.f32 %v13032_v24, %v6220_v6  ;;  %v10249_v63 = vadd.f32 %v15315_v20, %v15314_v0  ;;  %v6462_v51 = vadd.f32 %v13011_v8, %v6345_v48  ;;  %v6541_v26 = vmax.f32 %v6451_v21, 0.0  ;;  %v15318_v48 = vld [vmem:[#allocation19_spill] sm:$0xff] }
 0x2a1   : > { %v6452_v15 = vadd.f32 %v13028_v36, %v6335_v60  ;;  %v13687_v18 = vcombine.low %v6550_v28, %v6551_v54  ;;  %v4404_v58 = vcombine.high %v10247_v59, %v10247_v59  ;;  %v4411_v38 = vrot.slane %v10247_v59, %v12986_v49 }
 0x2a2   : > { %v6454_v6 = vadd.f32 %v13038_v40, %v6337_v3  ;;  %v4370_v19 = vcombine.high %v10249_v63, %v10249_v63  ;;  %v6543_v53 = vmax.f32 %v6453_v46, 0.0  ;;  %v4377_v16 = vrot.slane %v10249_v63, %v12986_v49 }
 0x2a3   : > { %15316 = vst [vmem:[#allocation36_spill] sm:$0xff] %v13687_v18  ;;  %v6542_v41 = vmax.f32 %v6452_v15, 0.0  ;;  %v4418_v60 = vrot.slane %v4404_v58, %v12986_v49  ;;  %v4419_v0 = vcombine.high %v4411_v38, %v4411_v38  ;;  %v6237_v54 = vadd.f32 %v15318_v48, %v4411_v38  ;;  %v15319_v15 = vld [vmem:[#allocation41_spill] sm:$0xff] }
 0x2a4   : > { %v6544_v43 = vmax.f32 %v6454_v6, 0.0  ;;  %v4384_v28 = vrot.slane %v4370_v19, %v12986_v49  ;;  %v4385_v59 = vcombine.high %v4377_v16, %v4377_v16  ;;  %v15320_v46 = vcombine.high %v15318_v48, %v15318_v48  ;;  %v15322_v19 = vld [vmem:[#allocation14_spill] sm:$0xff] }
 0x2a5   : > { %v13693_v22 = vcombine.low %v6541_v26, %v6542_v41  ;;  %v4420_v21 = vcombine.high %v4418_v60, %v4418_v60  ;;  %v6239_v20 = vadd.f32 %v15319_v15, %v4418_v60  ;;  %v6354_v58 = vmul.f32 %v12999_v1, %v6237_v54 }
 0x2a6   : > { %v13697_v3 = vcombine.low %v6543_v53, %v6544_v43  ;;  %v6238_v6 = vadd.f32 %v15320_v46, %v4419_v0  ;;  %v4386_v63 = vcombine.high %v4384_v28, %v4384_v28  ;;  %v6552_v41 = vmax.f32 %v6462_v51, 0.0  ;;  %v15324_v51 = vld [vmem:[#allocation43_spill] sm:$0xff] }
 0x2a7   : > { %15317 = vst [vmem:[#allocation39_spill] sm:$0xff] %v13693_v22  ;;  %v15321_v38 = vcombine.high %v15319_v15, %v15319_v15  ;;  %v6356_v53 = vmul.f32 %v12994_v31, %v6239_v20  ;;  %v6229_v60 = vadd.f32 %v15322_v19, %v4377_v16  ;;  %v6471_v48 = vadd.f32 %v13011_v8, %v6354_v58 }
 0x2a8   : > { %v6355_v25 = vmul.f32 %v13032_v24, %v6238_v6  ;;  %v15323_v0 = vcombine.high %v15322_v19, %v15322_v19  ;;  %v6231_v46 = vadd.f32 %v15324_v51, %v4384_v28 }
 0x2a9   : > { %v6240_v43 = vadd.f32 %v15321_v38, %v4420_v21  ;;  %v6473_v18 = vadd.f32 %v13002_v4, %v6356_v53  ;;  %v15325_v21 = vcombine.high %v15324_v51, %v15324_v51  ;;  %v6346_v16 = vmul.f32 %v13032_v24, %v6229_v60 }
 0x2aa   : > { %v6230_v54 = vadd.f32 %v15323_v0, %v4385_v59  ;;  %v6472_v6 = vadd.f32 %v13038_v40, %v6355_v25  ;;  %v6348_v59 = vmul.f32 %v13024_v34, %v6231_v46  ;;  %v6561_v38 = vmax.f32 %v6471_v48, 0.0  ;;  %v15326_v0 = vld [vmem:[#allocation26_spill] sm:$0xff]  ;;  %v15327_v46 = vld [vmem:[#allocation23_spill] sm:$0xff] }
 0x2ab   : > { %v6357_v26 = vmul.f32 %v13024_v34, %v6240_v43  ;;  %v6232_v15 = vadd.f32 %v15325_v21, %v4386_v63  ;;  %v6563_v43 = vmax.f32 %v6473_v18, 0.0  ;;  %v6463_v53 = vadd.f32 %v13038_v40, %v6346_v16 }
 0x2ac   : > { %v6347_v58 = vmul.f32 %v12994_v31, %v6230_v54  ;;  %v6562_v19 = vmax.f32 %v6472_v6, 0.0  ;;  %v6465_v60 = vadd.f32 %v13028_v36, %v6348_v59  ;;  %v10251_v51 = vadd.f32 %v15326_v0, %v13322_v17  ;;  %v15331_v0 = vld [vmem:[#allocation45_spill] sm:$0xff]  ;;  %v15335_v17 = vld [vmem:[#allocation46_spill] sm:$0xff] }
 0x2ad   : > { %v6474_v28 = vadd.f32 %v13028_v36, %v6357_v26  ;;  %v6349_v25 = vmul.f32 %v12999_v1, %v6232_v15  ;;  %v6553_v54 = vmax.f32 %v6463_v53, 0.0  ;;  %v10253_v20 = vadd.f32 %v15327_v46, %v13326_v61 }
 0x2ae   : > { %v6464_v63 = vadd.f32 %v13002_v4, %v6347_v58  ;;  %v13737_v26 = vcombine.low %v6561_v38, %v6562_v19  ;;  %v6555_v48 = vmax.f32 %v6465_v60, 0.0  ;;  %v4421_v16 = vcombine.high %v10251_v51, %v10251_v51 }
 0x2af   : > { %v6564_v21 = vmax.f32 %v6474_v28, 0.0  ;;  %v13741_v58 = vcombine.low %v6552_v41, %v6553_v54  ;;  %v4428_v59 = vrot.slane %v10251_v51, %v12986_v49  ;;  %v4387_v22 = vcombine.high %v10253_v20, %v10253_v20  ;;  %v15330_v41 = vld [vmem:[#allocation42_spill] sm:$0xff] }
 0x2b0   : > { %15328 = vst [vmem:[#allocation11_spill] sm:$0xff] %v13737_v26  ;;  %v6554_v18 = vmax.f32 %v6464_v63, 0.0  ;;  %v4435_v28 = vrot.slane %v4421_v16, %v12986_v49  ;;  %v4394_v61 = vrot.slane %v10253_v20, %v12986_v49  ;;  %v15332_v54 = vcombine.high %v15330_v41, %v15330_v41 }
 0x2b1   : > { %v13739_v6 = vcombine.low %v6563_v43, %v6564_v21  ;;  %v6466_v43 = vadd.f32 %v13011_v8, %v6349_v25  ;;  %v4436_v53 = vcombine.high %v4428_v59, %v4428_v59  ;;  %v6241_v19 = vadd.f32 %v15330_v41, %v4428_v59 }
 0x2b2   : > { %v13746_v15 = vcombine.low %v6554_v18, %v6555_v48  ;;  %v4437_v60 = vcombine.high %v4435_v28, %v4435_v28  ;;  %v6243_v51 = vadd.f32 %v15331_v0, %v4435_v28  ;;  %v4401_v21 = vrot.slane %v4387_v22, %v12986_v49  ;;  %v15333_v48 = vld [vmem:[#allocation44_spill] sm:$0xff] }
 0x2b3   : > { %15329 = vst [vmem:[#allocation48_spill] sm:$0xff] %v13739_v6  ;;  %v6242_v20 = vadd.f32 %v15332_v54, %v4436_v53  ;;  %v6358_v46 = vmul.f32 %v12999_v1, %v6241_v19  ;;  %v4402_v18 = vcombine.high %v4394_v61, %v4394_v61  ;;  %v6233_v25 = vadd.f32 %v15333_v48, %v4394_v61  ;;  %v15343_v61 = vld [vmem:[#allocation37_spill] sm:$0xff] }
 0x2b4   : > { %v15334_v16 = vcombine.high %v15331_v0, %v15331_v0  ;;  %v6360_v63 = vmul.f32 %v12994_v31, %v6243_v51  ;;  %v4403_v38 = vcombine.high %v4401_v21, %v4401_v21  ;;  %v6235_v28 = vadd.f32 %v15335_v17, %v4401_v21 }
 0x2b5   : > { %v6359_v22 = vmul.f32 %v13032_v24, %v6242_v20  ;;  %v6475_v6 = vadd.f32 %v13011_v8, %v6358_v46  ;;  %v15336_v53 = vcombine.high %v15333_v48, %v15333_v48  ;;  %v6350_v19 = vmul.f32 %v13032_v24, %v6233_v25 }
 0x2b6   : > { %v6244_v59 = vadd.f32 %v15334_v16, %v4437_v60  ;;  %v15337_v0 = vcombine.high %v15335_v17, %v15335_v17  ;;  %v6352_v21 = vmul.f32 %v12994_v31, %v6235_v28  ;;  %v13783_v20 = vadd.f32 %v13002_v4, %v6360_v63 }
 0x2b7   : > { %v6234_v41 = vadd.f32 %v15336_v53, %v4402_v18  ;;  %v6476_v54 = vadd.f32 %v13038_v40, %v6359_v22  ;;  %v6467_v18 = vadd.f32 %v13038_v40, %v6350_v19  ;;  %v6565_v25 = vmax.f32 %v6475_v6, 0.0  ;;  %v15341_v6 = vld [vmem:[#allocation32_spill] sm:$0xff] }
 0x2b8   : > { %v6361_v60 = vmul.f32 %v12994_v31, %v6244_v59  ;;  %v6236_v51 = vadd.f32 %v15337_v0, %v4403_v38  ;;  %15338 = vst [vmem:[#allocation22_spill] sm:$0xff] %v13783_v20  ;;  %v6469_v17 = vadd.f32 %v13002_v4, %v6352_v21  ;;  %v6556_v28 = vmax.f32 %v6466_v43, 0.0 }
 0x2b9   : > { %v6351_v46 = vmul.f32 %v12994_v31, %v6234_v41  ;;  %v6566_v38 = vmax.f32 %v6476_v54, 0.0  ;;  %v6557_v22 = vmax.f32 %v6467_v18, 0.0  ;;  %v15340_v41 = vld [vmem:[#allocation31_spill] sm:$0xff]  ;;  %vm6611_vm2 = vcmp.ge.s32.totalorder %v15343_v61, 0 }
 0x2ba   : > { %v13788_v48 = vadd.f32 %v13002_v4, %v6361_v60  ;;  %v6353_v16 = vmul.f32 %v13024_v34, %v6236_v51  ;;  %v10255_v19 = vadd.f32 %v15340_v41, %v13359_v32  ;;  %v10257_v60 = vadd.f32 %v15341_v6, %v13367_v11  ;;  %v15346_v32 = vld [vmem:[#allocation10_spill] sm:$0xff] }
 0x2bb   : > { %v13793_v59 = vadd.f32 %v13002_v4, %v6351_v46  ;;  %v13803_v51 = vcombine.low %v6565_v25, %v6566_v38  ;;  %v6559_v21 = vmax.f32 %v6469_v17, 0.0  ;;  %v13805_v54 = vcombine.low %v6556_v28, %v6557_v22  ;;  %v15344_v25 = vld [vmem:[#allocation29_spill] sm:$0xff] }
 0x2bc   : > { %v6470_v53 = vadd.f32 %v13028_v36, %v6353_v16  ;;  %v4472_v46 = vcombine.high %v10255_v19, %v10255_v19  ;;  %v4479_v18 = vrot.slane %v10255_v19, %v12986_v49  ;;  %v4438_v63 = vcombine.high %v10257_v60, %v10257_v60 }
 0x2bd   : > { %15339 = vst [vmem:[#allocation50_spill] sm:$0xff] %v13793_v59  ;;  %15342 = vst [vmem:[#allocation17_spill] sm:$0xff] %v13803_v51  ;;  %vm6621_vm3 = vcmp.lt.s32.totalorder %v15343_v61, 16  ;;  %v4445_v11 = vrot.slane %v10257_v60, %v12986_v49  ;;  %v6568_v16 = vmax.f32 %v13788_v48, 0.0  ;;  %v10259_v17 = vadd.f32 %v15344_v25, %v13372_v39 }
 0x2be   : > { %v6560_v43 = vmax.f32 %v6470_v53, 0.0  ;;  %v4486_v28 = vrot.slane %v4472_v46, %v12986_v49  ;;  %v4487_v22 = vcombine.high %v4479_v18, %v4479_v18  ;;  %v15345_v53 = vld [vmem:[#allocation49_spill] sm:$0xff]  ;;  %v4452_v6 = vrot.slane %v4438_v63, %v12986_v49  ;;  %vm13861_vm6 = vmand %vm6611_vm2, %vm6621_vm3 }
 0x2bf   : > { %v6253_v41 = vadd.f32 %v15345_v53, %v4479_v18  ;;  %v4453_v0 = vcombine.high %v4445_v11, %v4445_v11  ;;  %v6245_v60 = vadd.f32 %v13311_v42, %v4445_v11  ;;  %vm15103_vm4 = vcmp.ge.s32.totalorder %v15346_v32, 1 }
 0x2c0   : > { %v13815_v38 = vcombine.low %v6559_v21, %v6560_v43  ;;  %v4488_v48 = vcombine.high %v4486_v28, %v4486_v28  ;;  %v15347_v39 = vcombine.high %v15345_v53, %v15345_v53  ;;  %v15348_v43 = vld [vmem:[#allocation51_spill] sm:$0xff]  ;;  %v4489_v25 = vcombine.high %v10259_v17, %v10259_v17  ;;  %v15351_v53 = vld [vmem:[#allocation33_spill] sm:$0xff]  ;;  %vm13890_vm7 = vmand %vm13861_vm6, %vm15103_vm4 }
 0x2c1   : > { %v6255_v46 = vadd.f32 %v15348_v43, %v4486_v28  ;;  %v6370_v18 = vmul.f32 %v12994_v31, %v6253_v41  ;;  %v4454_v20 = vcombine.high %v4452_v6, %v4452_v6  ;;  %v15349_v19 = vcombine.high %v13311_v42, %v13311_v42  ;;  %vm15099_vm9 = vmpackc.low %vm13861_vm6, %vm13890_vm7 }
 0x2c2   : > { %v6254_v21 = vadd.f32 %v15347_v39, %v4487_v22  ;;  %v6247_v51 = vadd.f32 %v13319_v27, %v4452_v6  ;;  %v15350_v11 = vcombine.high %v15348_v43, %v15348_v43  ;;  %v6362_v28 = vmul.f32 %v13024_v34, %v6245_v60 }
 0x2c3   : > { %v6246_v63 = vadd.f32 %v15349_v19, %v4453_v0  ;;  %v6372_v22 = vmul.f32 %v12999_v1, %v6255_v46  ;;  %vm15102_vm5 = vcmp.le.s32.totalorder %v15351_v53, 16  ;;  %v6487_v41 = vadd.f32 %v13002_v4, %v6370_v18 }
 0x2c4   : > { %v6256_v26 = vadd.f32 %v15350_v11, %v4488_v48  ;;  %v6371_v59 = vmul.f32 %v13024_v34, %v6254_v21  ;;  %v15352_v42 = vcombine.high %v13319_v27, %v13319_v27  ;;  %v6364_v6 = vmul.f32 %v13032_v24, %v6247_v51  ;;  %vm6681_vm8 = vmand %vm13861_vm6, %vm15102_vm5 }
 0x2c5   : > { %v6363_v19 = vmul.f32 %v12999_v1, %v6246_v63  ;;  %v6489_v21 = vadd.f32 %v13011_v8, %v6372_v22  ;;  %v6479_v60 = vadd.f32 %v13028_v36, %v6362_v28  ;;  %v6577_v46 = vmax.f32 %v6487_v41, 0.0 }
 0x2c6   : > { %v6248_v0 = vadd.f32 %v15352_v42, %v4454_v20  ;;  %v6373_v48 = vmul.f32 %v13032_v24, %v6256_v26  ;;  %v6488_v39 = vadd.f32 %v13028_v36, %v6371_v59  ;;  %v6481_v27 = vadd.f32 %v13038_v40, %v6364_v6 }
 0x2c7   : > { %v6480_v18 = vadd.f32 %v13011_v8, %v6363_v19  ;;  %v6569_v26 = vmax.f32 %v6479_v60, 0.0  ;;  %v6579_v11 = vmax.f32 %v6489_v21, 0.0  ;;  %v4496_v22 = vrot.slane %v10259_v17, %v12986_v49 }
 0x2c8   : > { %v6490_v20 = vadd.f32 %v13038_v40, %v6373_v48  ;;  %v6578_v63 = vmax.f32 %v6488_v39, 0.0  ;;  %v6365_v51 = vmul.f32 %v12994_v31, %v6248_v0  ;;  %v6571_v42 = vmax.f32 %v6481_v27, 0.0 }
 0x2c9   : > { %v6570_v59 = vmax.f32 %v6480_v18, 0.0  ;;  %v15353_v28 = vmov 0  ;;  %v13867_v6 = vcombine.low %v6568_v16, %v6569_v26  ;;  %v4503_v0 = vrot.slane %v4489_v25, %v12986_v49 }
 0x2ca   : > { %v15354_v28 = vsel %vm13861_vm6, 4294967295, %v15353_v28  ;;  %v6580_v41 = vmax.f32 %v6490_v20, 0.0  ;;  %v13865_v19 = vcombine.low %v6577_v46, %v6578_v63  ;;  %v4504_v39 = vcombine.high %v4496_v22, %v4496_v22  ;;  %v10601_v46 = vld [vmem:[#allocation2 + $0x58] sm:$0xff]  }
 0x2cb   : > { %15355 = vst [vmem:[#allocation34_spill] sm:$0xff] %v15354_v28  ;;  %v13870_v48 = vcombine.low %v6570_v59, %v6571_v42  ;;  %v6257_v17 = vadd.f32 %v13351_v2, %v4496_v22  ;;  %v15356_v21 = vrot.slane %v13379_v57, %v12986_v49  ;;  %v15357_v61 = vrot.slane %v13282_v37, %v12986_v49 }
 0x2cc   : > { %v13881_v18 = vcombine.low %v6579_v11, %v6580_v41  ;;  %v13884_v16 = vadd.f32 %v13002_v4, %v6365_v51  ;;  %v4505_v25 = vcombine.high %v4503_v0, %v4503_v0  ;;  %v15358_v27 = vmov 0 }
 0x2cd   : > { %v6913_v60 = vcombine.low %v15357_v61, %v15356_v21  ;;  %v15359_v27 = vsel %vm13890_vm7, 4294967295, %v15358_v27  ;;  %v15361_v57 = vcombine.high %v13351_v2, %v13351_v2  ;;  %v6259_v63 = vadd.f32 %v13370_v47, %v4503_v0 }
 0x2ce   : > { %15360 = vst [vmem:[#allocation13_spill] sm:$0xff] %v15359_v27  ;;  %v6374_v51 = vmul.f32 %v12994_v31, %v6257_v17  ;;  %v15362_v11 = vcombine.high %v13370_v47, %v13370_v47  ;;  %v15363_v2 = vrot.slane %v13505_v10, %v12986_v49  ;;  %v15364_v42 = vrot.slane %v13390_v13, %v12986_v49 }
 0x2cf   : > { %v6258_v20 = vadd.f32 %v15361_v57, %v4504_v39  ;;  %v15365_v41 = vmax.f32 %v13494_v56, 0.0  ;;  %v6376_v17 = vmul.f32 %v12999_v1, %v6259_v63  ;;  %v7299_v47 = vsel %vm13890_vm7, %v6913_v60, 0.0 }
 0x2d0   : > { %v6260_v59 = vadd.f32 %v15362_v11, %v4505_v25  ;;  %v6930_v22 = vcombine.low %v15364_v42, %v15363_v2  ;;  %v6491_v21 = vadd.f32 %v13002_v4, %v6374_v51  ;;  %v15367_v2 = vld [vmem:[#allocation27_spill] sm:$0xff] }
 0x2d1   : > { %v6937_v0 = vrot.slane %v15365_v41, %v12986_v49  ;;  %v6375_v39 = vmul.f32 %v13024_v34, %v6258_v20  ;;  %v6493_v20 = vadd.f32 %v13011_v8, %v6376_v17  ;;  %v10261_v42 = vadd.f32 %v15367_v2, %v13377_v29  ;;  %v15369_v51 = vld [vmem:[#allocation15_spill] sm:$0xff] }
 0x2d2   : > { %v6377_v61 = vmul.f32 %v13032_v24, %v6260_v59  ;;  %v7300_v10 = vsel %vm13861_vm6, %v6930_v22, 0.0  ;;  %v13927_v25 = vpack.c.bf16 %v6930_v22, %v6913_v60  ;;  %v6581_v41 = vmax.f32 %v6491_v21, 0.0 }
 0x2d3   : > { %v7301_v13 = vsel %vm6681_vm8, %v6937_v0, 0.0  ;;  %v6492_v57 = vadd.f32 %v13028_v36, %v6375_v39  ;;  %v7328_v63 = vpack.c.bf16 %v7300_v10, %v7299_v47  ;;  %v6583_v22 = vmax.f32 %v6493_v20, 0.0 }
 0x2d4   : > { %15366 = vst [vmem:[#allocation40_spill] sm:$0xff] %v13927_v25  ;;  %v6494_v11 = vadd.f32 %v13038_v40, %v6377_v61  ;;  %v7329_v59 = vpack.c.bf16 %v7301_v13, %v7301_v13  ;;  %v4455_v56 = vcombine.high %v10261_v42, %v10261_v42  ;;  %v4462_v39 = vrot.slane %v10261_v42, %v12986_v49 }
 0x2d5   : > { %v6582_v60 = vmax.f32 %v6492_v57, 0.0  ;;  %v7499_v0 = vrot.slane %v7328_v63, 1  ;;  %v7361_v47 = vshll.u32 %v7328_v63, 16  ;;  %v10263_v61 = vadd.f32 %v15369_v51, %v13412_v55 }
 0x2d6   : > { %v6584_v37 = vmax.f32 %v6494_v11, 0.0  ;;  %v7500_v26 = vrot.slane %v7329_v59, 1  ;;  %v7366_v10 = vshll.u32 %v7329_v59, 16  ;;  %v4469_v21 = vrot.slane %v4455_v56, %v12986_v49 }
 0x2d7   : > { %v13939_v17 = vcombine.low %v6581_v41, %v6582_v60  ;;  %v4470_v57 = vcombine.high %v4462_v39, %v4462_v39  ;;  %v6249_v20 = vadd.f32 %v13383_v33, %v4462_v39  ;;  %v6572_v11 = vmax.f32 %v13884_v16, 0.0 }
 0x2d8   : > { %v13943_v13 = vcombine.low %v6583_v22, %v6584_v37  ;;  %v13946_v29 = vsel %vm15101_vm1, %v7499_v0, %v7500_v26  ;;  %v7359_v2 = vshrl.u32 %v7328_v63, 16  ;;  %v7363_v42 = vrot.slane %v7361_v47, 1  ;;  %v15372_v22 = vld [vmem:[#allocation30_spill] sm:$0xff] }
 0x2d9   : > { %15368 = vst [vmem:[#allocation12_spill] sm:$0xff] %v13939_v17  ;;  %15370 = vst [vmem:[#allocation52_spill] sm:$0xff] %v13946_v29  ;;  %10126 = vmatprep.mubr.bf16.mxu0 %v13946_v29  ;;  %v4471_v59 = vcombine.high %v4469_v21, %v4469_v21  ;;  %v15371_v55 = vcombine.high %v13383_v33, %v13383_v33  ;;  %v6251_v51 = vadd.f32 %v13397_v12, %v4469_v21  ;;  %v15374_v33 = vld [vmem:[#allocation56_spill] sm:$0xff] }
 0x2da   : > { %v7368_v26 = vrot.slane %v7366_v10, 1  ;;  %v6366_v41 = vmul.f32 %v13024_v34, %v6249_v20  ;;  %v7364_v56 = vor.u32 %v7363_v42, %v7359_v2  ;;  %v4546_v60 = vrot.slane %v10263_v61, %v12986_v49  ;;  %v15375_v10 = vld [vmem:[#allocation35_spill] sm:$0xff] }
 0x2db   : > { %v6250_v37 = vadd.f32 %v15371_v55, %v4470_v57  ;;  %v6602_v0 = vadd.s32 2, %v15372_v22  ;;  %v15373_v16 = vcombine.high %v13397_v12, %v13397_v12  ;;  %v6368_v47 = vmul.f32 %v13032_v24, %v6251_v51  ;;  %v10589_v57 = vld [vmem:[#allocation2] sm:$0xff]   ;;  %v10593_v42 = vld [vmem:[#allocation2 + $0x48] sm:$0xff]  }
 0x2dc   : > { %v10265_v21 = vadd.f32 %v15375_v10, %v15374_v33  ;;  %v6483_v61 = vadd.f32 %v13028_v36, %v6366_v41  ;;  %v13972_v20 = vsel %vm15100_vm0, %v7364_v56, %v7368_v26  ;;  %v4547_v12 = vcombine.high %v4546_v60, %v4546_v60  ;;  %v10594_v33 = vld [vmem:[#allocation2 + $0x8] sm:$0xff]  }
 0x2dd   : > { %v6252_v63 = vadd.f32 %v15373_v16, %v4471_v59  ;;  %v6367_v39 = vmul.f32 %v12999_v1, %v6250_v37  ;;  %15376 = vst [vmem:[#allocation24_spill] sm:$0xff] %v13972_v20  ;;  %v6269_v2 = vadd.f32 %v13434_v44, %v4546_v60  ;;  %v6485_v37 = vadd.f32 %v13038_v40, %v6368_v47 }
 0x2de   : > { %7809 = vmatprep.mubr.bf16.mxu1 %v13972_v20  ;;  %vm6612_vm10 = vcmp.ge.s32.totalorder %v6602_v0, 0  ;;  %v6573_v51 = vmax.f32 %v6483_v61, 0.0  ;;  %v15377_v26 = vcombine.high %v13434_v44, %v13434_v44  ;;  %vm6622_vm11 = vcmp.lt.s32.totalorder %v6602_v0, 16  ;;  %v10606_v20 = vld [vmem:[#allocation2 + $0x20] sm:$0xff]  }
 0x2df   : > { %v6369_v59 = vmul.f32 %v12994_v31, %v6252_v63  ;;  %v6484_v55 = vadd.f32 %v13011_v8, %v6367_v39  ;;  %9297 = vmatmul.mubr.msk.bf16.vlgmr.msra.gmra.mrb[92].mxu1 %vm15099_vm9, %v13927_v25  ;;  %v6386_v56 = vmul.f32 %v13032_v24, %v6269_v2  ;;  %v6575_v63 = vmax.f32 %v6485_v37, 0.0  ;;  %vm13991_vm12 = vmand %vm6612_vm10, %vm6622_vm11 }
 0x2e0   : > { %v6270_v41 = vadd.f32 %v15377_v26, %v4547_v12  ;;  %v4506_v47 = vcombine.high %v10265_v21, %v10265_v21  ;;  %9831 = vmatpush3.bf16.msra.mxu1 %v10589_v57  ;;  %v13995_v10 = vcombine.low %v6572_v11, %v6573_v51  ;;  %vm14005_vm13 = vmand %vm13991_vm12, %vm15103_vm4  ;;  %v7303_v57 = vsel %vm13991_vm12, %v13596_v50, 0.0  ;;  %v10597_v11 = vld [vmem:[#allocation2 + $0x50] sm:$0xff]  }
 0x2e1   : > { %v6574_v16 = vmax.f32 %v6484_v55, 0.0  ;;  %v13999_v61 = vadd.f32 %v13038_v40, %v6386_v56  ;;  %9832 = vmatprep.subr.bf16.mxu1 %v10593_v42  ;;  %vm6684_vm14 = vmand %vm13991_vm12, %vm15102_vm5  ;;  %v4513_v55 = vrot.slane %v10265_v21, %v12986_v49  ;;  %v14023_v51 = vadd.f32 %v13002_v4, %v6369_v59  ;;  %v10582_v59 = vld [vmem:[#allocation2 + $0x88] sm:$0xff]  }
 0x2e2   : > { %v6387_v44 = vmul.f32 %v12994_v31, %v6270_v41  ;;  %v4520_v37 = vrot.slane %v4506_v47, %v12986_v49  ;;  %v7302_v26 = vsel %vm14005_vm13, %v13587_v9, 0.0  ;;  %v7304_v41 = vsel %vm6684_vm14, %v13485_v52, 0.0  ;;  %v10598_v47 = vld [vmem:[#allocation2 + $0x10] sm:$0xff]   ;;  %vm14088_vm3 = vmpackc.low %vm13991_vm12, %vm14005_vm13 }
 0x2e3   : > { %v14014_v2 = vcombine.low %v6574_v16, %v6575_v63  ;;  %v7330_v16 = vpack.c.bf16 %v7303_v57, %v7302_v26  ;;  %v7331_v63 = vpack.c.bf16 %v7304_v41, %v7304_v41  ;;  %v4521_v21 = vcombine.high %v4513_v55, %v4513_v55  ;;  %v15383_v57 = vld [vmem:[#allocation28_spill] sm:$0xff] }
 0x2e4   : > { %v14032_v56 = vadd.f32 %v13002_v4, %v6387_v44  ;;  %9833 = vmatpush3.bf16.msra.mxu1 %v10594_v33  ;;  %v4522_v60 = vcombine.high %v4520_v37, %v4520_v37  ;;  %v6261_v12 = vadd.f32 %v13482_v62, %v4513_v55  ;;  %v6263_v42 = vadd.f32 %v13498_v14, %v4520_v37 }
 0x2e5   : > { %9834 = vmatprep.subr.bf16.mxu1 %v10597_v11  ;;  %v7502_v43 = vrot.slane %v7330_v16, 1  ;;  %v7503_v27 = vrot.slane %v7331_v63, 1  ;;  %v15382_v52 = vcombine.high %v13482_v62, %v13482_v62  ;;  %v10267_v26 = vadd.f32 %v15383_v57, %v13436_v35 }
 0x2e6   : > { %v15384_v41 = vcombine.high %v13498_v14, %v13498_v14  ;;  %v6378_v37 = vmul.f32 %v12994_v31, %v6261_v12  ;;  %v6380_v11 = vmul.f32 %v13024_v34, %v6263_v42  ;;  %v7371_v12 = vshrl.u32 %v7330_v16, 16  ;;  %v10605_v42 = vld [vmem:[#allocation2 + $0x60] sm:$0xff]  }
 0x2e7   : > { %v6262_v44 = vadd.f32 %v15382_v52, %v4521_v21  ;;  %v14050_v28 = vsel %vm15101_vm1, %v7502_v43, %v7503_v27  ;;  %v4523_v21 = vcombine.high %v10267_v26, %v10267_v26  ;;  %v4530_v35 = vrot.slane %v10267_v26, %v12986_v49  ;;  %v10602_v52 = vld [vmem:[#allocation2 + $0x18] sm:$0xff]   ;;  %v10630_v27 = vld [vmem:[#allocation2 + $0x80] sm:$0xff]  }
 0x2e8   : > { %v6264_v55 = vadd.f32 %v15384_v41, %v4522_v60  ;;  %15385 = vst [vmem:[#allocation53_spill] sm:$0xff] %v14050_v28  ;;  %9835 = vmatpush3.bf16.msra.mxu1 %v10598_v47  ;;  %10127 = vmatmul.mubr.bf16.vlgmr.msra.gmra.mrb[100].mxu0 %v14050_v28  ;;  %v6497_v60 = vadd.f32 %v13028_v36, %v6380_v11  ;;  %v7373_v57 = vshll.u32 %v7330_v16, 16  ;;  %v10583_v16 = vld [vmem:[#allocation2 + $0x90] sm:$0xff]   ;;  %v7378_v29 = vshll.u32 %v7331_v63, 16  ;;  %v10584_v63 = vld [vmem:[#allocation2 + $0x98] sm:$0xff]  }
 0x2e9   : > { %v6379_v62 = vmul.f32 %v12994_v31, %v6262_v44  ;;  %9836 = vmatprep.subr.bf16.mxu1 %v10601_v46  ;;  %10143 = vmatpush3.bf16.msra.mxu0 %v10630_v27  ;;  %v4537_v44 = vrot.slane %v4523_v21, %v12986_v49  ;;  %v4538_v41 = vcombine.high %v4530_v35, %v4530_v35 }
 0x2ea   : > { %v6381_v14 = vmul.f32 %v12999_v1, %v6264_v55  ;;  %v6265_v47 = vadd.f32 %v13556_v5, %v4530_v35  ;;  %v14061_v26 = vadd.f32 %v13002_v4, %v6378_v37  ;;  %v6587_v33 = vmax.f32 %v6497_v60, 0.0  ;;  %10144 = vmatprep.subr.bf16.mxu0 %v10582_v59 }
 0x2eb   : > { %v6496_v43 = vadd.f32 %v13002_v4, %v6379_v62  ;;  %v7375_v11 = vrot.slane %v7373_v57, 1  ;;  %v4539_v25 = vcombine.high %v4537_v44, %v4537_v44  ;;  %v15386_v62 = vcombine.high %v13556_v5, %v13556_v5 }
 0x2ec   : > { %v6498_v55 = vadd.f32 %v13011_v8, %v6381_v14  ;;  %v6267_v21 = vadd.f32 %v13567_v45, %v4537_v44  ;;  %9837 = vmatpush3.bf16.msra.mxu1 %v10602_v52  ;;  %v6382_v35 = vmul.f32 %v13032_v24, %v6265_v47  ;;  %v10609_v14 = vld [vmem:[#allocation2 + $0x68] sm:$0xff]   ;;  %v15387_v57 = vcombine.high %v13567_v45, %v13567_v45  ;;  %v15398_v47 = vld [vmem:[#allocation18_spill] sm:$0xff] }
 0x2ed   : > { %v6586_v46 = vmax.f32 %v6496_v43, 0.0  ;;  %v6266_v27 = vadd.f32 %v15386_v62, %v4538_v41  ;;  %v7376_v28 = vor.u32 %v7375_v11, %v7371_v12  ;;  %9838 = vmatprep.subr.bf16.mxu1 %v10605_v42  ;;  %10145 = vmatpush3.bf16.msra.mxu0 %v10582_v59  ;;  %v7380_v44 = vrot.slane %v7378_v29, 1  ;;  %v15396_v59 = vld [vmem:[#allocation21_spill] sm:$0xff] }
 0x2ee   : > { %v6588_v37 = vmax.f32 %v6498_v55, 0.0  ;;  %v6268_v43 = vadd.f32 %v15387_v57, %v4539_v25  ;;  %v6384_v5 = vmul.f32 %v13024_v34, %v6267_v21  ;;  %v6499_v52 = vadd.f32 %v13038_v40, %v6382_v35  ;;  %10146 = vmatprep.subr.bf16.mxu0 %v10583_v16  ;;  %v10610_v34 = vld [vmem:[#allocation2 + $0x28] sm:$0xff]   ;;  %v10614_v35 = vld [vmem:[#allocation2 + $0x30] sm:$0xff]  }
 0x2ef   : > { %v7225_v60 = vcombine.low %v6586_v46, %v6587_v33  ;;  %v6383_v17 = vmul.f32 %v12994_v31, %v6266_v27  ;;  %v6540_v24 = vmax.f32 %v13633_v23, 0.0  ;;  %v6603_v12 = vadd.s32 3, %v15372_v22  ;;  %v10626_v23 = vld [vmem:[#allocation2 + $0x228] sm:$0xff]  }
 0x2f0   : > { %v6385_v42 = vmul.f32 %v12999_v1, %v6268_v43  ;;  %v6501_v31 = vadd.f32 %v13028_v36, %v6384_v5  ;;  %9839 = vmatpush3.bf16.msra.mxu1 %v10606_v20  ;;  %v6589_v25 = vmax.f32 %v6499_v52, 0.0  ;;  %v14082_v40 = vsel %vm15100_vm0, %v7376_v28, %v7380_v44  ;;  %v10613_v1 = vld [vmem:[#allocation2 + $0x70] sm:$0xff]   ;;  %v10617_v5 = vld [vmem:[#allocation2 + $0x78] sm:$0xff]  }
 0x2f1   : > { %v7233_v33 = vrot.slane %v7225_v60, %v12986_v49  ;;  %v6500_v45 = vadd.f32 %v13002_v4, %v6383_v17  ;;  %vm6613_vm15 = vcmp.ge.s32.totalorder %v6603_v12, 0  ;;  %vm6623_vm2 = vcmp.lt.s32.totalorder %v6603_v12, 16  ;;  %9840 = vmatprep.subr.bf16.mxu1 %v10609_v14  ;;  %7817 = vmatprep.mubr.bf16.mxu1 %v14082_v40  ;;  %v15401_v60 = vld [vmem:[#allocation39_spill] sm:$0xff] }
 0x2f2   : > { %v6502_v4 = vadd.f32 %v13011_v8, %v6385_v42  ;;  %v6591_v17 = vmax.f32 %v6501_v31, 0.0  ;;  %vm14094_vm8 = vmand %vm6613_vm15, %vm6623_vm2  ;;  %v15392_v29 = vrot.slane %v13561_v7, %v12986_v49  ;;  %v15393_v20 = vrot.slane %v13548_v30, %v12986_v49  ;;  %10147 = vmatpush3.bf16.msra.mxu0 %v10583_v16  ;;  %v10585_v16 = vld [vmem:[#allocation2 + $0xa0] sm:$0xff]  }
 0x2f3   : > { %v6590_v36 = vmax.f32 %v6500_v45, 0.0  ;;  %v7226_v0 = vcombine.low %v6588_v37, %v6589_v25  ;;  %vm14110_vm10 = vmand %vm14094_vm8, %vm15103_vm4  ;;  %v15397_v41 = vrot.slane %v15396_v59, %v12986_v49  ;;  %v15399_v7 = vrot.slane %v15398_v47, %v12986_v49  ;;  %10148 = vmatprep.subr.bf16.mxu0 %v10584_v63 }
 0x2f4   : > { %v14104_v39 = vcombine.low %v15393_v20, %v15392_v29  ;;  %v7019_v30 = vrot.slane %v6540_v24, %v12986_v49  ;;  %v14125_v11 = vpack.c.bf16 %v13596_v50, %v13587_v9  ;;  %v6592_v46 = vmax.f32 %v6502_v4, 0.0  ;;  %vm6687_vm11 = vmand %vm14094_vm8, %vm15102_vm5  ;;  %9841 = vmatpush3.bf16.msra.mxu1 %v10610_v34  ;;  %v15406_v34 = vld [vmem:[#allocation16_spill] sm:$0xff]  ;;  %v10586_v4 = vld [vmem:[#allocation2 + $0xa8] sm:$0xff]  }
 0x2f5   : > { %v14120_v55 = vcombine.low %v15399_v7, %v15397_v41  ;;  %v14127_v62 = vcombine.low %v6590_v36, %v6591_v17  ;;  %v6604_v21 = vadd.s32 4, %v15372_v22  ;;  %v7240_v9 = vrot.slane %v7226_v0, %v12986_v49  ;;  %9842 = vmatprep.subr.bf16.mxu1 %v10613_v1  ;;  %v15412_v41 = vld [vmem:[#allocation38_spill] sm:$0xff] }
 0x2f6   : > { %v7305_v27 = vsel %vm14110_vm10, %v14104_v39, 0.0  ;;  %v7307_v37 = vsel %vm6687_vm11, %v7019_v30, 0.0  ;;  %9300 = vmatmul.mubr.msk.bf16.gmra.mrb[96].mxu1 %vm14088_vm3, %v14125_v11  ;;  %v15400_v14 = vrot.slane %v13697_v3, %v12986_v49  ;;  %v15402_v57 = vrot.slane %v15401_v60, %v12986_v49  ;;  %10149 = vmatpush3.bf16.msra.mxu0 %v10584_v63  ;;  %v15404_v3 = vld [vmem:[#allocation25_spill] sm:$0xff] }
 0x2f7   : > { %v7306_v50 = vsel %vm14094_vm8, %v14120_v55, 0.0  ;;  %v15403_v44 = vmax.f32 %v13999_v61, 0.0  ;;  %v7333_v42 = vpack.c.bf16 %v7307_v37, %v7307_v37  ;;  %v14157_v45 = vcombine.low %v7233_v33, %v7240_v9  ;;  %10150 = vmatprep.subr.bf16.mxu0 %v10585_v16  ;;  %v10618_v33 = vld [vmem:[#allocation2 + $0x38] sm:$0xff]   ;;  %v15415_v9 = vld [vmem:[#allocation36_spill] sm:$0xff] }
 0x2f8   : > { %v14150_v43 = vcombine.low %v15402_v57, %v15400_v14  ;;  %v7332_v12 = vpack.c.bf16 %v7306_v50, %v7305_v27  ;;  %vm6614_vm12 = vcmp.ge.s32.totalorder %v6604_v21, 0  ;;  %vm6624_vm13 = vcmp.lt.s32.totalorder %v6604_v21, 16  ;;  %9843 = vmatpush3.bf16.msra.mxu1 %v10614_v35 }
 0x2f9   : > { %v14155_v24 = vcombine.low %v6592_v46, %v15403_v44  ;;  %v15405_v31 = vrot.slane %v15404_v3, %v12986_v49  ;;  %v15407_v25 = vrot.slane %v15406_v34, %v12986_v49  ;;  %v6585_v61 = vmax.f32 %v14061_v26, 0.0  ;;  %vm14168_vm14 = vmand %vm6614_vm12, %vm6624_vm13  ;;  %9844 = vmatprep.subr.bf16.mxu1 %v10617_v5  ;;  %v10587_v44 = vld [vmem:[#allocation2 + $0xb0] sm:$0xff]  }
 0x2fa   : > { %v7505_v36 = vrot.slane %v7332_v12, 1  ;;  %v7506_v17 = vrot.slane %v7333_v42, 1  ;;  %v7383_v29 = vshrl.u32 %v7332_v12, 16  ;;  %v7385_v20 = vshll.u32 %v7332_v12, 16  ;;  %vm14176_vm15 = vmand %vm14168_vm14, %vm15103_vm4  ;;  %10151 = vmatpush3.bf16.msra.mxu0 %v10585_v16 }
 0x2fb   : > { %v14165_v1 = vcombine.low %v15407_v25, %v15405_v31  ;;  %v7390_v0 = vshll.u32 %v7333_v42, 16  ;;  %v15413_v47 = vmax.f32 %v15412_v41, 0.0  ;;  %vm6690_vm2 = vmand %vm14168_vm14, %vm15102_vm5  ;;  %v7308_v27 = vsel %vm14176_vm15, %v14150_v43, 0.0  ;;  %10152 = vmatprep.subr.bf16.mxu0 %v10586_v4 }
 0x2fc   : > { %v14187_v46 = vsel %vm15101_vm1, %v7505_v36, %v7506_v17  ;;  %v6605_v21 = vadd.s32 5, %v15372_v22  ;;  %v15414_v35 = vrot.slane %v13741_v58, %v12986_v49  ;;  %v15416_v50 = vrot.slane %v15415_v9, %v12986_v49  ;;  %vm14218_vm13 = vmpackc.low %vm14094_vm8, %vm14110_vm10  ;;  %9845 = vmatpush3.bf16.msra.mxu1 %v10618_v33 }
 0x2fd   : > { %v7060_v7 = vrot.slane %v15413_v47, %v12986_v49  ;;  %v7309_v30 = vsel %vm14168_vm14, %v14165_v1, 0.0  ;;  %10130 = vmatprep.mubr.bf16.mxu0 %v14187_v46  ;;  %v7387_v14 = vrot.slane %v7385_v20, 1  ;;  %v7392_v60 = vrot.slane %v7390_v0, 1  ;;  %v10590_v47 = vld [vmem:[#allocation2 + $0xb8] sm:$0xff]  }
 0x2fe   : > { %v14203_v37 = vcombine.low %v15416_v50, %v15414_v35  ;;  %v7334_v5 = vpack.c.bf16 %v7309_v30, %v7308_v27  ;;  %vm6615_vm11 = vcmp.ge.s32.totalorder %v6605_v21, 0  ;;  %vm6625_vm12 = vcmp.lt.s32.totalorder %v6605_v21, 16  ;;  %10153 = vmatpush3.bf16.msra.mxu0 %v10586_v4 }
 0x2ff   : > { %v7310_v57 = vsel %vm6690_vm2, %v7060_v7, 0.0  ;;  %v15417_v58 = vrot.slane %v13805_v54, %v12986_v49  ;;  %v15418_v42 = vrot.slane %v13746_v15, %v12986_v49  ;;  %v15419_v16 = vmov 0  ;;  %vm14222_vm2 = vmand %vm6615_vm11, %vm6625_vm12  ;;  %v15423_v54 = vld [vmem:[#allocation50_spill] sm:$0xff]  ;;  %10154 = vmatprep.subr.bf16.mxu0 %v10587_v44 }
 0x300   : > { %v7335_v12 = vpack.c.bf16 %v7310_v57, %v7310_v57  ;;  %v15420_v16 = vsel %vm14218_vm13, 4294967295, %v15419_v16  ;;  %v7388_v31 = vor.u32 %v7387_v14, %v7383_v29  ;;  %v7508_v34 = vrot.slane %v7334_v5, 1  ;;  %vm14237_vm8 = vmand %vm14222_vm2, %vm15103_vm4 }
 0x301   : > { %v14212_v3 = vcombine.low %v15418_v42, %v15417_v58  ;;  %v15424_v15 = vmax.f32 %v15423_v54, 0.0  ;;  %v14231_v8 = vpack.c.bf16 %v14120_v55, %v14104_v39  ;;  %v7395_v33 = vshrl.u32 %v7334_v5, 16  ;;  %vm6693_vm10 = vmand %vm14222_vm2, %vm15102_vm5  ;;  %v15432_v58 = vld [vmem:[#allocation17_spill] sm:$0xff] }
 0x302   : > { %v7509_v28 = vrot.slane %v7335_v12, 1  ;;  %v7397_v20 = vshll.u32 %v7334_v5, 16  ;;  %v14245_v0 = vsel %vm15100_vm0, %v7388_v31, %v7392_v60  ;;  %v7311_v39 = vsel %vm14237_vm8, %v14203_v37, 0.0  ;;  %v15429_v60 = vld [vmem:[#allocation11_spill] sm:$0xff]  ;;  %v15434_v31 = vld [vmem:[#allocation48_spill] sm:$0xff]  ;;  %10155 = vmatpush3.bf16.msra.mxu0 %v10587_v44 }
 0x303   : > { %v7101_v36 = vrot.slane %v15424_v15, %v12986_v49  ;;  %v7312_v29 = vsel %vm14222_vm2, %v14212_v3, 0.0  ;;  %v7402_v55 = vshll.u32 %v7335_v12, 16  ;;  %v6606_v41 = vadd.s32 6, %v15372_v22  ;;  %7825 = vmatprep.mubr.bf16.mxu1 %v14245_v0  ;;  %10156 = vmatprep.subr.bf16.mxu0 %v10590_v47 }
 0x304   : > { %v14257_v4 = vsel %vm15101_vm1, %v7508_v34, %v7509_v28  ;;  %v7336_v30 = vpack.c.bf16 %v7312_v29, %v7311_v39  ;;  %v7399_v27 = vrot.slane %v7397_v20, 1  ;;  %9303 = vmatmul.mubr.msk.bf16.gmra.mrb[100].mxu1 %vm14218_vm13, %v14231_v8  ;;  %v15430_v57 = vrot.slane %v15429_v60, %v12986_v49  ;;  %v10591_v39 = vld [vmem:[#allocation2 + $0x1c0] sm:$0xff]  }
 0x305   : > { %v7313_v7 = vsel %vm6693_vm10, %v7101_v36, 0.0  ;;  %10131 = vmatmul.mubr.bf16.gmra.mrb[104].mxu0 %v14257_v4  ;;  %v7404_v35 = vrot.slane %v7402_v55, 1  ;;  %vm6616_vm11 = vcmp.ge.s32.totalorder %v6606_v41, 0  ;;  %vm6626_vm12 = vcmp.lt.s32.totalorder %v6606_v41, 16 }
 0x306   : > { %v7337_v21 = vpack.c.bf16 %v7313_v7, %v7313_v7  ;;  %v7511_v9 = vrot.slane %v7336_v30, 1  ;;  %v7400_v50 = vor.u32 %v7399_v27, %v7395_v33  ;;  %vm14263_vm9 = vmand %vm6616_vm11, %vm6626_vm12  ;;  %v15431_v5 = vrot.slane %v13815_v38, %v12986_v49  ;;  %v15438_v38 = vld [vmem:[#allocation22_spill] sm:$0xff]  ;;  %10157 = vmatpush3.bf16.msra.mxu0 %v10590_v47 }
 0x307   : > { %v15433_v42 = vrot.slane %v15432_v58, %v12986_v49  ;;  %v15435_v34 = vrot.slane %v15434_v31, %v12986_v49  ;;  %vm14287_vm10 = vmand %vm14263_vm9, %vm15103_vm4  ;;  %v15439_v28 = vmax.f32 %v15438_v38, 0.0  ;;  %v6576_v33 = vmax.f32 %v14023_v51, 0.0  ;;  %9910 = vmatprep.subr.bf16.mxu0 %v10591_v39 }
 0x308   : > { %v14273_v12 = vcombine.low %v15431_v5, %v15430_v57  ;;  %v7512_v15 = vrot.slane %v7337_v21, 1  ;;  %v6607_v20 = vadd.s32 7, %v15372_v22  ;;  %v14297_v44 = vsel %vm15100_vm0, %v7400_v50, %v7404_v35  ;;  %vm6696_vm11 = vmand %vm14263_vm9, %vm15102_vm5 }
 0x309   : > { %v14281_v54 = vcombine.low %v15435_v34, %v15433_v42  ;;  %v7142_v29 = vrot.slane %v15439_v28, %v12986_v49  ;;  %v15440_v41 = vrot.slane %v13870_v48, %v12986_v49  ;;  %v15441_v7 = vrot.slane %v13867_v6, %v12986_v49  ;;  %7833 = vmatprep.mubr.bf16.mxu1 %v14297_v44 }
 0x30a   : > { %v7314_v55 = vsel %vm14287_vm10, %v14273_v12, 0.0  ;;  %v14318_v35 = vsel %vm15101_vm1, %v7511_v9, %v7512_v15  ;;  %vm6617_vm12 = vcmp.ge.s32.totalorder %v6607_v20, 0  ;;  %vm6627_vm0 = vcmp.lt.s32.totalorder %v6607_v20, 16 }
 0x30b   : > { %v7315_v51 = vsel %vm14263_vm9, %v14281_v54, 0.0  ;;  %v14315_v27 = vcombine.low %v15441_v7, %v15440_v41  ;;  %v7316_v50 = vsel %vm6696_vm11, %v7142_v29, 0.0  ;;  %10134 = vmatprep.mubr.bf16.mxu0 %v14318_v35  ;;  %v15442_v48 = vrot.slane %v14014_v2, %v12986_v49  ;;  %vm14339_vm11 = vmpackc.low %vm14168_vm14, %vm14176_vm15 }
 0x30c   : > { %v14321_v60 = vpack.c.bf16 %v7315_v51, %v7314_v55  ;;  %v14324_v57 = vpack.c.bf16 %v7316_v50, %v7316_v50  ;;  %v15443_v6 = vrot.slane %v13995_v10, %v12986_v49  ;;  %v7183_v9 = vrot.slane %v6576_v33, %v12986_v49  ;;  %vm14344_vm1 = vmand %vm6617_vm12, %vm6627_vm0  ;;  %v15453_v33 = vld [vmem:[#allocation12_spill] sm:$0xff] }
 0x30d   : > { %v15444_v58 = vmov 0  ;;  %v14350_v10 = vpack.c.bf16 %v14165_v1, %v14150_v43  ;;  %v7407_v31 = vshrl.u32 %v7336_v30, 16  ;;  %v7409_v34 = vshll.u32 %v7336_v30, 16  ;;  %vm14357_vm14 = vmand %vm14344_vm1, %vm15103_vm4 }
 0x30e   : > { %v14332_v5 = vcombine.low %v15443_v6, %v15442_v48  ;;  %v15445_v58 = vsel %vm14339_vm11, 4294967295, %v15444_v58  ;;  %v7514_v42 = vrot.slane %v14321_v60, 1  ;;  %v7515_v63 = vrot.slane %v14324_v57, 1  ;;  %vm6699_vm0 = vmand %vm14344_vm1, %vm15102_vm5 }
 0x30f   : > { %v7414_v15 = vshll.u32 %v7337_v21, 16  ;;  %v6608_v43 = vadd.s32 8, %v15372_v22  ;;  %v7317_v1 = vsel %vm14357_vm14, %v14315_v27, 0.0  ;;  %9306 = vmatmul.mubr.msk.bf16.gmra.mrb[104].mxu1 %vm14339_vm11, %v14350_v10  ;;  %v7411_v30 = vrot.slane %v7409_v34, 1  ;;  %vm14403_vm4 = vmpackc.low %vm14222_vm2, %vm14237_vm8 }
 0x310   : > { %v7318_v47 = vsel %vm14344_vm1, %v14332_v5, 0.0  ;;  %v15450_v38 = vrot.slane %v13881_v18, %v12986_v49  ;;  %v15451_v21 = vrot.slane %v13865_v19, %v12986_v49  ;;  %v15452_v29 = vrot.slane %v13943_v13, %v12986_v49 }
 0x311   : > { %v15454_v20 = vrot.slane %v15453_v33, %v12986_v49  ;;  %vm15455_vm15 = vcmask 1046528   ;;  %v7319_v51 = vsel %vm6699_vm0, %v7183_v9, 0.0  ;;  %v14394_v41 = vpack.c.bf16 %v7318_v47, %v7317_v1  ;;  %v15472_v1 = vld [vmem:[#allocation57_spill] sm:$0xff] }
 0x312   : > { %v14381_v28 = vcombine.low %v15451_v21, %v15450_v38  ;;  %v14392_v55 = vsel %vm15455_vm15, %v7514_v42, %v7515_v63  ;;  %v7416_v18 = vrot.slane %v7414_v15, 1  ;;  %v14397_v19 = vpack.c.bf16 %v7319_v51, %v7319_v51  ;;  %v15470_v15 = vld [vmem:[#allocation58_spill] sm:$0xff]  ;;  %v15474_v21 = vld [vmem:[#allocation47_spill] sm:$0xff] }
 0x313   : > { %v14389_v39 = vcombine.low %v15454_v20, %v15452_v29  ;;  %10135 = vmatmul.mubr.bf16.gmra.mrb[108].mxu0 %v14392_v55  ;;  %v7412_v7 = vor.u32 %v7411_v30, %v7407_v31  ;;  %vm6618_vm12 = vcmp.ge.s32.totalorder %v6608_v43, 0  ;;  %vm6628_vm5 = vcmp.lt.s32.totalorder %v6608_v43, 16  ;;  %v15467_v31 = vld [vmem:[#allocation54_spill] sm:$0xff] }
 0x314   : > { %v15456_v13 = vmov 0  ;;  %v7517_v50 = vrot.slane %v14394_v41, 1  ;;  %vm14408_vm0 = vmand %vm6618_vm12, %vm6628_vm5  ;;  %v7224_v6 = vrot.slane %v6585_v61, %v12986_v49  ;;  %vm6610_vm15 = vcmp.ge.s32.totalorder %v15372_v22, 0  ;;  %v15465_v61 = vld [vmem:[#allocation55_spill] sm:$0xff] }
 0x315   : > { %v15457_v13 = vsel %vm14403_vm4, 4294967295, %v15456_v13  ;;  %vm6620_vm11 = vcmp.lt.s32.totalorder %v15372_v22, 16  ;;  %v7518_v25 = vrot.slane %v14397_v19, 1  ;;  %vm15461_vm2 = vsmask.f32 7424 }
 0x316   : > { %15458 = vst [vmem:[#allocation20_spill] sm:$0xff] %v15457_v13  ;;  %v14419_v17 = vsel %vm15461_vm2, %v7412_v7, %v7416_v18  ;;  %vm15462_vm8 = vcmp.ge.s32.totalorder %v15346_v32, 1  ;;  %v7321_v26 = vsel %vm14408_vm0, %v14389_v39, 0.0  ;;  %v15466_v42 = vrot.slane %v15465_v61, %v12986_v49  ;;  %v10621_v61 = vld [vmem:[#allocation2 + $0x200] sm:$0xff]  }
 0x317   : > { %vm14425_vm5 = vmand %vm14408_vm0, %vm15462_vm8  ;;  %v15468_v34 = vrot.slane %v15467_v31, %v12986_v49  ;;  %7841 = vmatprep.mubr.bf16.mxu1 %v14419_v17  ;;  %vm15469_vm12 = vcmp.le.s32.totalorder %v15351_v53, 16  ;;  %v15471_v43 = vrot.slane %v15470_v15, %v12986_v49  ;;  %v15473_v30 = vrot.slane %v15472_v1, %v12986_v49 }
 0x318   : > { %vm6702_vm2 = vmand %vm14408_vm0, %vm15469_vm12  ;;  %v7320_v47 = vsel %vm14425_vm5, %v14381_v28, 0.0  ;;  %v15475_v29 = vmax.f32 %v15474_v21, 0.0  ;;  %v14461_v20 = vpack.c.bf16 %v14212_v3, %v14203_v37  ;;  %vm15476_vm8 = vcmask 1046528   ;;  %v10620_v37 = vld [vmem:[#allocation2 + $0x1b8] sm:$0xff]  }
 0x319   : > { %v14438_v63 = vcombine.low %v15468_v34, %v15466_v42  ;;  %v14454_v38 = vcombine.low %v15473_v30, %v15471_v43  ;;  %v14464_v51 = vsel %vm15476_vm8, %v7517_v50, %v7518_v25  ;;  %v7322_v18 = vsel %vm6702_vm2, %v7224_v6, 0.0  ;;  %vm14470_vm12 = vmand %vm6610_vm15, %vm6620_vm11 }
 0x31a   : > { %v6896_v33 = vrot.slane %v15475_v29, %v12986_v49  ;;  %v7342_v7 = vpack.c.bf16 %v7321_v26, %v7320_v47  ;;  %v7419_v42 = vshrl.u32 %v14321_v60, 16  ;;  %10138 = vmatprep.mubr.bf16.mxu0 %v14464_v51  ;;  %v7343_v31 = vpack.c.bf16 %v7322_v18, %v7322_v18  ;;  %9309 = vmatmul.mubr.msk.bf16.gmra.mrb[108].mxu1 %vm14403_vm4, %v14461_v20 }
 0x31b   : > { %vm15479_vm13 = vcmp.ge.s32.totalorder %v15346_v32, 1  ;;  %v7297_v3 = vsel %vm14470_vm12, %v14454_v38, 0.0  ;;  %v7421_v6 = vshll.u32 %v14321_v60, 16  ;;  %vm15482_vm11 = vcmp.le.s32.totalorder %v15351_v53, 16 }
 0x31c   : > { %vm14480_vm8 = vmand %vm14470_vm12, %vm15479_vm13  ;;  %v7520_v25 = vrot.slane %v7342_v7, 1  ;;  %v7426_v34 = vshll.u32 %v14324_v57, 16  ;;  %v14503_v47 = vpack.c.bf16 %v14281_v54, %v14273_v12  ;;  %v7521_v60 = vrot.slane %v7343_v31, 1 }
 0x31d   : > { %vm6678_vm15 = vmand %vm14470_vm12, %vm15482_vm11  ;;  %v7296_v26 = vsel %vm14480_vm8, %v14438_v63, 0.0  ;;  %v7423_v1 = vrot.slane %v7421_v6, 1  ;;  %v7257_v30 = vrot.slane %v14155_v24, %v12986_v49  ;;  %v7433_v18 = vshll.u32 %v14394_v41, 16 }
 0x31e   : > { %v7298_v15 = vsel %vm6678_vm15, %v6896_v33, 0.0  ;;  %v7326_v43 = vpack.c.bf16 %v7297_v3, %v7296_v26  ;;  %v7428_v29 = vrot.slane %v7426_v34, 1  ;;  %vm15483_vm13 = vcmask 1046528   ;;  %vm14527_vm11 = vmpackc.low %vm14263_vm9, %vm14287_vm10 }
 0x31f   : > { %v7327_v21 = vpack.c.bf16 %v7298_v15, %v7298_v15  ;;  %v14509_v50 = vsel %vm15483_vm13, %v7520_v25, %v7521_v60  ;;  %v7424_v57 = vor.u32 %v7423_v1, %v7419_v42  ;;  %v7438_v13 = vshll.u32 %v14397_v19, 16  ;;  %vm15487_vm15 = vmmov %vm15483_vm13  ;;  %v10595_v1 = vld [vmem:[#allocation2 + $0x1c8] sm:$0xff]  }
 0x320   : > { %v7496_v52 = vrot.slane %v7326_v43, 1  ;;  %10139 = vmatmul.mubr.bf16.gmra.mrb[112].mxu0 %v14509_v50  ;;  %v7431_v54 = vshrl.u32 %v14394_v41, 16  ;;  %v7435_v33 = vrot.slane %v7433_v18, 1  ;;  %v14516_v24 = vpack.c.bf16 %v14332_v5, %v14315_v27  ;;  %vm14551_vm10 = vmpackc.low %vm14344_vm1, %vm14357_vm14 }
 0x321   : > { %v7497_v12 = vrot.slane %v7327_v21, 1  ;;  %v7250_v3 = vrot.slane %v14127_v62, %v12986_v49  ;;  %vm15484_vm2 = vsmask.f32 7424  ;;  %v7445_v41 = vshll.u32 %v7342_v7, 16 }
 0x322   : > { %v14521_v6 = vsel %vm15484_vm2, %v7424_v57, %v7428_v29  ;;  %v7450_v42 = vshll.u32 %v7343_v31, 16  ;;  %v7436_v27 = vor.u32 %v7435_v33, %v7431_v54  ;;  %v7440_v5 = vrot.slane %v7438_v13, 1  ;;  %vm15488_vm9 = vmmov %vm15484_vm2  ;;  %v10592_v13 = vld [vmem:[#allocation2 + $0x180] sm:$0xff]   ;;  %v15495_v57 = vld [vmem:[#allocation52_spill] sm:$0xff] }
 0x323   : > { %v7498_v25 = vsel %vm15487_vm15, %v7496_v52, %v7497_v12  ;;  %7849 = vmatprep.mubr.bf16.mxu1 %v14521_v6  ;;  %v14535_v62 = vpack.c.bf16 %v14389_v39, %v14381_v28  ;;  %v7443_v36 = vshrl.u32 %v7342_v7, 16  ;;  %v7447_v26 = vrot.slane %v7445_v41, 1  ;;  %vm15492_vm15 = vmmov %vm15488_vm9  ;;  %v15499_v12 = vld [vmem:[#allocation53_spill] sm:$0xff]  ;;  %v10596_v54 = vld [vmem:[#allocation2 + $0x188] sm:$0xff]  }
 0x324   : > { %10158 = vmatprep.mubr.bf16.mxu0 %v7498_v25  ;;  %v7349_v14 = vshll.u32 %v7326_v43, 16  ;;  %v7354_v34 = vshll.u32 %v7327_v21, 16  ;;  %9312 = vmatmul.mubr.msk.bf16.gmra.mrb[112].mxu1 %vm14527_vm11, %v14503_v47  ;;  %v14541_v31 = vsel %vm15488_vm9, %v7436_v27, %v7440_v5  ;;  %v6609_v52 = vadd.s32 9, %v15372_v22 }
 0x325   : > { %v14544_v60 = vcombine.low %v7250_v3, %v7257_v30  ;;  %7857 = vmatprep.mubr.bf16.mxu1 %v14541_v31  ;;  %v7448_v28 = vor.u32 %v7447_v26, %v7443_v36  ;;  %v7452_v39 = vrot.slane %v7450_v42, 1  ;;  %v7347_v7 = vshrl.u32 %v7326_v43, 16  ;;  %v10599_v3 = vld [vmem:[#allocation2 + $0x1d0] sm:$0xff]  }
 0x326   : > { %v7351_v15 = vrot.slane %v7349_v14, 1  ;;  %vm6619_vm13 = vcmp.ge.s32.totalorder %v6609_v52, 0  ;;  %vm6629_vm2 = vcmp.lt.s32.totalorder %v6609_v52, 16  ;;  %v15491_v22 = vmax.f32 %v14032_v56, 0.0  ;;  %v10603_v14 = vld [vmem:[#allocation2 + $0x1d8] sm:$0xff]  }
 0x327   : > { %v9413_v29 = vpack.c.bf16 %v14544_v60, %v14157_v45  ;;  %v14561_v43 = vsel %vm15492_vm15, %v7448_v28, %v7452_v39  ;;  %v7356_v59 = vrot.slane %v7354_v34, 1  ;;  %vm14563_vm9 = vmand %vm6619_vm13, %vm6629_vm2  ;;  %vm15496_vm1 = vcmp.ge.s32.totalorder %v15346_v32, 1 }
 0x328   : > { %v7265_v30 = vrot.slane %v15491_v22, %v12986_v49  ;;  %v7352_v18 = vor.u32 %v7351_v15, %v7347_v7  ;;  %10159 = vmatmul.mubr.bf16.vlgmr.msra.gmra.mrb[100].mxu0 %v15495_v57  ;;  %vm14572_vm14 = vmand %vm14563_vm9, %vm15496_vm1  ;;  %v7324_v56 = vsel %vm14563_vm9, %v14544_v60, 0.0  ;;  %vm15501_vm2 = vcmp.le.s32.totalorder %v15351_v53, 16  ;;  %v10600_v53 = vld [vmem:[#allocation2 + $0x190] sm:$0xff]   ;;  %v10604_v7 = vld [vmem:[#allocation2 + $0x198] sm:$0xff]  }
 0x329   : > { %10162 = vmatprep.mubr.bf16.mxu0 %v15499_v12  ;;  %9911 = vmatpush3.bf16.msra.mxu0 %v10592_v13  ;;  %vm15500_vm13 = vmmov %vm15492_vm15  ;;  %v7323_v32 = vsel %vm14572_vm14, %v14157_v45, 0.0  ;;  %vm15502_vm1 = vcmask 1046528   ;;  %v10607_v15 = vld [vmem:[#allocation2 + $0x1e0] sm:$0xff]   ;;  %v15504_v57 = vpack.c.bf16 %v14454_v38, %v14438_v63  ;;  %v10622_v63 = vld [vmem:[#allocation2 + $0x208] sm:$0xff]  }
 0x32a   : > { %v7357_v33 = vsel %vm15500_vm13, %v7352_v18, %v7356_v59  ;;  %vm6705_vm15 = vmand %vm14563_vm9, %vm15501_vm2  ;;  %9912 = vmatprep.subr.bf16.mxu0 %v10595_v1  ;;  %v7344_v42 = vpack.c.bf16 %v7324_v56, %v7323_v32  ;;  %vm15503_vm2 = vsmask.f32 7424  ;;  %v10608_v22 = vld [vmem:[#allocation2 + $0x1a0] sm:$0xff]   ;;  %v10612_v18 = vld [vmem:[#allocation2 + $0x1a8] sm:$0xff]  }
 0x32b   : > { %v7325_v41 = vsel %vm6705_vm15, %v7265_v30, 0.0  ;;  %vm9316_vm13 = vmpackc.low %vm14408_vm0, %vm14425_vm5  ;;  %v10611_v30 = vld [vmem:[#allocation2 + $0x1e8] sm:$0xff]   ;;  %v10615_v59 = vld [vmem:[#allocation2 + $0x1f0] sm:$0xff]  }
 0x32c   : > { %v7345_v25 = vpack.c.bf16 %v7325_v41, %v7325_v41  ;;  %9315 = vmatmul.mubr.msk.bf16.gmra.mrb[116].mxu1 %vm14551_vm10, %v14516_v24  ;;  %v7457_v27 = vshll.u32 %v7344_v42, 16  ;;  %v7523_v5 = vrot.slane %v7344_v42, 1  ;;  %v7455_v34 = vshrl.u32 %v7344_v42, 16  ;;  %vm9343_vm15 = vmpackc.low %vm14470_vm12, %vm14480_vm8  ;;  %v10616_v56 = vld [vmem:[#allocation2 + $0x1b0] sm:$0xff]   ;;  %v10625_v42 = vld [vmem:[#allocation2 + $0x220] sm:$0xff]  }
 0x32d   : > { %9913 = vmatpush3.bf16.msra.mxu0 %v10596_v54  ;;  %7865 = vmatprep.mubr.bf16.mxu1 %v14561_v43  ;;  %v15505_v54 = vld [vmem:[#allocation24_spill] sm:$0xff]  ;;  %vm15509_vm12 = vmpackc.low %vm13861_vm6, %vm13890_vm7  ;;  %vm15510_vm6 = vnez %v15420_v16  ;;  %vm15511_vm7 = vnez %v15445_v58  ;;  %v10628_v16 = vld [vmem:[#allocation2 + $0x238] sm:$0xff]  }
 0x32e   : > { %v7462_v36 = vshll.u32 %v7345_v25, 16  ;;  %v7524_v26 = vrot.slane %v7345_v25, 1  ;;  %9914 = vmatprep.subr.bf16.mxu0 %v10599_v3  ;;  %v7459_v52 = vrot.slane %v7457_v27, 1  ;;  %v15506_v32 = vld [vmem:[#allocation40_spill] sm:$0xff] }
 0x32f   : > { %v10623_v38 = vld [vmem:[#allocation2 + $0x210] sm:$0xff]  }
 0x330   : > { %v14593_v13 = vsel %vm15502_vm1, %v7523_v5, %v7524_v26  ;;  %10163 = vmatmul.mubr.bf16.gmra.mrb[104].mxu0 %v14187_v46  ;;  %v7460_v28 = vor.u32 %v7459_v52, %v7455_v34  ;;  %v7464_v39 = vrot.slane %v7462_v36, 1 }
 0x331   : > { %10166 = vmatprep.mubr.bf16.mxu0 %v14257_v4  ;;  %9915 = vmatpush3.bf16.msra.mxu0 %v10600_v53 }
 0x332   : > { %9916 = vmatprep.subr.bf16.mxu0 %v10603_v14  ;;  %v14602_v1 = vsel %vm15503_vm2, %v7460_v28, %v7464_v39 }
 0x334   : > { %9318 = vmatmul.mubr.msk.bf16.gmra.mrb[120].mxu1 %vm9316_vm13, %v14535_v62 }
 0x335   : > { %9917 = vmatpush3.bf16.msra.mxu0 %v10604_v7  ;;  %8147 = vmatprep.mubr.bf16.mxu1 %v7357_v33  ;;  %v10619_v33 = vld [vmem:[#allocation2 + $0x1f8] sm:$0xff]  }
 0x336   : > { %9918 = vmatprep.subr.bf16.mxu0 %v10607_v15 }
 0x338   : > { %10167 = vmatmul.mubr.bf16.gmra.mrb[108].mxu0 %v14318_v35 }
 0x339   : > { %10170 = vmatprep.mubr.bf16.mxu0 %v14392_v55  ;;  %9919 = vmatpush3.bf16.msra.mxu0 %v10608_v22 }
 0x33a   : > { %9920 = vmatprep.subr.bf16.mxu0 %v10611_v30 }
 0x33c   : > { %9345 = vmatmul.mubr.msk.bf16.vlgmr.msra.gmra.mrb[124].mxu1 %vm9343_vm15, %v15504_v57 }
 0x33d   : > { %9921 = vmatpush3.bf16.msra.mxu0 %v10612_v18  ;;  %8155 = vmatprep.mubr.bf16.mxu1 %v15505_v54 }
 0x33e   : > { %9922 = vmatprep.subr.bf16.mxu0 %v10615_v59 }
 0x340   : > { %10171 = vmatmul.mubr.bf16.gmra.mrb[112].mxu0 %v14464_v51 }
 0x341   : > { %9923 = vmatpush3.bf16.msra.mxu0 %v10616_v56  ;;  %8534 = vmatprep.mubr.bf16.mxu0 %v14082_v40 }
 0x342   : > { %9924 = vmatprep.subr.bf16.mxu0 %v10619_v33 }
 0x344   : > { %9348 = vmatmul.mubr.msk.bf16.gmra.mrb[128].mxu1 %vm15509_vm12, %v15506_v32 }
 0x345   : > { %9925 = vmatpush3.bf16.msra.mxu0 %v10620_v37  ;;  %8163 = vmatprep.mubr.bf16.mxu1 %v14082_v40  ;;  %v10624_v40 = vld [vmem:[#allocation2 + $0x218] sm:$0xff]  }
 0x346   : > { %10174 = vmatprep.subr.bf16.mxu0 %v10621_v61 }
 0x348   : > { %9393 = vmatmul.mubr.msk.bf16.vlgmr.msra.gmra.mrb[116].mxu0 %vm14088_vm3, %v14125_v11 }
 0x349   : > { %8542 = vmatprep.mubr.bf16.mxu0 %v14245_v0  ;;  %10175 = vmatpush3.bf16.msra.mxu0 %v10621_v61 }
 0x34a   : > { %10176 = vmatprep.subr.bf16.mxu0 %v10622_v63 }
 0x34c   : > { %9351 = vmatmul.mubr.msk.bf16.gmra.mrb[132].mxu1 %vm14088_vm3, %v14125_v11  ;;  %v10627_v11 = vld [vmem:[#allocation2 + $0x230] sm:$0xff]   ;;  %vm8806_vm3 = vcmask 1045504  }
 0x34d   : > { %10177 = vmatpush3.bf16.msra.mxu0 %v10622_v63  ;;  %8171 = vmatprep.mubr.bf16.mxu1 %v14245_v0 }
 0x34e   : > { %10178 = vmatprep.subr.bf16.mxu0 %v10623_v38 }
 0x350   : > { %9396 = vmatmul.mubr.msk.bf16.gmra.mrb[120].mxu0 %vm15510_vm6, %v14231_v8 }
 0x351   : > { %8550 = vmatprep.mubr.bf16.mxu0 %v14297_v44  ;;  %10179 = vmatpush3.bf16.msra.mxu0 %v10623_v38 }
 0x352   : > { %10180 = vmatprep.subr.bf16.mxu0 %v10624_v40 }
 0x354   : > { %9354 = vmatmul.mubr.msk.bf16.gmra.mrb[136].mxu1 %vm15510_vm6, %v14231_v8 }
 0x355   : > { %8179 = vmatprep.mubr.bf16.mxu1 %v14297_v44  ;;  %10181 = vmatpush3.bf16.msra.mxu0 %v10624_v40 }
 0x356   : > { %10182 = vmatprep.subr.bf16.mxu0 %v10625_v42 }
 0x358   : > { %9399 = vmatmul.mubr.msk.bf16.gmra.mrb[124].mxu0 %vm15511_vm7, %v14350_v10 }
 0x359   : > { %8558 = vmatprep.mubr.bf16.mxu0 %v14419_v17  ;;  %10183 = vmatpush3.bf16.msra.mxu0 %v10625_v42 }
 0x35a   : > { %10184 = vmatprep.subr.bf16.mxu0 %v10626_v23 }
 0x35c   : > { %9357 = vmatmul.mubr.msk.bf16.gmra.mrb[140].mxu1 %vm15511_vm7, %v14350_v10 }
 0x35d   : > { %8187 = vmatprep.mubr.bf16.mxu1 %v14419_v17  ;;  %10185 = vmatpush3.bf16.msra.mxu0 %v10626_v23 }
 0x35e   : > { %10186 = vmatprep.subr.bf16.mxu0 %v10627_v11 }
 0x360   : > { %9402 = vmatmul.mubr.msk.bf16.gmra.mrb[128].mxu0 %vm14403_vm4, %v14461_v20 }
 0x361   : > { %8566 = vmatprep.mubr.bf16.mxu0 %v14521_v6  ;;  %10187 = vmatpush3.bf16.msra.mxu0 %v10627_v11 }
 0x362   : > { %10188 = vmatprep.subr.bf16.mxu0 %v10628_v16 }
 0x364   : > { %9360 = vmatmul.mubr.msk.bf16.gmra.mrb[144].mxu1 %vm14403_vm4, %v14461_v20  ;;  %vm9412_vm4 = vmpackc.low %vm14563_vm9, %vm14572_vm14 }
 0x365   : > { %8195 = vmatprep.mubr.bf16.mxu1 %v14521_v6  ;;  %10189 = vmatpush3.bf16.msra.mxu0 %v10628_v16 }
 0x368   : > { %9405 = vmatmul.mubr.msk.bf16.gmra.mrb[132].mxu0 %vm14527_vm11, %v14503_v47 }
 0x369   : > { %8574 = vmatprep.mubr.bf16.mxu0 %v14541_v31 }
 0x36c   : > { %9363 = vmatmul.mubr.msk.bf16.gmra.mrb[148].mxu1 %vm14527_vm11, %v14503_v47 }
 0x36d   : > { %8203 = vmatprep.mubr.bf16.mxu1 %v14541_v31 }
 0x370   : > { %9408 = vmatmul.mubr.msk.bf16.gmra.mrb[136].mxu0 %vm14551_vm10, %v14516_v24 }
 0x371   : > { %8582 = vmatprep.mubr.bf16.mxu0 %v14561_v43 }
 0x374   : > { %9366 = vmatmul.mubr.msk.bf16.gmra.mrb[152].mxu1 %vm14551_vm10, %v14516_v24 }
 0x378   : > { %9411 = vmatmul.mubr.msk.bf16.gmra.mrb[140].mxu0 %vm9316_vm13, %v14535_v62 }
 0x379   : > { %8590 = vmatprep.mubr.bf16.mxu0 %v14602_v1 }
 0x380   : > { %9414 = vmatmul.mubr.msk.bf16.gmra.mrb[144].mxu0 %vm9412_vm4, %v9413_v29 }
 0x381   : > { %10190 = vmatprep.mubr.bf16.mxu0 %v15499_v12 }
 0x388   : > { %10191 = vmatmul.mubr.bf16.vlgmr.msra.gmra.mrb[100].mxu0 %v14187_v46 }
 0x389   : > { %10194 = vmatprep.mubr.bf16.mxu0 %v14257_v4 }
 0x390   : > { %10195 = vmatmul.mubr.bf16.gmra.mrb[104].mxu0 %v14318_v35 }
 0x391   : > { %10198 = vmatprep.mubr.bf16.mxu0 %v14392_v55 }
 0x398   : > { %10199 = vmatmul.mubr.bf16.gmra.mrb[108].mxu0 %v14464_v51 }
 0x399   : > { %10202 = vmatprep.mubr.bf16.mxu0 %v14509_v50 }
 0x3a0   : > { %10203 = vmatmul.mubr.bf16.gmra.mrb[112].mxu0 %v14593_v13 }
 0x3b2   : > { %v9766_v0 = vpop.f32.mrb[92].mxu1 }
 0x3b3   : > { %v9767_v44 = vpop.f32.mrb[93].mxu1 }
 0x3b4   : > { %v9768_v45 = vadd.f32 %v9767_v44, %v9766_v0  ;;  %v9769_v58 = vpop.f32.mrb[94].mxu1 }
 0x3b5   : > { %v9770_v10 = vpop.f32.mrb[95].mxu1 }
 0x3b6   : > { %v9771_v48 = vadd.f32 %v9770_v10, %v9769_v58 }
 0x3c9   : > { %v9772_v17 = vpop.f32.mrb[96].mxu1 }
 0x3ca   : > { %v9773_v46 = vpop.f32.mrb[97].mxu1 }
 0x3cb   : > { %v9774_v9 = vadd.f32 %v9773_v46, %v9772_v17  ;;  %v9775_v4 = vpop.f32.mrb[98].mxu1 }
 0x3cc   : > { %v9776_v20 = vpop.f32.mrb[99].mxu1 }
 0x3cd   : > { %v9777_v35 = vadd.f32 %v9776_v20, %v9775_v4 }
 0x3d7   : > { %v9778_v47 = vpop.f32.mrb[100].mxu1 }
 0x3d8   : > { %v9779_v55 = vpop.f32.mrb[101].mxu1 }
 0x3d9   : > { %v14698_v24 = vadd.f32 %v9779_v55, %v9778_v47  ;;  %v9781_v51 = vpop.f32.mrb[102].mxu1 }
 0x3da   : > { %v9782_v50 = vpop.f32.mrb[103].mxu1 }
 0x3db   : > { %v14700_v6 = vadd.f32 %v9782_v50, %v9781_v51 }
 0x3e2   : > { %v9784_v19 = vpop.f32.mrb[104].mxu1 }
 0x3e3   : > { %v9785_v62 = vpop.f32.mrb[105].mxu1 }
 0x3e4   : > { %v14702_v31 = vadd.f32 %v9785_v62, %v9784_v19  ;;  %v9787_v60 = vpop.f32.mrb[106].mxu1 }
 0x3e5   : > { %v9788_v21 = vpop.f32.mrb[107].mxu1 }
 0x3e6   : > { %v14704_v29 = vadd.f32 %v9788_v21, %v9787_v60 }
 0x3ed   : > { %v9790_v43 = vpop.f32.mrb[108].mxu1 }
 0x3ee   : > { %v9791_v2 = vpop.f32.mrb[109].mxu1 }
 0x3ef   : > { %v14706_v49 = vadd.f32 %v9791_v2, %v9790_v43  ;;  %v9793_v12 = vpop.f32.mrb[110].mxu1 }
 0x3f0   : > { %v9794_v25 = vpop.f32.mrb[111].mxu1 }
 0x3f1   : > { %v14708_v27 = vadd.f32 %v9794_v25, %v9793_v12 }
 0x3f7   : > { %v9796_v5 = vpop.f32.mrb[112].mxu1 }
 0x3f8   : > { %v9797_v53 = vpop.f32.mrb[113].mxu1 }
 0x3f9   : > { %v14710_v36 = vadd.f32 %v9797_v53, %v9796_v5  ;;  %v9799_v26 = vpop.f32.mrb[114].mxu1 }
 0x3fa   : > { %v9800_v14 = vpop.f32.mrb[115].mxu1 }
 0x3fb   : > { %v14712_v34 = vadd.f32 %v9800_v14, %v9799_v26 }
 0x3ff   : > { %v9802_v52 = vpop.f32.mrb[116].mxu1 }
 0x400   : > { %v9803_v13 = vpop.f32.mrb[117].mxu1 }
 0x401   : > { %v14714_v28 = vadd.f32 %v9803_v13, %v9802_v52  ;;  %v9805_v39 = vpop.f32.mrb[118].mxu1 }
 0x402   : > { %v9806_v7 = vpop.f32.mrb[119].mxu1 }
 0x403   : > { %v14716_v15 = vadd.f32 %v9806_v7, %v9805_v39 }
 0x407   : > { %v9808_v1 = vpop.f32.mrb[120].mxu1 }
 0x408   : > { %v9809_v22 = vpop.f32.mrb[121].mxu1 }
 0x409   : > { %v14718_v30 = vadd.f32 %v9809_v22, %v9808_v1  ;;  %v9811_v18 = vpop.f32.mrb[122].mxu1 }
 0x40a   : > { %v9812_v59 = vpop.f32.mrb[123].mxu1 }
 0x40b   : > { %v14720_v57 = vadd.f32 %v9812_v59, %v9811_v18 }
 0x40f   : > { %v9846_v56 = vpop.f32.mrb[124].mxu1 }
 0x410   : > { %v9847_v54 = vpop.f32.mrb[125].mxu1 }
 0x411   : > { %v9848_v33 = vadd.f32 %v9847_v54, %v9846_v56  ;;  %v9849_v37 = vpop.f32.mrb[126].mxu1 }
 0x412   : > { %v9850_v61 = vpop.f32.mrb[127].mxu1 }
 0x413   : > { %v10271_v32 = vadd.f32 %v9848_v33, %v9768_v45  ;;  %v9851_v3 = vadd.f32 %v9850_v61, %v9849_v37 }
 0x415   : > { %v10277_v41 = vadd.f32 %v9851_v3, %v9771_v48 }
 0x417   : > { %v9852_v63 = vpop.f32.mrb[128].mxu1 }
 0x418   : > { %v9853_v38 = vpop.f32.mrb[129].mxu1 }
 0x419   : > { %v9854_v40 = vadd.f32 %v9853_v38, %v9852_v63  ;;  %v9855_v42 = vpop.f32.mrb[130].mxu1 }
 0x41a   : > { %v9856_v23 = vpop.f32.mrb[131].mxu1 }
 0x41b   : > { %v9926_v11 = vpop.f32.mrb[116].mxu0  ;;  %v10268_v16 = vadd.f32 %v9854_v40, %v9774_v9  ;;  %v9857_v8 = vadd.f32 %v9856_v23, %v9855_v42 }
 0x41c   : > { %v9927_v0 = vpop.f32.mrb[117].mxu0 }
 0x41d   : > { %v9928_v44 = vadd.f32 %v9927_v0, %v9926_v11  ;;  %v9929_v58 = vpop.f32.mrb[118].mxu0  ;;  %v10274_v10 = vadd.f32 %v9857_v8, %v9777_v35 }
 0x41e   : > { %v9930_v17 = vpop.f32.mrb[119].mxu0 }
 0x41f   : > { %v9931_v46 = vadd.f32 %v9930_v17, %v9929_v58  ;;  %v9858_v4 = vpop.f32.mrb[132].mxu1  ;;  %v14722_v20 = vadd.f32 %v10271_v32, %v9928_v44 }
 0x420   : > { %v9859_v45 = vpop.f32.mrb[133].mxu1 }
 0x421   : > { %v9860_v47 = vadd.f32 %v9859_v45, %v9858_v4  ;;  %v9861_v48 = vpop.f32.mrb[134].mxu1  ;;  %v14724_v55 = vadd.f32 %v10277_v41, %v9931_v46 }
 0x422   : > { %v9862_v51 = vpop.f32.mrb[135].mxu1 }
 0x423   : > { %v9932_v50 = vpop.f32.mrb[120].mxu0  ;;  %v10283_v19 = vadd.f32 %v9860_v47, %v14698_v24  ;;  %v9863_v9 = vadd.f32 %v9862_v51, %v9861_v48 }
 0x424   : > { %v9933_v62 = vpop.f32.mrb[121].mxu0 }
 0x425   : > { %v9934_v60 = vadd.f32 %v9933_v62, %v9932_v50  ;;  %v9935_v21 = vpop.f32.mrb[122].mxu0  ;;  %v10289_v35 = vadd.f32 %v9863_v9, %v14700_v6 }
 0x426   : > { %v9936_v43 = vpop.f32.mrb[123].mxu0 }
 0x427   : > { %v9937_v2 = vadd.f32 %v9936_v43, %v9935_v21  ;;  %v9864_v12 = vpop.f32.mrb[136].mxu1  ;;  %v14728_v25 = vadd.f32 %v10268_v16, %v9934_v60 }
 0x428   : > { %v9865_v5 = vpop.f32.mrb[137].mxu1 }
 0x429   : > { %v9866_v53 = vadd.f32 %v9865_v5, %v9864_v12  ;;  %v9867_v26 = vpop.f32.mrb[138].mxu1  ;;  %v14730_v14 = vadd.f32 %v10274_v10, %v9937_v2 }
 0x42a   : > { %v9868_v52 = vpop.f32.mrb[139].mxu1 }
 0x42b   : > { %v9938_v13 = vpop.f32.mrb[124].mxu0  ;;  %v10280_v24 = vadd.f32 %v9866_v53, %v14702_v31  ;;  %v9869_v39 = vadd.f32 %v9868_v52, %v9867_v26 }
 0x42c   : > { %v9939_v7 = vpop.f32.mrb[125].mxu0 }
 0x42d   : > { %v9940_v1 = vadd.f32 %v9939_v7, %v9938_v13  ;;  %v9941_v22 = vpop.f32.mrb[126].mxu0  ;;  %v10286_v6 = vadd.f32 %v9869_v39, %v14704_v29 }
 0x42e   : > { %v9942_v18 = vpop.f32.mrb[127].mxu0 }
 0x42f   : > { %v9943_v59 = vadd.f32 %v9942_v18, %v9941_v22  ;;  %v9870_v56 = vpop.f32.mrb[140].mxu1  ;;  %v14734_v54 = vadd.f32 %v10283_v19, %v9940_v1 }
 0x430   : > { %v9871_v33 = vpop.f32.mrb[141].mxu1 }
 0x431   : > { %v9872_v37 = vadd.f32 %v9871_v33, %v9870_v56  ;;  %v9873_v61 = vpop.f32.mrb[142].mxu1  ;;  %v14736_v32 = vadd.f32 %v10289_v35, %v9943_v59 }
 0x432   : > { %v9874_v3 = vpop.f32.mrb[143].mxu1 }
 0x433   : > { %v9944_v41 = vpop.f32.mrb[128].mxu0  ;;  %v10295_v31 = vadd.f32 %v9872_v37, %v14706_v49  ;;  %v9875_v63 = vadd.f32 %v9874_v3, %v9873_v61 }
 0x434   : > { %v9945_v38 = vpop.f32.mrb[129].mxu0 }
 0x435   : > { %v9946_v40 = vadd.f32 %v9945_v38, %v9944_v41  ;;  %v9947_v42 = vpop.f32.mrb[130].mxu0  ;;  %v10301_v29 = vadd.f32 %v9875_v63, %v14708_v27 }
 0x436   : > { %v9948_v23 = vpop.f32.mrb[131].mxu0 }
 0x437   : > { %v9949_v11 = vadd.f32 %v9948_v23, %v9947_v42  ;;  %v9876_v16 = vpop.f32.mrb[144].mxu1  ;;  %v14740_v8 = vadd.f32 %v10280_v24, %v9946_v40  ;;  %v10631_v40 = vld [vmem:[%s10973_s9 + $0x24] sm:$0xf] }
 0x438   : > { %v9877_v0 = vpop.f32.mrb[145].mxu1  ;;  %v8715_v42 = vunpack.c.l.bf16 %v10631_v40 }
 0x439   : > { %v9878_v44 = vadd.f32 %v9877_v0, %v9876_v16  ;;  %v9879_v58 = vpop.f32.mrb[146].mxu1  ;;  %v14742_v10 = vadd.f32 %v10286_v6, %v9949_v11  ;;  %v10633_v11 = vld [vmem:[%s10973_s9 + $0x18] sm:$0xf]  ;;  %v10634_v0 = vld [vmem:[%s10973_s9 + $0x1c] sm:$0xf] }
 0x43a   : > { %v9880_v17 = vpop.f32.mrb[147].mxu1  ;;  %v8712_v16 = vunpack.c.l.bf16 %v10633_v11 }
 0x43b   : > { %v9950_v46 = vpop.f32.mrb[132].mxu0  ;;  %v10292_v49 = vadd.f32 %v9878_v44, %v14710_v36  ;;  %v9881_v4 = vadd.f32 %v9880_v17, %v9879_v58  ;;  %v8713_v44 = vunpack.c.l.bf16 %v10634_v0 }
 0x43c   : > { %v9951_v45 = vpop.f32.mrb[133].mxu0 }
 0x43d   : > { %v9952_v47 = vadd.f32 %v9951_v45, %v9950_v46  ;;  %v9953_v48 = vpop.f32.mrb[134].mxu0  ;;  %v10298_v27 = vadd.f32 %v9881_v4, %v14712_v34 }
 0x43e   : > { %v9954_v51 = vpop.f32.mrb[135].mxu0 }
 0x43f   : > { %v9955_v50 = vadd.f32 %v9954_v51, %v9953_v48  ;;  %v9882_v19 = vpop.f32.mrb[148].mxu1  ;;  %v14746_v9 = vadd.f32 %v10295_v31, %v9952_v47  ;;  %v8807_v47 = vrot.slane %v8712_v16, 2  ;;  %v8808_v48 = vrot.slane %v8713_v44, 2 }
 0x440   : > { %v9883_v62 = vpop.f32.mrb[149].mxu1 }
 0x441   : > { %v9884_v60 = vadd.f32 %v9883_v62, %v9882_v19  ;;  %v9885_v21 = vpop.f32.mrb[150].mxu1  ;;  %v14748_v35 = vadd.f32 %v10301_v29, %v9955_v50  ;;  %v10632_v29 = vld [vmem:[%s10973_s9 + $0x28] sm:$0xf]  ;;  %v10636_v50 = vld [vmem:[%s10973_s9 + $0x20] sm:$0x3] }
 0x442   : > { %v9886_v43 = vpop.f32.mrb[151].mxu1  ;;  %v8716_v23 = vunpack.c.l.bf16 %v10632_v29  ;;  %v8714_v19 = vunpack.c.l.bf16 %v10636_v50  ;;  %v10637_v62 = vld [vmem:[%s10973_s9 + $0x3c] sm:$0xf]  ;;  %v10642_v29 = vld [vmem:[%s10973_s9 + $0x38] sm:$0x3] }
 0x443   : > { %v9956_v2 = vpop.f32.mrb[136].mxu0  ;;  %v10307_v36 = vadd.f32 %v9884_v60, %v14714_v28  ;;  %v9887_v12 = vadd.f32 %v9886_v43, %v9885_v21  ;;  %v8721_v60 = vunpack.c.l.bf16 %v10637_v62  ;;  %v10638_v21 = vld [vmem:[%s10973_s9 + $0x40] sm:$0xf] }
 0x444   : > { %v9957_v5 = vpop.f32.mrb[137].mxu0  ;;  %v8813_v4 = vrot.slane %v8716_v23, 2  ;;  %v8722_v43 = vunpack.c.l.bf16 %v10638_v21  ;;  %v10643_v23 = vld [vmem:[%s10973_s9 + $0x54] sm:$0xf] }
 0x445   : > { %v9958_v53 = vadd.f32 %v9957_v5, %v9956_v2  ;;  %v9959_v26 = vpop.f32.mrb[138].mxu0  ;;  %v10313_v34 = vadd.f32 %v9887_v12, %v14716_v15  ;;  %v10640_v5 = vld [vmem:[%s10973_s9 + $0x34] sm:$0xf] }
 0x446   : > { %v9960_v52 = vpop.f32.mrb[139].mxu0 }
 0x447   : > { %v9961_v13 = vadd.f32 %v9960_v52, %v9959_v26  ;;  %v9888_v24 = vpop.f32.mrb[152].mxu1  ;;  %v14752_v39 = vadd.f32 %v10292_v49, %v9958_v53  ;;  %v8812_v49 = vrot.slane %v8715_v42, 2  ;;  %v8719_v53 = vunpack.c.l.bf16 %v10640_v5 }
 0x448   : > { %v9889_v7 = vpop.f32.mrb[153].mxu1 }
 0x449   : > { %v9890_v1 = vadd.f32 %v9889_v7, %v9888_v24  ;;  %v9891_v22 = vpop.f32.mrb[154].mxu1  ;;  %v14754_v6 = vadd.f32 %v10298_v27, %v9961_v13  ;;  %v10635_v27 = vld [vmem:[%s10973_s9 + $0x2c] sm:$0x3]  ;;  %v8814_v52 = vsel %vm8806_vm3, %v8812_v49, %v8813_v4  ;;  %v8809_v7 = vsel %vm8806_vm3, %v8807_v47, %v8808_v48  ;;  %v10644_v47 = vld [vmem:[%s10973_s9 + $0x58] sm:$0xf] }
 0x44a   : > { %v9892_v18 = vpop.f32.mrb[155].mxu1  ;;  %v8717_v51 = vunpack.c.l.bf16 %v10635_v27  ;;  %v8728_v27 = vunpack.c.l.bf16 %v10644_v47 }
 0x44b   : > { %v9962_v28 = vpop.f32.mrb[140].mxu0  ;;  %v10304_v59 = vadd.f32 %v9890_v1, %v14718_v30  ;;  %v9893_v56 = vadd.f32 %v9892_v18, %v9891_v22  ;;  %v8810_v22 = vrot.slane %v8714_v19, 2  ;;  %v14788_v18 = vld [vmem:[%s14958_s6] ss:$0 sm:$0xff] }
 0x44c   : > { %v9963_v33 = vpop.f32.mrb[141].mxu0  ;;  %v8815_v1 = vrot.slane %v8717_v51, 2 }
 0x44d   : > { %v9964_v15 = vadd.f32 %v9963_v33, %v9962_v28  ;;  %v9965_v37 = vpop.f32.mrb[142].mxu0  ;;  %v10310_v61 = vadd.f32 %v9893_v56, %v14720_v57  ;;  %v8822_v56 = vrot.slane %v8721_v60, 2  ;;  %v8823_v33 = vrot.slane %v8722_v43, 2 }
 0x44e   : > { %v9966_v3 = vpop.f32.mrb[143].mxu0  ;;  %v8811_v0 = vsel %vm8806_vm3, %v8808_v48, %v8810_v22 }
 0x44f   : > { %v9967_v41 = vadd.f32 %v9966_v3, %v9965_v37  ;;  %v14758_v31 = vadd.f32 %v10307_v36, %v9964_v15  ;;  %v10639_v36 = vld [vmem:[%s10973_s9 + $0x30] sm:$0xf] }
 0x450   : > { %v8718_v12 = vunpack.c.l.bf16 %v10639_v36  ;;  %v10645_v36 = vld [vmem:[%s10973_s9 + $0x48] sm:$0xf] }
 0x451   : > { %v14760_v63 = vadd.f32 %v10313_v34, %v9967_v41  ;;  %v14779_v34 = vld [vmem:[%s14957_s5] ss:$0 sm:$0xff] }
 0x452   : > { %v8817_v41 = vrot.slane %v8718_v12, 2  ;;  %v8724_v12 = vunpack.c.l.bf16 %v10645_v36  ;;  %v10651_v36 = vld [vmem:[%s10973_s9 + $0x60] sm:$0xf] }
 0x453   : > { %v9968_v38 = vpop.f32.mrb[144].mxu0 }
 0x454   : > { %v9969_v30 = vpop.f32.mrb[145].mxu0 }
 0x455   : > { %v9970_v57 = vadd.f32 %v9969_v30, %v9968_v38  ;;  %v9971_v58 = vpop.f32.mrb[146].mxu0  ;;  %v8818_v38 = vrot.slane %v8719_v53, 2  ;;  %v8727_v30 = vunpack.c.l.bf16 %v10643_v23 }
 0x456   : > { %v9972_v17 = vpop.f32.mrb[147].mxu0 }
 0x457   : > { %v9973_v46 = vadd.f32 %v9972_v17, %v9971_v58  ;;  %v14766_v45 = vadd.f32 %v10304_v59, %v9970_v57  ;;  %v8824_v57 = vsel %vm8806_vm3, %v8822_v56, %v8823_v33  ;;  %v8819_v49 = vsel %vm8806_vm3, %v8817_v41, %v8818_v38 }
 0x458   : > { %v8832_v19 = vrot.slane %v8727_v30, 2  ;;  %v10648_v30 = vld [vmem:[%s10973_s9 + $0x50] sm:$0x3] }
 0x459   : > { %v14772_v2 = vadd.f32 %v10310_v61, %v9973_v46 }
 0x45b   : > { %v10192_v26 = vpop.f32.mrb[100].mxu0 }
 0x45c   : > { %v10270_v13 = vadd.f32 %v14728_v25, %v10192_v26  ;;  %v8633_v24 = vpop.f32.mrb[101].mxu0  ;;  %v10641_v25 = vld [vmem:[%s10973_s9 + $0x44] sm:$0x3] }
 0x45d   : > { %v10273_v28 = vadd.f32 %v14722_v20, %v8633_v24  ;;  %v10193_v59 = vpop.f32.mrb[102].mxu0  ;;  %v8723_v15 = vunpack.c.l.bf16 %v10641_v25  ;;  %v8720_v20 = vunpack.c.l.bf16 %v10642_v29  ;;  %v10647_v25 = vld [vmem:[%s10973_s9 + $0x5c] sm:$0x3] }
 0x45e   : > { %v8745_v37 = vmul.f32 %v10270_v13, %v14779_v34  ;;  %v10276_v61 = vadd.f32 %v14730_v14, %v10193_v59  ;;  %v8636_v3 = vpop.f32.mrb[103].mxu0  ;;  %v8816_v14 = vsel %vm8806_vm3, %v8813_v4, %v8815_v1  ;;  %v10646_v13 = vld [vmem:[%s10973_s9 + $0x4c] sm:$0xf] }
 0x45f   : > { %v8743_v40 = vmul.f32 %v10273_v28, %v14779_v34  ;;  %v10279_v42 = vadd.f32 %v14724_v55, %v8636_v3  ;;  %v8825_v58 = vrot.slane %v8723_v15, 2  ;;  %v8820_v50 = vrot.slane %v8720_v20, 2 }
 0x460   : > { %v8768_v11 = vadd.f32 %v14788_v18, %v8745_v37  ;;  %v8746_v16 = vmul.f32 %v10276_v61, %v14779_v34  ;;  %v8725_v24 = vunpack.c.l.bf16 %v10646_v13  ;;  %v8833_v28 = vrot.slane %v8728_v27, 2 }
 0x461   : > { %v8766_v44 = vadd.f32 %v14788_v18, %v8743_v40  ;;  %v8744_v55 = vmul.f32 %v10279_v42, %v14779_v34  ;;  %v8729_v15 = vunpack.c.l.bf16 %v10647_v25  ;;  %v8826_v3 = vsel %vm8806_vm3, %v8823_v33, %v8825_v58 }
 0x462   : > { %v8865_v17 = vadd.f32 %v8814_v52, %v8768_v11  ;;  %v8769_v46 = vadd.f32 %v14788_v18, %v8746_v16  ;;  %v8827_v42 = vrot.slane %v8724_v12, 2  ;;  %v8834_v23 = vsel %vm8806_vm3, %v8832_v19, %v8833_v28 }
 0x463   : > { %v8863_v51 = vadd.f32 %v8809_v7, %v8766_v44  ;;  %v8767_v4 = vadd.f32 %v14788_v18, %v8744_v55  ;;  %v10196_v48 = vpop.f32.mrb[104].mxu0  ;;  %v8726_v11 = vunpack.c.l.bf16 %v10648_v30  ;;  %v8730_v12 = vunpack.c.l.bf16 %v10651_v36 }
 0x464   : > { %v8881_v62 = vmax.f32 %v8865_v17, 0.0  ;;  %v8866_v60 = vadd.f32 %v8816_v14, %v8769_v46  ;;  %v10282_v21 = vadd.f32 %v14740_v8, %v10196_v48  ;;  %v8649_v43 = vpop.f32.mrb[105].mxu0  ;;  %v8835_v14 = vrot.slane %v8729_v15, 2  ;;  %v10650_v46 = vld [vmem:[%s10973_s9 + $0x70] sm:$0xf] }
 0x465   : > { %v8879_v5 = vmax.f32 %v8863_v51, 0.0  ;;  %v8864_v53 = vadd.f32 %v8811_v0, %v8767_v4  ;;  %v10285_v26 = vadd.f32 %v14734_v54, %v8649_v43  ;;  %v10197_v52 = vpop.f32.mrb[106].mxu0  ;;  %v10649_v0 = vld [vmem:[%s10973_s9 + $0x6c] sm:$0xf]  ;;  %v8734_v47 = vunpack.c.l.bf16 %v10650_v46 }
 0x466   : > { %8897 = vst [vmem:[%s14818_s14 + $0x10] sm:$0xff] %v8881_v62  ;;  %v8882_v7 = vmax.f32 %v8866_v60, 0.0  ;;  %v8749_v8 = vmul.f32 %v10282_v21, %v14779_v34  ;;  %v10288_v1 = vadd.f32 %v14742_v10, %v10197_v52  ;;  %v8652_v22 = vpop.f32.mrb[107].mxu0  ;;  %v8821_v10 = vsel %vm8806_vm3, %v8818_v38, %v8820_v50 }
 0x467   : > { %8895 = vst [vmem:[%s14818_s14] sm:$0xff] %v8879_v5  ;;  %v8880_v59 = vmax.f32 %v8864_v53, 0.0  ;;  %v8747_v54 = vmul.f32 %v10285_v26, %v14779_v34  ;;  %v10291_v56 = vadd.f32 %v14736_v32, %v8652_v22  ;;  %v8828_v32 = vrot.slane %v8725_v24, 2 }
 0x468   : > { %8898 = vst [vmem:[%s14818_s14 + $0x18] sm:$0xff] %v8882_v7  ;;  %v8772_v37 = vadd.f32 %v14788_v18, %v8749_v8  ;;  %v8750_v61 = vmul.f32 %v10288_v1, %v14779_v34  ;;  %v8733_v44 = vunpack.c.l.bf16 %v10649_v0  ;;  %v8830_v60 = vrot.slane %v8726_v11, 2  ;;  %v10653_v8 = vld [vmem:[%s10973_s9 + $0x74] sm:$0x3] }
 0x469   : > { %8896 = vst [vmem:[%s14818_s14 + $0x8] sm:$0xff] %v8880_v59  ;;  %v8770_v41 = vadd.f32 %v14788_v18, %v8747_v54  ;;  %v8748_v40 = vmul.f32 %v10291_v56, %v14779_v34  ;;  %v8829_v4 = vsel %vm8806_vm3, %v8827_v42, %v8828_v32  ;;  %v8836_v26 = vsel %vm8806_vm3, %v8833_v28, %v8835_v14  ;;  %v10654_v54 = vld [vmem:[%s10973_s9 + $0x68] sm:$0x3] }
 0x46a   : > { %v8869_v29 = vadd.f32 %v8824_v57, %v8772_v37  ;;  %v8773_v20 = vadd.f32 %v14788_v18, %v8750_v61  ;;  %v8842_v7 = vrot.slane %v8733_v44, 2  ;;  %v8831_v59 = vsel %vm8806_vm3, %v8828_v32, %v8830_v60 }
 0x46b   : > { %v8867_v16 = vadd.f32 %v8819_v49, %v8770_v41  ;;  %v8771_v33 = vadd.f32 %v14788_v18, %v8748_v40  ;;  %v10200_v38 = vpop.f32.mrb[108].mxu0  ;;  %v8732_v56 = vunpack.c.l.bf16 %v10654_v54  ;;  %v8843_v37 = vrot.slane %v8734_v47, 2 }
 0x46c   : > { %v8885_v55 = vmax.f32 %v8869_v29, 0.0  ;;  %v8870_v58 = vadd.f32 %v8826_v3, %v8773_v20  ;;  %v10294_v17 = vadd.f32 %v14752_v39, %v10200_v38  ;;  %v8665_v57 = vpop.f32.mrb[109].mxu0  ;;  %v8837_v61 = vrot.slane %v8730_v12, 2 }
 0x46d   : > { %v8883_v27 = vmax.f32 %v8867_v16, 0.0  ;;  %v8868_v51 = vadd.f32 %v8821_v10, %v8771_v33  ;;  %v10297_v49 = vadd.f32 %v14746_v9, %v8665_v57  ;;  %v10201_v48 = vpop.f32.mrb[110].mxu0  ;;  %v8840_v38 = vrot.slane %v8732_v56, 2 }
 0x46e   : > { %8901 = vst [vmem:[%s14818_s14 + $0x30] sm:$0xff] %v8885_v55  ;;  %v8886_v50 = vmax.f32 %v8870_v58, 0.0  ;;  %v8753_v19 = vmul.f32 %v10294_v17, %v14779_v34  ;;  %v10300_v39 = vadd.f32 %v14754_v6, %v10201_v48  ;;  %v8668_v62 = vpop.f32.mrb[111].mxu0  ;;  %v10652_v6 = vld [vmem:[%s10973_s9 + $0x64] sm:$0xf]  ;;  %s9425_s9 = sshll.u32 %s10765_s27, 4  ;;  %v8844_v0 = vsel %vm8806_vm3, %v8842_v7, %v8843_v37 }
 0x46f   : > { %8899 = vst [vmem:[%s14818_s14 + $0x20] sm:$0xff] %v8883_v27  ;;  %v8884_v21 = vmax.f32 %v8868_v51, 0.0  ;;  %v8751_v43 = vmul.f32 %v10297_v49, %v14779_v34  ;;  %v10303_v9 = vadd.f32 %v14748_v35, %v8668_v62  ;;  %v8731_v52 = vunpack.c.l.bf16 %v10652_v6  ;;  %s8925_s27 = sadd.s32 %s9425_s9, %s9420_s17  ;;  %s10689_s9 = scalar_lea.vmem %s10688_s20, 4096 }
 0x470   : > { %8902 = vst [vmem:[%s14818_s14 + $0x38] sm:$0xff] %v8886_v50  ;;  %v8776_v5 = vadd.f32 %v14788_v18, %v8753_v19  ;;  %v8754_v53 = vmul.f32 %v10300_v39, %v14779_v34  ;;  %v8735_v35 = vunpack.c.l.bf16 %v10653_v8  ;;  %s9421_s28 = sshll.u32 %s8925_s27, 7  ;;  %p10691_p5 = scmp.lt.s32.totalorder %s10689_s9, %s10683_s22 }
 0x471   : > { %8900 = vst [vmem:[%s14818_s14 + $0x28] sm:$0xff] %v8884_v21  ;;  %v8774_v13 = vadd.f32 %v14788_v18, %v8751_v43  ;;  %v8752_v24 = vmul.f32 %v10303_v9, %v14779_v34  ;;  %v8838_v42 = vrot.slane %v8731_v52, 2  ;;  %s14891_s18 = scalar_lea.hbm %s14959_s7, %s9421_s28 }
 0x472   : > { %v8873_v1 = vadd.f32 %v8834_v23, %v8776_v5  ;;  %v8777_v22 = vadd.f32 %v14788_v18, %v8754_v53  ;;  %v8845_v30 = vrot.slane %v8735_v35, 2  ;;  %p10692_p6 = por %p10691_p5, %p10690_p2 }
 0x473   : > { %v8871_v25 = vadd.f32 %v8829_v4, %v8774_v13  ;;  %v8775_v28 = vadd.f32 %v14788_v18, %v8752_v24  ;;  %v10204_v15 = vpop.f32.mrb[112].mxu0  ;;  %v8839_v58 = vsel %vm8806_vm3, %v8837_v61, %v8838_v42  ;;  %v8841_v27 = vsel %vm8806_vm3, %v8838_v42, %v8840_v38 }
 0x474   : > { %v8889_v3 = vmax.f32 %v8873_v1, 0.0  ;;  %v8874_v10 = vadd.f32 %v8836_v26, %v8777_v22  ;;  %v10306_v41 = vadd.f32 %v14766_v45, %v10204_v15  ;;  %v8681_v40 = vpop.f32.mrb[113].mxu0  ;;  %v8846_v57 = vsel %vm8806_vm3, %v8843_v37, %v8845_v30  ;;  %p10693_p7 = pnand %p10692_p6, %p10686_p0 }
 0x475   : > { %v8887_v29 = vmax.f32 %v8871_v25, 0.0  ;;  %v8872_v32 = vadd.f32 %v8831_v59, %v8775_v28  ;;  %v10309_v20 = vadd.f32 %v14758_v31, %v8681_v40  ;;  %v10205_v23 = vpop.f32.mrb[114].mxu0 }
 0x476   : > { %8905 = vst [vmem:[%s14818_s14 + $0x50] sm:$0xff] %v8889_v3  ;;  %v8890_v11 = vmax.f32 %v8874_v10, 0.0  ;;  %v8757_v16 = vmul.f32 %v10306_v41, %v14779_v34  ;;  %v10312_v33 = vadd.f32 %v14772_v2, %v10205_v23  ;;  %v8684_v45 = vpop.f32.mrb[115].mxu0 }
 0x477   : > { %8903 = vst [vmem:[%s14818_s14 + $0x40] sm:$0xff] %v8887_v29  ;;  %v8888_v14 = vmax.f32 %v8872_v32, 0.0  ;;  %v8755_v31 = vmul.f32 %v10309_v20, %v14779_v34  ;;  %v10315_v44 = vadd.f32 %v14760_v63, %v8684_v45 }
 0x478   : > { %8906 = vst [vmem:[%s14818_s14 + $0x58] sm:$0xff] %v8890_v11  ;;  %v8780_v55 = vadd.f32 %v14788_v18, %v8757_v16  ;;  %v8758_v17 = vmul.f32 %v10312_v33, %v14779_v34 }
 0x479   : > { %8904 = vst [vmem:[%s14818_s14 + $0x48] sm:$0xff] %v8888_v14  ;;  %v8778_v2 = vadd.f32 %v14788_v18, %v8755_v31  ;;  %v8756_v46 = vmul.f32 %v10315_v44, %v14779_v34 }
 0x47a   : > { %v8877_v47 = vadd.f32 %v8844_v0, %v8780_v55  ;;  %v8781_v63 = vadd.f32 %v14788_v18, %v8758_v17 }
 0x47b   : > { %v8875_v51 = vadd.f32 %v8839_v58, %v8778_v2  ;;  %v8779_v49 = vadd.f32 %v14788_v18, %v8756_v46 }
 0x47c   : > { %v8893_v4 = vmax.f32 %v8877_v47, 0.0  ;;  %v8878_v48 = vadd.f32 %v8846_v57, %v8781_v63 }
 0x47d   : > { %v8891_v50 = vmax.f32 %v8875_v51, 0.0  ;;  %v8876_v19 = vadd.f32 %v8841_v27, %v8779_v49 }
 0x47e   : > { %8909 = vst [vmem:[%s14818_s14 + $0x70] sm:$0xff] %v8893_v4  ;;  %v8894_v34 = vmax.f32 %v8878_v48, 0.0 }
 0x47f   : > { %8907 = vst [vmem:[%s14818_s14 + $0x60] sm:$0xff] %v8891_v50  ;;  %v8892_v18 = vmax.f32 %v8876_v19, 0.0 }
 0x480   : > { %8910 = vst [vmem:[%s14818_s14 + $0x78] sm:$0xff] %v8894_v34 }
 0x481   : > { %8908 = vst [vmem:[%s14818_s14 + $0x68] sm:$0xff] %v8892_v18 }
 0x482   : > { %10696 = shalt.err (!%p10693_p7)
}
 0x483   : > { %s10697_s23 = scalar_lea.hbm %s14891_s18, 2048  ;;  %s10701_s27 = scalar_lea.hbm %s14959_s7, 8192 }
 0x484   : > { %p10698_p9 = scmp.ne.s32.totalorder %s14891_s18, %s10697_s23  ;;  %p10702_p1 = scmp.lt.u32.totalorder %s14891_s18, %s14959_s7 }
 0x485   : > { %p10703_p4 = scmp.lt.u32.totalorder %s10701_s27, %s10697_s23  ;;  %p10705_p8 = scmp.lt.u32.totalorder %s10697_s23, %s14891_s18 }
 0x486   : > { %p10699_p11 = pnand %p10698_p9, %p15513_p10 }
 0x487   : > { %p10704_p3 = por %p10703_p4, %p10702_p1 }
 0x488   : > { %p10700_p13 = pneg %p10699_p11 }
 0x489   : > { %p10706_p12 = por %p10705_p8, %p10704_p3 }
 0x48b   : > { %p10707_p0 = pnand %p10706_p12, %p10700_p13 }
 0x48d   : > { %10710 = shalt.err (!%p10707_p0)
}
 0x48e   : > { %s10789_s13 = smov 128   ;;  %s10790_s22 = smov 8  }
 0x48f   : > { %10377 = dma.vmem_to_hbm [thread:$0]  (%p15513_p10), %s14893_s11, 2048, %s14891_s18, %s14900_s19, %s10789_s13, %s10789_s13, %s10790_s22  }
 0x490 PF: > { %p10389_p2 = scmp.ge.s32.totalorder %s10781_s8, 2  ;;  %s8943_s12 = sand.u32 1, %s10753_s24  }
 0x491   : > { %p15514_p5 = scmp.ne.s32.totalorder %s15113_s16, 0  ;;  %s8944_s20 = scalar_lea.sflag [#allocation4], %s8943_s12 }
 0x493   : > { %p10384_p6 = pnand %p10389_p2, %p15514_p5 }
 0x495   : > { %10748 = dma.done.wait (!%p10384_p6), %s8944_s20, 2048  }
 0x496   : > { %10750 = vsyncadd (!%p10384_p6), %s8944_s20, 4294965248  ;;  %s21_s8 = sadd.s32 1, %s10781_s8   ;;  %s15515_s15 = sld [smem:[#allocation8_spill]] }
 0x497   : > { %p18_p7 = scmp.ge.s32.totalorder %s21_s8, 6   ;;  %s15516_s11 = sld [smem:[#allocation9_spill]] }
 0x498   : > { %s15517_s24 = smov %s10757_s25  ;;  %s15518_s25 = smov %s10761_s26 }
 0x499   : > { %s15519_s26 = smov %s10910_s21  ;;  %s15520_s27 = smov %s10773_s29 }
 0x49a   : > { %s15521_s28 = smov %s10777_s30  ;;  %20 = sbr.rel (!%p18_p7) target bundleno = 6 (0x6), region = 93 }
 0x49c   : > { %s15522_s29 = smov %s15515_s15 }
 0x49d   : > { %s15523_s30 = smov %s15516_s11 }
 0x4a1   :  { %8949 = vsyncpa [#allocation3], 1 }
 0x4a2   :  { %8951 = vsyncpa [#allocation3 + $0x1], 1 }
 0x4a3   :  { %8952 = vsyncpa [#allocation4], 1 }
 0x4a4   :  { %8954 = vsyncpa [#allocation4 + $0x1], 1 }

</bundles_post_ra>
